<compile_context>
chip_gen: v5e
topology: v5e:2x2
jax: 0.10.0
libtpu: 0.0.40
codegen_flags: <defaults>
</compile_context>

<pallas_src>
import functools
import math

import jax
import jax.numpy as jnp
from jax.experimental import pallas as pl
from jax.experimental.pallas import tpu as pltpu


# ----------------------------- in-kernel helpers -----------------------------
def _gru_cell(h, gi, whh, b_hn, H):
    """PyTorch GRU cell update (gate order r, z, n), fused-gate formulation.

    gi  : (B, 3H) input-side pre-activations, biases already included
          (b_ir+b_hr | b_iz+b_hz | b_in).
    whh : (H, 3H) fused hidden-side weights.
    b_hn: (1, H)  hidden-side bias of the n gate only.
    """
    gh = jnp.dot(h, whh, preferred_element_type=jnp.float32)          # (B, 3H)
    r = jax.nn.sigmoid(gi[:, 0:H] + gh[:, 0:H])
    z = jax.nn.sigmoid(gi[:, H:2 * H] + gh[:, H:2 * H])
    n = jnp.tanh(gi[:, 2 * H:3 * H] + r * (gh[:, 2 * H:3 * H] + b_hn))
    return (1.0 - z) * n + z * h


# ------------------------------ fused kernel ---------------------------------
def _fused_autoencoder_kernel(num_layers, hidden_size, t_max, batch, *refs):
    """Whole autoencoder forward in one kernel invocation (no grid).

    Ref order:
      x_flat (t_max*B, D_in), lengths (B,1) i32,
      per encoder layer: wih (D,3H), whh (H,3H), b_gi (1,3H), b_hn (1,H),
      enc_lin_wT (H,latent), enc_lin_b (1,latent),
      per decoder layer: same 4 refs,
      dec_lin_wT (H,out), dec_lin_b (1,out),
      out (t_max*B, out)
    """
    L, H, B = num_layers, hidden_size, batch

    it = iter(refs)
    x_ref = next(it)
    len_ref = next(it)
    enc_refs = [tuple(next(it) for _ in range(4)) for _ in range(L)]
    enc_lw_ref = next(it)
    enc_lb_ref = next(it)
    dec_refs = [tuple(next(it) for _ in range(4)) for _ in range(L)]
    dec_lw_ref = next(it)
    dec_lb_ref = next(it)
    out_ref = next(it)

    lengths = len_ref[...]                         # (B, 1) int32

    enc_w = [tuple(r[...] for r in p) for p in enc_refs]
    dec_w = [tuple(r[...] for r in p) for p in dec_refs]
    enc_lw, enc_lb = enc_lw_ref[...], enc_lb_ref[...]
    dec_lw, dec_lb = dec_lw_ref[...], dec_lb_ref[...]

    # -------------------------------- encoder --------------------------------
    # Layer-0 input projections for ALL timesteps in one matmul (hoisted out of
    # the recurrence): (t_max*B, D_in) @ (D_in, 3H) + bias.
    wih0, whh0, bgi0, bhn0 = enc_w[0]
    gi0_all = jnp.dot(x_ref[...], wih0, preferred_element_type=jnp.float32) + bgi0

    h_enc = [jnp.zeros((B, H), jnp.float32) for _ in range(L)]
    for t in range(t_max):
        mask = t < lengths                         # (B, 1): packed-seq active rows
        h_new = _gru_cell(h_enc[0], gi0_all[t * B:(t + 1) * B, :], whh0, bhn0, H)
        h_enc[0] = jnp.where(mask, h_new, h_enc[0])
        inp = h_enc[0]
        for l in range(1, L):
            wih, whh, bgi, bhn = enc_w[l]
            gi = jnp.dot(inp, wih, preferred_element_type=jnp.float32) + bgi
            h_new = _gru_cell(h_enc[l], gi, whh, bhn, H)
            h_enc[l] = jnp.where(mask, h_new, h_enc[l])
            inp = h_enc[l]

    # pad_packed output at time t_max-1: zero for sequences shorter than t_max.
    last_mask = (t_max - 1) < lengths
    enc_last = jnp.where(last_mask, h_enc[L - 1], 0.0)                 # (B, H)
    z = jnp.dot(enc_last, enc_lw, preferred_element_type=jnp.float32) + enc_lb

    # -------------------------------- decoder --------------------------------
    # Decoder layer-0 input is z at every step -> hoist the input projection.
    dwih0, dwhh0, dbgi0, dbhn0 = dec_w[0]
    dgi0 = jnp.dot(z, dwih0, preferred_element_type=jnp.float32) + dbgi0  # (B, 3H)

    h_dec = [jnp.zeros((B, H), jnp.float32) for _ in range(L)]
    outs = []
    for t in range(t_max):
        mask = t < lengths
        h_new = _gru_cell(h_dec[0], dgi0, dwhh0, dbhn0, H)
        h_dec[0] = jnp.where(mask, h_new, h_dec[0])
        inp = h_dec[0]
        for l in range(1, L):
            wih, whh, bgi, bhn = dec_w[l]
            gi = jnp.dot(inp, wih, preferred_element_type=jnp.float32) + bgi
            h_new = _gru_cell(h_dec[l], gi, whh, bhn, H)
            h_dec[l] = jnp.where(mask, h_new, h_dec[l])
            inp = h_dec[l]
        # pad_packed zeros at t >= length; the Linear maps them to its bias.
        outs.append(jnp.where(mask, h_dec[L - 1], 0.0))                # (B, H)

    # Batched output Linear over all timesteps + ONE full-block store.
    out_all = jnp.concatenate(outs, axis=0)                            # (t_max*B, H)
    xhat = jnp.dot(out_all, dec_lw, preferred_element_type=jnp.float32) + dec_lb
    out_ref[...] = xhat.astype(out_ref.dtype)


# ------------------------- parameter preparation ------------------------------
def _prep_gru_layer(wih, whh, bih, bhh, H):
    """PyTorch layouts -> fused-gate, transposed, pre-summed-bias layouts."""
    wih_f = jnp.transpose(wih)                                  # (D_in, 3H)
    whh_f = jnp.transpose(whh)                                  # (H, 3H)
    b_gi = jnp.concatenate([bih[0:H] + bhh[0:H],                # r: b_ir + b_hr
                            bih[H:2 * H] + bhh[H:2 * H],        # z: b_iz + b_hz
                            bih[2 * H:3 * H]]).reshape(1, 3 * H)  # n: b_in only
    b_hn = bhh[2 * H:3 * H].reshape(1, H)                       # n: b_hn (inside r*(...))
    return (wih_f, whh_f, b_gi, b_hn)


def prepare_params(enc_gru, enc_lin_w, enc_lin_b, dec_gru, dec_lin_w, dec_lin_b, H):
    """One-time reshaping of PyTorch-style parameters into kernel layouts."""
    return {
        "enc_gru": [_prep_gru_layer(*p, H) for p in enc_gru],
        "enc_lin_w": jnp.transpose(enc_lin_w),                  # (H, latent)
        "enc_lin_b": enc_lin_b.reshape(1, -1),
        "dec_gru": [_prep_gru_layer(*p, H) for p in dec_gru],
        "dec_lin_w": jnp.transpose(dec_lin_w),                  # (H, output_size)
        "dec_lin_b": dec_lin_b.reshape(1, -1),
    }


# ------------------------------- forward wrapper ------------------------------
def make_forward(num_layers, hidden_size, t_max, seq_len):
    # The decoder repeats z over seq_len steps, but packed-sequence processing
    # only ever runs max(lengths) = t_max <= seq_len steps.
    assert 1 <= t_max <= seq_len

    def forward(x_btd, lengths, prepped):
        B = x_btd.shape[0]
        out_size = prepped["dec_lin_w"].shape[1]

        # (B, T, D) -> (t_max, B, D) -> (t_max*B, D): time-major rows so the
        # hoisted layer-0 projection is one dense matmul (no in-kernel reshape).
        x_flat = jnp.transpose(x_btd[:, :t_max, :], (1, 0, 2)) \
                    .reshape(t_max * B, -1).astype(jnp.float32)
        len2 = lengths.reshape(B, 1).astype(jnp.int32)

        inputs = [x_flat, len2]
        for layer in prepped["enc_gru"]:
            inputs.extend(layer)
        inputs += [prepped["enc_lin_w"], prepped["enc_lin_b"]]
        for layer in prepped["dec_gru"]:
            inputs.extend(layer)
        inputs += [prepped["dec_lin_w"], prepped["dec_lin_b"]]

        kernel = functools.partial(
            _fused_autoencoder_kernel, num_layers, hidden_size, t_max, B)

        vmem = pltpu.MemorySpace.VMEM
        out_flat = pl.pallas_call(
            kernel,
            out_shape=jax.ShapeDtypeStruct((t_max * B, out_size), jnp.float32),
            in_specs=[pl.BlockSpec(memory_space=vmem) for _ in inputs],
            out_specs=pl.BlockSpec(memory_space=vmem),
        )(*inputs)

        # Layout plumbing back to batch-major (B, t_max, out) outside the kernel.
        return jnp.transpose(out_flat.reshape(t_max, B, out_size), (1, 0, 2))

    return jax.jit(forward)


# --------------------------- parameter initialization -------------------------
def init_gru_params(key, input_size, hidden_size, num_layers):
    params = []
    bound = 1.0 / math.sqrt(hidden_size)
    for layer in range(num_layers):
        in_l = input_size if layer == 0 else hidden_size
        key, k1, k2, k3, k4 = jax.random.split(key, 5)
        wih = jax.random.uniform(k1, (3 * hidden_size, in_l), jnp.float32, -bound, bound)
        whh = jax.random.uniform(k2, (3 * hidden_size, hidden_size), jnp.float32, -bound, bound)
        bih = jax.random.uniform(k3, (3 * hidden_size,), jnp.float32, -bound, bound)
        bhh = jax.random.uniform(k4, (3 * hidden_size,), jnp.float32, -bound, bound)
        params.append((wih, whh, bih, bhh))
    return key, params


def init_linear_params(key, in_features, out_features):
    bound = 1.0 / math.sqrt(in_features)
    key, k1, k2 = jax.random.split(key, 3)
    w = jax.random.uniform(k1, (out_features, in_features), jnp.float32, -bound, bound)
    b = jax.random.uniform(k2, (out_features,), jnp.float32, -bound, bound)
    return key, w, b


# ----------------------------------- main -------------------------------------
if __name__ == "__main__":
    # Module hyper-parameters
    input_size, hidden_size, latent_dim, num_layers, seq_len = 4, 32, 8, 2, 8
    B, T = 2, 8

    key = jax.random.PRNGKey(0)

    # Parameters (deterministic, PyTorch-style shapes), prepared once.
    key, enc_gru = init_gru_params(key, input_size, hidden_size, num_layers)
    key, enc_lin_w, enc_lin_b = init_linear_params(key, hidden_size, latent_dim)
    key, dec_gru = init_gru_params(key, latent_dim, hidden_size, num_layers)
    key, dec_lin_w, dec_lin_b = init_linear_params(key, hidden_size, input_size)
    prepped = prepare_params(enc_gru, enc_lin_w, enc_lin_b,
                             dec_gru, dec_lin_w, dec_lin_b, hidden_size)

    # Inputs (variable-length sequences, as with pack_padded_sequence)
    key, kx = jax.random.split(key)
    x = jax.random.normal(kx, (B, T, input_size), jnp.float32)
    lengths_list = [8, 5]
    lengths = jnp.array(lengths_list, dtype=jnp.int32)
    t_max = int(max(lengths_list))   # NOTE: static; distinct max lengths recompile.

    forward = make_forward(num_layers, hidden_size, t_max, seq_len)
    x_hat = forward(x, lengths, prepped)
    x_hat = jax.block_until_ready(x_hat)

    assert x_hat.shape == (B, t_max, input_size), x_hat.shape
    assert bool(jnp.all(jnp.isfinite(x_hat)))
    print("KERNEL_OK")
</pallas_src>

<mosaic_0001>
module attributes {stable_mosaic.version = 11 : i64} {
  func.func @_fused_autoencoder_kernel(%arg0: memref<16x4xf32, #tpu.memory_space<vmem>>, %arg1: memref<2x1xi32, #tpu.memory_space<vmem>>, %arg2: memref<4x96xf32, #tpu.memory_space<vmem>>, %arg3: memref<32x96xf32, #tpu.memory_space<vmem>>, %arg4: memref<1x96xf32, #tpu.memory_space<vmem>>, %arg5: memref<1x32xf32, #tpu.memory_space<vmem>>, %arg6: memref<32x96xf32, #tpu.memory_space<vmem>>, %arg7: memref<32x96xf32, #tpu.memory_space<vmem>>, %arg8: memref<1x96xf32, #tpu.memory_space<vmem>>, %arg9: memref<1x32xf32, #tpu.memory_space<vmem>>, %arg10: memref<32x8xf32, #tpu.memory_space<vmem>>, %arg11: memref<1x8xf32, #tpu.memory_space<vmem>>, %arg12: memref<8x96xf32, #tpu.memory_space<vmem>>, %arg13: memref<32x96xf32, #tpu.memory_space<vmem>>, %arg14: memref<1x96xf32, #tpu.memory_space<vmem>>, %arg15: memref<1x32xf32, #tpu.memory_space<vmem>>, %arg16: memref<32x96xf32, #tpu.memory_space<vmem>>, %arg17: memref<32x96xf32, #tpu.memory_space<vmem>>, %arg18: memref<1x96xf32, #tpu.memory_space<vmem>>, %arg19: memref<1x32xf32, #tpu.memory_space<vmem>>, %arg20: memref<32x4xf32, #tpu.memory_space<vmem>>, %arg21: memref<1x4xf32, #tpu.memory_space<vmem>>, %arg22: memref<16x4xf32, #tpu.memory_space<vmem>>) attributes {dimension_semantics = [], scalar_prefetch = 0 : i64, scratch_operands = 0 : i64, tpu.core_type = #tpu.core_type<tc>} {
    %c0 = arith.constant 0 : index
    %c0_0 = arith.constant 0 : index
    %0 = vector.load %arg1[%c0, %c0_0] : memref<2x1xi32, #tpu.memory_space<vmem>>, vector<2x1xi32>
    %c0_1 = arith.constant 0 : index
    %c0_2 = arith.constant 0 : index
    %1 = vector.load %arg2[%c0_1, %c0_2] : memref<4x96xf32, #tpu.memory_space<vmem>>, vector<4x96xf32>
    %c0_3 = arith.constant 0 : index
    %c0_4 = arith.constant 0 : index
    %2 = vector.load %arg3[%c0_3, %c0_4] : memref<32x96xf32, #tpu.memory_space<vmem>>, vector<32x96xf32>
    %c0_5 = arith.constant 0 : index
    %c0_6 = arith.constant 0 : index
    %3 = vector.load %arg4[%c0_5, %c0_6] : memref<1x96xf32, #tpu.memory_space<vmem>>, vector<1x96xf32>
    %c0_7 = arith.constant 0 : index
    %c0_8 = arith.constant 0 : index
    %4 = vector.load %arg5[%c0_7, %c0_8] : memref<1x32xf32, #tpu.memory_space<vmem>>, vector<1x32xf32>
    %c0_9 = arith.constant 0 : index
    %c0_10 = arith.constant 0 : index
    %5 = vector.load %arg6[%c0_9, %c0_10] : memref<32x96xf32, #tpu.memory_space<vmem>>, vector<32x96xf32>
    %c0_11 = arith.constant 0 : index
    %c0_12 = arith.constant 0 : index
    %6 = vector.load %arg7[%c0_11, %c0_12] : memref<32x96xf32, #tpu.memory_space<vmem>>, vector<32x96xf32>
    %c0_13 = arith.constant 0 : index
    %c0_14 = arith.constant 0 : index
    %7 = vector.load %arg8[%c0_13, %c0_14] : memref<1x96xf32, #tpu.memory_space<vmem>>, vector<1x96xf32>
    %c0_15 = arith.constant 0 : index
    %c0_16 = arith.constant 0 : index
    %8 = vector.load %arg9[%c0_15, %c0_16] : memref<1x32xf32, #tpu.memory_space<vmem>>, vector<1x32xf32>
    %c0_17 = arith.constant 0 : index
    %c0_18 = arith.constant 0 : index
    %9 = vector.load %arg12[%c0_17, %c0_18] : memref<8x96xf32, #tpu.memory_space<vmem>>, vector<8x96xf32>
    %c0_19 = arith.constant 0 : index
    %c0_20 = arith.constant 0 : index
    %10 = vector.load %arg13[%c0_19, %c0_20] : memref<32x96xf32, #tpu.memory_space<vmem>>, vector<32x96xf32>
    %c0_21 = arith.constant 0 : index
    %c0_22 = arith.constant 0 : index
    %11 = vector.load %arg14[%c0_21, %c0_22] : memref<1x96xf32, #tpu.memory_space<vmem>>, vector<1x96xf32>
    %c0_23 = arith.constant 0 : index
    %c0_24 = arith.constant 0 : index
    %12 = vector.load %arg15[%c0_23, %c0_24] : memref<1x32xf32, #tpu.memory_space<vmem>>, vector<1x32xf32>
    %c0_25 = arith.constant 0 : index
    %c0_26 = arith.constant 0 : index
    %13 = vector.load %arg16[%c0_25, %c0_26] : memref<32x96xf32, #tpu.memory_space<vmem>>, vector<32x96xf32>
    %c0_27 = arith.constant 0 : index
    %c0_28 = arith.constant 0 : index
    %14 = vector.load %arg17[%c0_27, %c0_28] : memref<32x96xf32, #tpu.memory_space<vmem>>, vector<32x96xf32>
    %c0_29 = arith.constant 0 : index
    %c0_30 = arith.constant 0 : index
    %15 = vector.load %arg18[%c0_29, %c0_30] : memref<1x96xf32, #tpu.memory_space<vmem>>, vector<1x96xf32>
    %c0_31 = arith.constant 0 : index
    %c0_32 = arith.constant 0 : index
    %16 = vector.load %arg19[%c0_31, %c0_32] : memref<1x32xf32, #tpu.memory_space<vmem>>, vector<1x32xf32>
    %c0_33 = arith.constant 0 : index
    %c0_34 = arith.constant 0 : index
    %17 = vector.load %arg10[%c0_33, %c0_34] : memref<32x8xf32, #tpu.memory_space<vmem>>, vector<32x8xf32>
    %c0_35 = arith.constant 0 : index
    %c0_36 = arith.constant 0 : index
    %18 = vector.load %arg11[%c0_35, %c0_36] : memref<1x8xf32, #tpu.memory_space<vmem>>, vector<1x8xf32>
    %c0_37 = arith.constant 0 : index
    %c0_38 = arith.constant 0 : index
    %19 = vector.load %arg20[%c0_37, %c0_38] : memref<32x4xf32, #tpu.memory_space<vmem>>, vector<32x4xf32>
    %c0_39 = arith.constant 0 : index
    %c0_40 = arith.constant 0 : index
    %20 = vector.load %arg21[%c0_39, %c0_40] : memref<1x4xf32, #tpu.memory_space<vmem>>, vector<1x4xf32>
    %c0_41 = arith.constant 0 : index
    %c0_42 = arith.constant 0 : index
    %21 = vector.load %arg0[%c0_41, %c0_42] : memref<16x4xf32, #tpu.memory_space<vmem>>, vector<16x4xf32>
    %cst = arith.constant dense<0.000000e+00> : vector<16x96xf32>
    %22 = tpu.matmul %21, %1, %cst {dimension_numbers = #tpu.dot_dimension_numbers<[1], [0], [0], [1], [0, 0, 1, 1], [], []>} : vector<16x4xf32>, vector<4x96xf32>, vector<16x96xf32> -> vector<16x96xf32>
    %23 = vector.broadcast %3 : vector<1x96xf32> to vector<16x96xf32>
    %24 = arith.addf %22, %23 : vector<16x96xf32>
    %cst_43 = arith.constant 0.000000e+00 : f32
    %25 = vector.broadcast %cst_43 : f32 to vector<2x32xf32>
    %cst_44 = arith.constant 0.000000e+00 : f32
    %26 = vector.broadcast %cst_44 : f32 to vector<2x32xf32>
    %c0_i32 = arith.constant 0 : i32
    %27 = vector.broadcast %c0_i32 : i32 to vector<2x1xi32>
    %28 = arith.cmpi sgt, %0, %27 : vector<2x1xi32>
    %29 = vector.extract_strided_slice %24 {offsets = [0, 0], sizes = [2, 96], strides = [1, 1]} : vector<16x96xf32> to vector<2x96xf32>
    %cst_45 = arith.constant dense<0.000000e+00> : vector<2x96xf32>
    %30 = tpu.matmul %25, %2, %cst_45 {dimension_numbers = #tpu.dot_dimension_numbers<[1], [0], [0], [1], [0, 0, 1, 1], [], []>} : vector<2x32xf32>, vector<32x96xf32>, vector<2x96xf32> -> vector<2x96xf32>
    %31 = vector.extract_strided_slice %29 {offsets = [0, 0], sizes = [2, 32], strides = [1, 1]} : vector<2x96xf32> to vector<2x32xf32>
    %32 = vector.extract_strided_slice %30 {offsets = [0, 0], sizes = [2, 32], strides = [1, 1]} : vector<2x96xf32> to vector<2x32xf32>
    %33 = arith.addf %31, %32 : vector<2x32xf32>
    %34 = arith.negf %33 : vector<2x32xf32>
    %35 = math.exp %34 : vector<2x32xf32>
    %cst_46 = arith.constant 1.000000e+00 : f32
    %36 = vector.broadcast %cst_46 : f32 to vector<2x32xf32>
    %37 = arith.addf %36, %35 : vector<2x32xf32>
    %38 = arith.divf %36, %37 : vector<2x32xf32>
    %39 = vector.extract_strided_slice %29 {offsets = [0, 32], sizes = [2, 32], strides = [1, 1]} : vector<2x96xf32> to vector<2x32xf32>
    %40 = vector.extract_strided_slice %30 {offsets = [0, 32], sizes = [2, 32], strides = [1, 1]} : vector<2x96xf32> to vector<2x32xf32>
    %41 = arith.addf %39, %40 : vector<2x32xf32>
    %42 = arith.negf %41 : vector<2x32xf32>
    %43 = math.exp %42 : vector<2x32xf32>
    %cst_47 = arith.constant 1.000000e+00 : f32
    %44 = vector.broadcast %cst_47 : f32 to vector<2x32xf32>
    %45 = arith.addf %44, %43 : vector<2x32xf32>
    %46 = arith.divf %44, %45 : vector<2x32xf32>
    %47 = vector.extract_strided_slice %29 {offsets = [0, 64], sizes = [2, 32], strides = [1, 1]} : vector<2x96xf32> to vector<2x32xf32>
    %48 = vector.extract_strided_slice %30 {offsets = [0, 64], sizes = [2, 32], strides = [1, 1]} : vector<2x96xf32> to vector<2x32xf32>
    %49 = vector.broadcast %4 : vector<1x32xf32> to vector<2x32xf32>
    %50 = arith.addf %48, %49 : vector<2x32xf32>
    %51 = arith.mulf %38, %50 : vector<2x32xf32>
    %52 = arith.addf %47, %51 : vector<2x32xf32>
    %53 = math.tanh %52 : vector<2x32xf32>
    %cst_48 = arith.constant 1.000000e+00 : f32
    %54 = vector.broadcast %cst_48 : f32 to vector<2x32xf32>
    %55 = arith.subf %54, %46 : vector<2x32xf32>
    %56 = arith.mulf %55, %53 : vector<2x32xf32>
    %57 = arith.mulf %46, %25 : vector<2x32xf32>
    %58 = arith.addf %56, %57 : vector<2x32xf32>
    %59 = vector.shape_cast %28 : vector<2x1xi1> to vector<2x1xi1>
    %60 = vector.broadcast %59 : vector<2x1xi1> to vector<2x32xi1>
    %61 = arith.select %60, %58, %25 : vector<2x32xi1>, vector<2x32xf32>
    %cst_49 = arith.constant dense<0.000000e+00> : vector<2x96xf32>
    %62 = tpu.matmul %61, %5, %cst_49 {dimension_numbers = #tpu.dot_dimension_numbers<[1], [0], [0], [1], [0, 0, 1, 1], [], []>} : vector<2x32xf32>, vector<32x96xf32>, vector<2x96xf32> -> vector<2x96xf32>
    %63 = vector.broadcast %7 : vector<1x96xf32> to vector<2x96xf32>
    %64 = arith.addf %62, %63 : vector<2x96xf32>
    %cst_50 = arith.constant dense<0.000000e+00> : vector<2x96xf32>
    %65 = tpu.matmul %26, %6, %cst_50 {dimension_numbers = #tpu.dot_dimension_numbers<[1], [0], [0], [1], [0, 0, 1, 1], [], []>} : vector<2x32xf32>, vector<32x96xf32>, vector<2x96xf32> -> vector<2x96xf32>
    %66 = vector.extract_strided_slice %64 {offsets = [0, 0], sizes = [2, 32], strides = [1, 1]} : vector<2x96xf32> to vector<2x32xf32>
    %67 = vector.extract_strided_slice %65 {offsets = [0, 0], sizes = [2, 32], strides = [1, 1]} : vector<2x96xf32> to vector<2x32xf32>
    %68 = arith.addf %66, %67 : vector<2x32xf32>
    %69 = arith.negf %68 : vector<2x32xf32>
    %70 = math.exp %69 : vector<2x32xf32>
    %cst_51 = arith.constant 1.000000e+00 : f32
    %71 = vector.broadcast %cst_51 : f32 to vector<2x32xf32>
    %72 = arith.addf %71, %70 : vector<2x32xf32>
    %73 = arith.divf %71, %72 : vector<2x32xf32>
    %74 = vector.extract_strided_slice %64 {offsets = [0, 32], sizes = [2, 32], strides = [1, 1]} : vector<2x96xf32> to vector<2x32xf32>
    %75 = vector.extract_strided_slice %65 {offsets = [0, 32], sizes = [2, 32], strides = [1, 1]} : vector<2x96xf32> to vector<2x32xf32>
    %76 = arith.addf %74, %75 : vector<2x32xf32>
    %77 = arith.negf %76 : vector<2x32xf32>
    %78 = math.exp %77 : vector<2x32xf32>
    %cst_52 = arith.constant 1.000000e+00 : f32
    %79 = vector.broadcast %cst_52 : f32 to vector<2x32xf32>
    %80 = arith.addf %79, %78 : vector<2x32xf32>
    %81 = arith.divf %79, %80 : vector<2x32xf32>
    %82 = vector.extract_strided_slice %64 {offsets = [0, 64], sizes = [2, 32], strides = [1, 1]} : vector<2x96xf32> to vector<2x32xf32>
    %83 = vector.extract_strided_slice %65 {offsets = [0, 64], sizes = [2, 32], strides = [1, 1]} : vector<2x96xf32> to vector<2x32xf32>
    %84 = vector.broadcast %8 : vector<1x32xf32> to vector<2x32xf32>
    %85 = arith.addf %83, %84 : vector<2x32xf32>
    %86 = arith.mulf %73, %85 : vector<2x32xf32>
    %87 = arith.addf %82, %86 : vector<2x32xf32>
    %88 = math.tanh %87 : vector<2x32xf32>
    %cst_53 = arith.constant 1.000000e+00 : f32
    %89 = vector.broadcast %cst_53 : f32 to vector<2x32xf32>
    %90 = arith.subf %89, %81 : vector<2x32xf32>
    %91 = arith.mulf %90, %88 : vector<2x32xf32>
    %92 = arith.mulf %81, %26 : vector<2x32xf32>
    %93 = arith.addf %91, %92 : vector<2x32xf32>
    %94 = vector.shape_cast %28 : vector<2x1xi1> to vector<2x1xi1>
    %95 = vector.broadcast %94 : vector<2x1xi1> to vector<2x32xi1>
    %96 = arith.select %95, %93, %26 : vector<2x32xi1>, vector<2x32xf32>
    %c1_i32 = arith.constant 1 : i32
    %97 = vector.broadcast %c1_i32 : i32 to vector<2x1xi32>
    %98 = arith.cmpi sgt, %0, %97 : vector<2x1xi32>
    %99 = vector.extract_strided_slice %24 {offsets = [2, 0], sizes = [2, 96], strides = [1, 1]} : vector<16x96xf32> to vector<2x96xf32>
    %cst_54 = arith.constant dense<0.000000e+00> : vector<2x96xf32>
    %100 = tpu.matmul %61, %2, %cst_54 {dimension_numbers = #tpu.dot_dimension_numbers<[1], [0], [0], [1], [0, 0, 1, 1], [], []>} : vector<2x32xf32>, vector<32x96xf32>, vector<2x96xf32> -> vector<2x96xf32>
    %101 = vector.extract_strided_slice %99 {offsets = [0, 0], sizes = [2, 32], strides = [1, 1]} : vector<2x96xf32> to vector<2x32xf32>
    %102 = vector.extract_strided_slice %100 {offsets = [0, 0], sizes = [2, 32], strides = [1, 1]} : vector<2x96xf32> to vector<2x32xf32>
    %103 = arith.addf %101, %102 : vector<2x32xf32>
    %104 = arith.negf %103 : vector<2x32xf32>
    %105 = math.exp %104 : vector<2x32xf32>
    %cst_55 = arith.constant 1.000000e+00 : f32
    %106 = vector.broadcast %cst_55 : f32 to vector<2x32xf32>
    %107 = arith.addf %106, %105 : vector<2x32xf32>
    %108 = arith.divf %106, %107 : vector<2x32xf32>
    %109 = vector.extract_strided_slice %99 {offsets = [0, 32], sizes = [2, 32], strides = [1, 1]} : vector<2x96xf32> to vector<2x32xf32>
    %110 = vector.extract_strided_slice %100 {offsets = [0, 32], sizes = [2, 32], strides = [1, 1]} : vector<2x96xf32> to vector<2x32xf32>
    %111 = arith.addf %109, %110 : vector<2x32xf32>
    %112 = arith.negf %111 : vector<2x32xf32>
    %113 = math.exp %112 : vector<2x32xf32>
    %cst_56 = arith.constant 1.000000e+00 : f32
    %114 = vector.broadcast %cst_56 : f32 to vector<2x32xf32>
    %115 = arith.addf %114, %113 : vector<2x32xf32>
    %116 = arith.divf %114, %115 : vector<2x32xf32>
    %117 = vector.extract_strided_slice %99 {offsets = [0, 64], sizes = [2, 32], strides = [1, 1]} : vector<2x96xf32> to vector<2x32xf32>
    %118 = vector.extract_strided_slice %100 {offsets = [0, 64], sizes = [2, 32], strides = [1, 1]} : vector<2x96xf32> to vector<2x32xf32>
    %119 = vector.broadcast %4 : vector<1x32xf32> to vector<2x32xf32>
    %120 = arith.addf %118, %119 : vector<2x32xf32>
    %121 = arith.mulf %108, %120 : vector<2x32xf32>
    %122 = arith.addf %117, %121 : vector<2x32xf32>
    %123 = math.tanh %122 : vector<2x32xf32>
    %cst_57 = arith.constant 1.000000e+00 : f32
    %124 = vector.broadcast %cst_57 : f32 to vector<2x32xf32>
    %125 = arith.subf %124, %116 : vector<2x32xf32>
    %126 = arith.mulf %125, %123 : vector<2x32xf32>
    %127 = arith.mulf %116, %61 : vector<2x32xf32>
    %128 = arith.addf %126, %127 : vector<2x32xf32>
    %129 = vector.shape_cast %98 : vector<2x1xi1> to vector<2x1xi1>
    %130 = vector.broadcast %129 : vector<2x1xi1> to vector<2x32xi1>
    %131 = arith.select %130, %128, %61 : vector<2x32xi1>, vector<2x32xf32>
    %cst_58 = arith.constant dense<0.000000e+00> : vector<2x96xf32>
    %132 = tpu.matmul %131, %5, %cst_58 {dimension_numbers = #tpu.dot_dimension_numbers<[1], [0], [0], [1], [0, 0, 1, 1], [], []>} : vector<2x32xf32>, vector<32x96xf32>, vector<2x96xf32> -> vector<2x96xf32>
    %133 = vector.broadcast %7 : vector<1x96xf32> to vector<2x96xf32>
    %134 = arith.addf %132, %133 : vector<2x96xf32>
    %cst_59 = arith.constant dense<0.000000e+00> : vector<2x96xf32>
    %135 = tpu.matmul %96, %6, %cst_59 {dimension_numbers = #tpu.dot_dimension_numbers<[1], [0], [0], [1], [0, 0, 1, 1], [], []>} : vector<2x32xf32>, vector<32x96xf32>, vector<2x96xf32> -> vector<2x96xf32>
    %136 = vector.extract_strided_slice %134 {offsets = [0, 0], sizes = [2, 32], strides = [1, 1]} : vector<2x96xf32> to vector<2x32xf32>
    %137 = vector.extract_strided_slice %135 {offsets = [0, 0], sizes = [2, 32], strides = [1, 1]} : vector<2x96xf32> to vector<2x32xf32>
    %138 = arith.addf %136, %137 : vector<2x32xf32>
    %139 = arith.negf %138 : vector<2x32xf32>
    %140 = math.exp %139 : vector<2x32xf32>
    %cst_60 = arith.constant 1.000000e+00 : f32
    %141 = vector.broadcast %cst_60 : f32 to vector<2x32xf32>
    %142 = arith.addf %141, %140 : vector<2x32xf32>
    %143 = arith.divf %141, %142 : vector<2x32xf32>
    %144 = vector.extract_strided_slice %134 {offsets = [0, 32], sizes = [2, 32], strides = [1, 1]} : vector<2x96xf32> to vector<2x32xf32>
    %145 = vector.extract_strided_slice %135 {offsets = [0, 32], sizes = [2, 32], strides = [1, 1]} : vector<2x96xf32> to vector<2x32xf32>
    %146 = arith.addf %144, %145 : vector<2x32xf32>
    %147 = arith.negf %146 : vector<2x32xf32>
    %148 = math.exp %147 : vector<2x32xf32>
    %cst_61 = arith.constant 1.000000e+00 : f32
    %149 = vector.broadcast %cst_61 : f32 to vector<2x32xf32>
    %150 = arith.addf %149, %148 : vector<2x32xf32>
    %151 = arith.divf %149, %150 : vector<2x32xf32>
    %152 = vector.extract_strided_slice %134 {offsets = [0, 64], sizes = [2, 32], strides = [1, 1]} : vector<2x96xf32> to vector<2x32xf32>
    %153 = vector.extract_strided_slice %135 {offsets = [0, 64], sizes = [2, 32], strides = [1, 1]} : vector<2x96xf32> to vector<2x32xf32>
    %154 = vector.broadcast %8 : vector<1x32xf32> to vector<2x32xf32>
    %155 = arith.addf %153, %154 : vector<2x32xf32>
    %156 = arith.mulf %143, %155 : vector<2x32xf32>
    %157 = arith.addf %152, %156 : vector<2x32xf32>
    %158 = math.tanh %157 : vector<2x32xf32>
    %cst_62 = arith.constant 1.000000e+00 : f32
    %159 = vector.broadcast %cst_62 : f32 to vector<2x32xf32>
    %160 = arith.subf %159, %151 : vector<2x32xf32>
    %161 = arith.mulf %160, %158 : vector<2x32xf32>
    %162 = arith.mulf %151, %96 : vector<2x32xf32>
    %163 = arith.addf %161, %162 : vector<2x32xf32>
    %164 = vector.shape_cast %98 : vector<2x1xi1> to vector<2x1xi1>
    %165 = vector.broadcast %164 : vector<2x1xi1> to vector<2x32xi1>
    %166 = arith.select %165, %163, %96 : vector<2x32xi1>, vector<2x32xf32>
    %c2_i32 = arith.constant 2 : i32
    %167 = vector.broadcast %c2_i32 : i32 to vector<2x1xi32>
    %168 = arith.cmpi sgt, %0, %167 : vector<2x1xi32>
    %169 = vector.extract_strided_slice %24 {offsets = [4, 0], sizes = [2, 96], strides = [1, 1]} : vector<16x96xf32> to vector<2x96xf32>
    %cst_63 = arith.constant dense<0.000000e+00> : vector<2x96xf32>
    %170 = tpu.matmul %131, %2, %cst_63 {dimension_numbers = #tpu.dot_dimension_numbers<[1], [0], [0], [1], [0, 0, 1, 1], [], []>} : vector<2x32xf32>, vector<32x96xf32>, vector<2x96xf32> -> vector<2x96xf32>
    %171 = vector.extract_strided_slice %169 {offsets = [0, 0], sizes = [2, 32], strides = [1, 1]} : vector<2x96xf32> to vector<2x32xf32>
    %172 = vector.extract_strided_slice %170 {offsets = [0, 0], sizes = [2, 32], strides = [1, 1]} : vector<2x96xf32> to vector<2x32xf32>
    %173 = arith.addf %171, %172 : vector<2x32xf32>
    %174 = arith.negf %173 : vector<2x32xf32>
    %175 = math.exp %174 : vector<2x32xf32>
    %cst_64 = arith.constant 1.000000e+00 : f32
    %176 = vector.broadcast %cst_64 : f32 to vector<2x32xf32>
    %177 = arith.addf %176, %175 : vector<2x32xf32>
    %178 = arith.divf %176, %177 : vector<2x32xf32>
    %179 = vector.extract_strided_slice %169 {offsets = [0, 32], sizes = [2, 32], strides = [1, 1]} : vector<2x96xf32> to vector<2x32xf32>
    %180 = vector.extract_strided_slice %170 {offsets = [0, 32], sizes = [2, 32], strides = [1, 1]} : vector<2x96xf32> to vector<2x32xf32>
    %181 = arith.addf %179, %180 : vector<2x32xf32>
    %182 = arith.negf %181 : vector<2x32xf32>
    %183 = math.exp %182 : vector<2x32xf32>
    %cst_65 = arith.constant 1.000000e+00 : f32
    %184 = vector.broadcast %cst_65 : f32 to vector<2x32xf32>
    %185 = arith.addf %184, %183 : vector<2x32xf32>
    %186 = arith.divf %184, %185 : vector<2x32xf32>
    %187 = vector.extract_strided_slice %169 {offsets = [0, 64], sizes = [2, 32], strides = [1, 1]} : vector<2x96xf32> to vector<2x32xf32>
    %188 = vector.extract_strided_slice %170 {offsets = [0, 64], sizes = [2, 32], strides = [1, 1]} : vector<2x96xf32> to vector<2x32xf32>
    %189 = vector.broadcast %4 : vector<1x32xf32> to vector<2x32xf32>
    %190 = arith.addf %188, %189 : vector<2x32xf32>
    %191 = arith.mulf %178, %190 : vector<2x32xf32>
    %192 = arith.addf %187, %191 : vector<2x32xf32>
    %193 = math.tanh %192 : vector<2x32xf32>
    %cst_66 = arith.constant 1.000000e+00 : f32
    %194 = vector.broadcast %cst_66 : f32 to vector<2x32xf32>
    %195 = arith.subf %194, %186 : vector<2x32xf32>
    %196 = arith.mulf %195, %193 : vector<2x32xf32>
    %197 = arith.mulf %186, %131 : vector<2x32xf32>
    %198 = arith.addf %196, %197 : vector<2x32xf32>
    %199 = vector.shape_cast %168 : vector<2x1xi1> to vector<2x1xi1>
    %200 = vector.broadcast %199 : vector<2x1xi1> to vector<2x32xi1>
    %201 = arith.select %200, %198, %131 : vector<2x32xi1>, vector<2x32xf32>
    %cst_67 = arith.constant dense<0.000000e+00> : vector<2x96xf32>
    %202 = tpu.matmul %201, %5, %cst_67 {dimension_numbers = #tpu.dot_dimension_numbers<[1], [0], [0], [1], [0, 0, 1, 1], [], []>} : vector<2x32xf32>, vector<32x96xf32>, vector<2x96xf32> -> vector<2x96xf32>
    %203 = vector.broadcast %7 : vector<1x96xf32> to vector<2x96xf32>
    %204 = arith.addf %202, %203 : vector<2x96xf32>
    %cst_68 = arith.constant dense<0.000000e+00> : vector<2x96xf32>
    %205 = tpu.matmul %166, %6, %cst_68 {dimension_numbers = #tpu.dot_dimension_numbers<[1], [0], [0], [1], [0, 0, 1, 1], [], []>} : vector<2x32xf32>, vector<32x96xf32>, vector<2x96xf32> -> vector<2x96xf32>
    %206 = vector.extract_strided_slice %204 {offsets = [0, 0], sizes = [2, 32], strides = [1, 1]} : vector<2x96xf32> to vector<2x32xf32>
    %207 = vector.extract_strided_slice %205 {offsets = [0, 0], sizes = [2, 32], strides = [1, 1]} : vector<2x96xf32> to vector<2x32xf32>
    %208 = arith.addf %206, %207 : vector<2x32xf32>
    %209 = arith.negf %208 : vector<2x32xf32>
    %210 = math.exp %209 : vector<2x32xf32>
    %cst_69 = arith.constant 1.000000e+00 : f32
    %211 = vector.broadcast %cst_69 : f32 to vector<2x32xf32>
    %212 = arith.addf %211, %210 : vector<2x32xf32>
    %213 = arith.divf %211, %212 : vector<2x32xf32>
    %214 = vector.extract_strided_slice %204 {offsets = [0, 32], sizes = [2, 32], strides = [1, 1]} : vector<2x96xf32> to vector<2x32xf32>
    %215 = vector.extract_strided_slice %205 {offsets = [0, 32], sizes = [2, 32], strides = [1, 1]} : vector<2x96xf32> to vector<2x32xf32>
    %216 = arith.addf %214, %215 : vector<2x32xf32>
    %217 = arith.negf %216 : vector<2x32xf32>
    %218 = math.exp %217 : vector<2x32xf32>
    %cst_70 = arith.constant 1.000000e+00 : f32
    %219 = vector.broadcast %cst_70 : f32 to vector<2x32xf32>
    %220 = arith.addf %219, %218 : vector<2x32xf32>
    %221 = arith.divf %219, %220 : vector<2x32xf32>
    %222 = vector.extract_strided_slice %204 {offsets = [0, 64], sizes = [2, 32], strides = [1, 1]} : vector<2x96xf32> to vector<2x32xf32>
    %223 = vector.extract_strided_slice %205 {offsets = [0, 64], sizes = [2, 32], strides = [1, 1]} : vector<2x96xf32> to vector<2x32xf32>
    %224 = vector.broadcast %8 : vector<1x32xf32> to vector<2x32xf32>
    %225 = arith.addf %223, %224 : vector<2x32xf32>
    %226 = arith.mulf %213, %225 : vector<2x32xf32>
    %227 = arith.addf %222, %226 : vector<2x32xf32>
    %228 = math.tanh %227 : vector<2x32xf32>
    %cst_71 = arith.constant 1.000000e+00 : f32
    %229 = vector.broadcast %cst_71 : f32 to vector<2x32xf32>
    %230 = arith.subf %229, %221 : vector<2x32xf32>
    %231 = arith.mulf %230, %228 : vector<2x32xf32>
    %232 = arith.mulf %221, %166 : vector<2x32xf32>
    %233 = arith.addf %231, %232 : vector<2x32xf32>
    %234 = vector.shape_cast %168 : vector<2x1xi1> to vector<2x1xi1>
    %235 = vector.broadcast %234 : vector<2x1xi1> to vector<2x32xi1>
    %236 = arith.select %235, %233, %166 : vector<2x32xi1>, vector<2x32xf32>
    %c3_i32 = arith.constant 3 : i32
    %237 = vector.broadcast %c3_i32 : i32 to vector<2x1xi32>
    %238 = arith.cmpi sgt, %0, %237 : vector<2x1xi32>
    %239 = vector.extract_strided_slice %24 {offsets = [6, 0], sizes = [2, 96], strides = [1, 1]} : vector<16x96xf32> to vector<2x96xf32>
    %cst_72 = arith.constant dense<0.000000e+00> : vector<2x96xf32>
    %240 = tpu.matmul %201, %2, %cst_72 {dimension_numbers = #tpu.dot_dimension_numbers<[1], [0], [0], [1], [0, 0, 1, 1], [], []>} : vector<2x32xf32>, vector<32x96xf32>, vector<2x96xf32> -> vector<2x96xf32>
    %241 = vector.extract_strided_slice %239 {offsets = [0, 0], sizes = [2, 32], strides = [1, 1]} : vector<2x96xf32> to vector<2x32xf32>
    %242 = vector.extract_strided_slice %240 {offsets = [0, 0], sizes = [2, 32], strides = [1, 1]} : vector<2x96xf32> to vector<2x32xf32>
    %243 = arith.addf %241, %242 : vector<2x32xf32>
    %244 = arith.negf %243 : vector<2x32xf32>
    %245 = math.exp %244 : vector<2x32xf32>
    %cst_73 = arith.constant 1.000000e+00 : f32
    %246 = vector.broadcast %cst_73 : f32 to vector<2x32xf32>
    %247 = arith.addf %246, %245 : vector<2x32xf32>
    %248 = arith.divf %246, %247 : vector<2x32xf32>
    %249 = vector.extract_strided_slice %239 {offsets = [0, 32], sizes = [2, 32], strides = [1, 1]} : vector<2x96xf32> to vector<2x32xf32>
    %250 = vector.extract_strided_slice %240 {offsets = [0, 32], sizes = [2, 32], strides = [1, 1]} : vector<2x96xf32> to vector<2x32xf32>
    %251 = arith.addf %249, %250 : vector<2x32xf32>
    %252 = arith.negf %251 : vector<2x32xf32>
    %253 = math.exp %252 : vector<2x32xf32>
    %cst_74 = arith.constant 1.000000e+00 : f32
    %254 = vector.broadcast %cst_74 : f32 to vector<2x32xf32>
    %255 = arith.addf %254, %253 : vector<2x32xf32>
    %256 = arith.divf %254, %255 : vector<2x32xf32>
    %257 = vector.extract_strided_slice %239 {offsets = [0, 64], sizes = [2, 32], strides = [1, 1]} : vector<2x96xf32> to vector<2x32xf32>
    %258 = vector.extract_strided_slice %240 {offsets = [0, 64], sizes = [2, 32], strides = [1, 1]} : vector<2x96xf32> to vector<2x32xf32>
    %259 = vector.broadcast %4 : vector<1x32xf32> to vector<2x32xf32>
    %260 = arith.addf %258, %259 : vector<2x32xf32>
    %261 = arith.mulf %248, %260 : vector<2x32xf32>
    %262 = arith.addf %257, %261 : vector<2x32xf32>
    %263 = math.tanh %262 : vector<2x32xf32>
    %cst_75 = arith.constant 1.000000e+00 : f32
    %264 = vector.broadcast %cst_75 : f32 to vector<2x32xf32>
    %265 = arith.subf %264, %256 : vector<2x32xf32>
    %266 = arith.mulf %265, %263 : vector<2x32xf32>
    %267 = arith.mulf %256, %201 : vector<2x32xf32>
    %268 = arith.addf %266, %267 : vector<2x32xf32>
    %269 = vector.shape_cast %238 : vector<2x1xi1> to vector<2x1xi1>
    %270 = vector.broadcast %269 : vector<2x1xi1> to vector<2x32xi1>
    %271 = arith.select %270, %268, %201 : vector<2x32xi1>, vector<2x32xf32>
    %cst_76 = arith.constant dense<0.000000e+00> : vector<2x96xf32>
    %272 = tpu.matmul %271, %5, %cst_76 {dimension_numbers = #tpu.dot_dimension_numbers<[1], [0], [0], [1], [0, 0, 1, 1], [], []>} : vector<2x32xf32>, vector<32x96xf32>, vector<2x96xf32> -> vector<2x96xf32>
    %273 = vector.broadcast %7 : vector<1x96xf32> to vector<2x96xf32>
    %274 = arith.addf %272, %273 : vector<2x96xf32>
    %cst_77 = arith.constant dense<0.000000e+00> : vector<2x96xf32>
    %275 = tpu.matmul %236, %6, %cst_77 {dimension_numbers = #tpu.dot_dimension_numbers<[1], [0], [0], [1], [0, 0, 1, 1], [], []>} : vector<2x32xf32>, vector<32x96xf32>, vector<2x96xf32> -> vector<2x96xf32>
    %276 = vector.extract_strided_slice %274 {offsets = [0, 0], sizes = [2, 32], strides = [1, 1]} : vector<2x96xf32> to vector<2x32xf32>
    %277 = vector.extract_strided_slice %275 {offsets = [0, 0], sizes = [2, 32], strides = [1, 1]} : vector<2x96xf32> to vector<2x32xf32>
    %278 = arith.addf %276, %277 : vector<2x32xf32>
    %279 = arith.negf %278 : vector<2x32xf32>
    %280 = math.exp %279 : vector<2x32xf32>
    %cst_78 = arith.constant 1.000000e+00 : f32
    %281 = vector.broadcast %cst_78 : f32 to vector<2x32xf32>
    %282 = arith.addf %281, %280 : vector<2x32xf32>
    %283 = arith.divf %281, %282 : vector<2x32xf32>
    %284 = vector.extract_strided_slice %274 {offsets = [0, 32], sizes = [2, 32], strides = [1, 1]} : vector<2x96xf32> to vector<2x32xf32>
    %285 = vector.extract_strided_slice %275 {offsets = [0, 32], sizes = [2, 32], strides = [1, 1]} : vector<2x96xf32> to vector<2x32xf32>
    %286 = arith.addf %284, %285 : vector<2x32xf32>
    %287 = arith.negf %286 : vector<2x32xf32>
    %288 = math.exp %287 : vector<2x32xf32>
    %cst_79 = arith.constant 1.000000e+00 : f32
    %289 = vector.broadcast %cst_79 : f32 to vector<2x32xf32>
    %290 = arith.addf %289, %288 : vector<2x32xf32>
    %291 = arith.divf %289, %290 : vector<2x32xf32>
    %292 = vector.extract_strided_slice %274 {offsets = [0, 64], sizes = [2, 32], strides = [1, 1]} : vector<2x96xf32> to vector<2x32xf32>
    %293 = vector.extract_strided_slice %275 {offsets = [0, 64], sizes = [2, 32], strides = [1, 1]} : vector<2x96xf32> to vector<2x32xf32>
    %294 = vector.broadcast %8 : vector<1x32xf32> to vector<2x32xf32>
    %295 = arith.addf %293, %294 : vector<2x32xf32>
    %296 = arith.mulf %283, %295 : vector<2x32xf32>
    %297 = arith.addf %292, %296 : vector<2x32xf32>
    %298 = math.tanh %297 : vector<2x32xf32>
    %cst_80 = arith.constant 1.000000e+00 : f32
    %299 = vector.broadcast %cst_80 : f32 to vector<2x32xf32>
    %300 = arith.subf %299, %291 : vector<2x32xf32>
    %301 = arith.mulf %300, %298 : vector<2x32xf32>
    %302 = arith.mulf %291, %236 : vector<2x32xf32>
    %303 = arith.addf %301, %302 : vector<2x32xf32>
    %304 = vector.shape_cast %238 : vector<2x1xi1> to vector<2x1xi1>
    %305 = vector.broadcast %304 : vector<2x1xi1> to vector<2x32xi1>
    %306 = arith.select %305, %303, %236 : vector<2x32xi1>, vector<2x32xf32>
    %c4_i32 = arith.constant 4 : i32
    %307 = vector.broadcast %c4_i32 : i32 to vector<2x1xi32>
    %308 = arith.cmpi sgt, %0, %307 : vector<2x1xi32>
    %309 = vector.extract_strided_slice %24 {offsets = [8, 0], sizes = [2, 96], strides = [1, 1]} : vector<16x96xf32> to vector<2x96xf32>
    %cst_81 = arith.constant dense<0.000000e+00> : vector<2x96xf32>
    %310 = tpu.matmul %271, %2, %cst_81 {dimension_numbers = #tpu.dot_dimension_numbers<[1], [0], [0], [1], [0, 0, 1, 1], [], []>} : vector<2x32xf32>, vector<32x96xf32>, vector<2x96xf32> -> vector<2x96xf32>
    %311 = vector.extract_strided_slice %309 {offsets = [0, 0], sizes = [2, 32], strides = [1, 1]} : vector<2x96xf32> to vector<2x32xf32>
    %312 = vector.extract_strided_slice %310 {offsets = [0, 0], sizes = [2, 32], strides = [1, 1]} : vector<2x96xf32> to vector<2x32xf32>
    %313 = arith.addf %311, %312 : vector<2x32xf32>
    %314 = arith.negf %313 : vector<2x32xf32>
    %315 = math.exp %314 : vector<2x32xf32>
    %cst_82 = arith.constant 1.000000e+00 : f32
    %316 = vector.broadcast %cst_82 : f32 to vector<2x32xf32>
    %317 = arith.addf %316, %315 : vector<2x32xf32>
    %318 = arith.divf %316, %317 : vector<2x32xf32>
    %319 = vector.extract_strided_slice %309 {offsets = [0, 32], sizes = [2, 32], strides = [1, 1]} : vector<2x96xf32> to vector<2x32xf32>
    %320 = vector.extract_strided_slice %310 {offsets = [0, 32], sizes = [2, 32], strides = [1, 1]} : vector<2x96xf32> to vector<2x32xf32>
    %321 = arith.addf %319, %320 : vector<2x32xf32>
    %322 = arith.negf %321 : vector<2x32xf32>
    %323 = math.exp %322 : vector<2x32xf32>
    %cst_83 = arith.constant 1.000000e+00 : f32
    %324 = vector.broadcast %cst_83 : f32 to vector<2x32xf32>
    %325 = arith.addf %324, %323 : vector<2x32xf32>
    %326 = arith.divf %324, %325 : vector<2x32xf32>
    %327 = vector.extract_strided_slice %309 {offsets = [0, 64], sizes = [2, 32], strides = [1, 1]} : vector<2x96xf32> to vector<2x32xf32>
    %328 = vector.extract_strided_slice %310 {offsets = [0, 64], sizes = [2, 32], strides = [1, 1]} : vector<2x96xf32> to vector<2x32xf32>
    %329 = vector.broadcast %4 : vector<1x32xf32> to vector<2x32xf32>
    %330 = arith.addf %328, %329 : vector<2x32xf32>
    %331 = arith.mulf %318, %330 : vector<2x32xf32>
    %332 = arith.addf %327, %331 : vector<2x32xf32>
    %333 = math.tanh %332 : vector<2x32xf32>
    %cst_84 = arith.constant 1.000000e+00 : f32
    %334 = vector.broadcast %cst_84 : f32 to vector<2x32xf32>
    %335 = arith.subf %334, %326 : vector<2x32xf32>
    %336 = arith.mulf %335, %333 : vector<2x32xf32>
    %337 = arith.mulf %326, %271 : vector<2x32xf32>
    %338 = arith.addf %336, %337 : vector<2x32xf32>
    %339 = vector.shape_cast %308 : vector<2x1xi1> to vector<2x1xi1>
    %340 = vector.broadcast %339 : vector<2x1xi1> to vector<2x32xi1>
    %341 = arith.select %340, %338, %271 : vector<2x32xi1>, vector<2x32xf32>
    %cst_85 = arith.constant dense<0.000000e+00> : vector<2x96xf32>
    %342 = tpu.matmul %341, %5, %cst_85 {dimension_numbers = #tpu.dot_dimension_numbers<[1], [0], [0], [1], [0, 0, 1, 1], [], []>} : vector<2x32xf32>, vector<32x96xf32>, vector<2x96xf32> -> vector<2x96xf32>
    %343 = vector.broadcast %7 : vector<1x96xf32> to vector<2x96xf32>
    %344 = arith.addf %342, %343 : vector<2x96xf32>
    %cst_86 = arith.constant dense<0.000000e+00> : vector<2x96xf32>
    %345 = tpu.matmul %306, %6, %cst_86 {dimension_numbers = #tpu.dot_dimension_numbers<[1], [0], [0], [1], [0, 0, 1, 1], [], []>} : vector<2x32xf32>, vector<32x96xf32>, vector<2x96xf32> -> vector<2x96xf32>
    %346 = vector.extract_strided_slice %344 {offsets = [0, 0], sizes = [2, 32], strides = [1, 1]} : vector<2x96xf32> to vector<2x32xf32>
    %347 = vector.extract_strided_slice %345 {offsets = [0, 0], sizes = [2, 32], strides = [1, 1]} : vector<2x96xf32> to vector<2x32xf32>
    %348 = arith.addf %346, %347 : vector<2x32xf32>
    %349 = arith.negf %348 : vector<2x32xf32>
    %350 = math.exp %349 : vector<2x32xf32>
    %cst_87 = arith.constant 1.000000e+00 : f32
    %351 = vector.broadcast %cst_87 : f32 to vector<2x32xf32>
    %352 = arith.addf %351, %350 : vector<2x32xf32>
    %353 = arith.divf %351, %352 : vector<2x32xf32>
    %354 = vector.extract_strided_slice %344 {offsets = [0, 32], sizes = [2, 32], strides = [1, 1]} : vector<2x96xf32> to vector<2x32xf32>
    %355 = vector.extract_strided_slice %345 {offsets = [0, 32], sizes = [2, 32], strides = [1, 1]} : vector<2x96xf32> to vector<2x32xf32>
    %356 = arith.addf %354, %355 : vector<2x32xf32>
    %357 = arith.negf %356 : vector<2x32xf32>
    %358 = math.exp %357 : vector<2x32xf32>
    %cst_88 = arith.constant 1.000000e+00 : f32
    %359 = vector.broadcast %cst_88 : f32 to vector<2x32xf32>
    %360 = arith.addf %359, %358 : vector<2x32xf32>
    %361 = arith.divf %359, %360 : vector<2x32xf32>
    %362 = vector.extract_strided_slice %344 {offsets = [0, 64], sizes = [2, 32], strides = [1, 1]} : vector<2x96xf32> to vector<2x32xf32>
    %363 = vector.extract_strided_slice %345 {offsets = [0, 64], sizes = [2, 32], strides = [1, 1]} : vector<2x96xf32> to vector<2x32xf32>
    %364 = vector.broadcast %8 : vector<1x32xf32> to vector<2x32xf32>
    %365 = arith.addf %363, %364 : vector<2x32xf32>
    %366 = arith.mulf %353, %365 : vector<2x32xf32>
    %367 = arith.addf %362, %366 : vector<2x32xf32>
    %368 = math.tanh %367 : vector<2x32xf32>
    %cst_89 = arith.constant 1.000000e+00 : f32
    %369 = vector.broadcast %cst_89 : f32 to vector<2x32xf32>
    %370 = arith.subf %369, %361 : vector<2x32xf32>
    %371 = arith.mulf %370, %368 : vector<2x32xf32>
    %372 = arith.mulf %361, %306 : vector<2x32xf32>
    %373 = arith.addf %371, %372 : vector<2x32xf32>
    %374 = vector.shape_cast %308 : vector<2x1xi1> to vector<2x1xi1>
    %375 = vector.broadcast %374 : vector<2x1xi1> to vector<2x32xi1>
    %376 = arith.select %375, %373, %306 : vector<2x32xi1>, vector<2x32xf32>
    %c5_i32 = arith.constant 5 : i32
    %377 = vector.broadcast %c5_i32 : i32 to vector<2x1xi32>
    %378 = arith.cmpi sgt, %0, %377 : vector<2x1xi32>
    %379 = vector.extract_strided_slice %24 {offsets = [10, 0], sizes = [2, 96], strides = [1, 1]} : vector<16x96xf32> to vector<2x96xf32>
    %cst_90 = arith.constant dense<0.000000e+00> : vector<2x96xf32>
    %380 = tpu.matmul %341, %2, %cst_90 {dimension_numbers = #tpu.dot_dimension_numbers<[1], [0], [0], [1], [0, 0, 1, 1], [], []>} : vector<2x32xf32>, vector<32x96xf32>, vector<2x96xf32> -> vector<2x96xf32>
    %381 = vector.extract_strided_slice %379 {offsets = [0, 0], sizes = [2, 32], strides = [1, 1]} : vector<2x96xf32> to vector<2x32xf32>
    %382 = vector.extract_strided_slice %380 {offsets = [0, 0], sizes = [2, 32], strides = [1, 1]} : vector<2x96xf32> to vector<2x32xf32>
    %383 = arith.addf %381, %382 : vector<2x32xf32>
    %384 = arith.negf %383 : vector<2x32xf32>
    %385 = math.exp %384 : vector<2x32xf32>
    %cst_91 = arith.constant 1.000000e+00 : f32
    %386 = vector.broadcast %cst_91 : f32 to vector<2x32xf32>
    %387 = arith.addf %386, %385 : vector<2x32xf32>
    %388 = arith.divf %386, %387 : vector<2x32xf32>
    %389 = vector.extract_strided_slice %379 {offsets = [0, 32], sizes = [2, 32], strides = [1, 1]} : vector<2x96xf32> to vector<2x32xf32>
    %390 = vector.extract_strided_slice %380 {offsets = [0, 32], sizes = [2, 32], strides = [1, 1]} : vector<2x96xf32> to vector<2x32xf32>
    %391 = arith.addf %389, %390 : vector<2x32xf32>
    %392 = arith.negf %391 : vector<2x32xf32>
    %393 = math.exp %392 : vector<2x32xf32>
    %cst_92 = arith.constant 1.000000e+00 : f32
    %394 = vector.broadcast %cst_92 : f32 to vector<2x32xf32>
    %395 = arith.addf %394, %393 : vector<2x32xf32>
    %396 = arith.divf %394, %395 : vector<2x32xf32>
    %397 = vector.extract_strided_slice %379 {offsets = [0, 64], sizes = [2, 32], strides = [1, 1]} : vector<2x96xf32> to vector<2x32xf32>
    %398 = vector.extract_strided_slice %380 {offsets = [0, 64], sizes = [2, 32], strides = [1, 1]} : vector<2x96xf32> to vector<2x32xf32>
    %399 = vector.broadcast %4 : vector<1x32xf32> to vector<2x32xf32>
    %400 = arith.addf %398, %399 : vector<2x32xf32>
    %401 = arith.mulf %388, %400 : vector<2x32xf32>
    %402 = arith.addf %397, %401 : vector<2x32xf32>
    %403 = math.tanh %402 : vector<2x32xf32>
    %cst_93 = arith.constant 1.000000e+00 : f32
    %404 = vector.broadcast %cst_93 : f32 to vector<2x32xf32>
    %405 = arith.subf %404, %396 : vector<2x32xf32>
    %406 = arith.mulf %405, %403 : vector<2x32xf32>
    %407 = arith.mulf %396, %341 : vector<2x32xf32>
    %408 = arith.addf %406, %407 : vector<2x32xf32>
    %409 = vector.shape_cast %378 : vector<2x1xi1> to vector<2x1xi1>
    %410 = vector.broadcast %409 : vector<2x1xi1> to vector<2x32xi1>
    %411 = arith.select %410, %408, %341 : vector<2x32xi1>, vector<2x32xf32>
    %cst_94 = arith.constant dense<0.000000e+00> : vector<2x96xf32>
    %412 = tpu.matmul %411, %5, %cst_94 {dimension_numbers = #tpu.dot_dimension_numbers<[1], [0], [0], [1], [0, 0, 1, 1], [], []>} : vector<2x32xf32>, vector<32x96xf32>, vector<2x96xf32> -> vector<2x96xf32>
    %413 = vector.broadcast %7 : vector<1x96xf32> to vector<2x96xf32>
    %414 = arith.addf %412, %413 : vector<2x96xf32>
    %cst_95 = arith.constant dense<0.000000e+00> : vector<2x96xf32>
    %415 = tpu.matmul %376, %6, %cst_95 {dimension_numbers = #tpu.dot_dimension_numbers<[1], [0], [0], [1], [0, 0, 1, 1], [], []>} : vector<2x32xf32>, vector<32x96xf32>, vector<2x96xf32> -> vector<2x96xf32>
    %416 = vector.extract_strided_slice %414 {offsets = [0, 0], sizes = [2, 32], strides = [1, 1]} : vector<2x96xf32> to vector<2x32xf32>
    %417 = vector.extract_strided_slice %415 {offsets = [0, 0], sizes = [2, 32], strides = [1, 1]} : vector<2x96xf32> to vector<2x32xf32>
    %418 = arith.addf %416, %417 : vector<2x32xf32>
    %419 = arith.negf %418 : vector<2x32xf32>
    %420 = math.exp %419 : vector<2x32xf32>
    %cst_96 = arith.constant 1.000000e+00 : f32
    %421 = vector.broadcast %cst_96 : f32 to vector<2x32xf32>
    %422 = arith.addf %421, %420 : vector<2x32xf32>
    %423 = arith.divf %421, %422 : vector<2x32xf32>
    %424 = vector.extract_strided_slice %414 {offsets = [0, 32], sizes = [2, 32], strides = [1, 1]} : vector<2x96xf32> to vector<2x32xf32>
    %425 = vector.extract_strided_slice %415 {offsets = [0, 32], sizes = [2, 32], strides = [1, 1]} : vector<2x96xf32> to vector<2x32xf32>
    %426 = arith.addf %424, %425 : vector<2x32xf32>
    %427 = arith.negf %426 : vector<2x32xf32>
    %428 = math.exp %427 : vector<2x32xf32>
    %cst_97 = arith.constant 1.000000e+00 : f32
    %429 = vector.broadcast %cst_97 : f32 to vector<2x32xf32>
    %430 = arith.addf %429, %428 : vector<2x32xf32>
    %431 = arith.divf %429, %430 : vector<2x32xf32>
    %432 = vector.extract_strided_slice %414 {offsets = [0, 64], sizes = [2, 32], strides = [1, 1]} : vector<2x96xf32> to vector<2x32xf32>
    %433 = vector.extract_strided_slice %415 {offsets = [0, 64], sizes = [2, 32], strides = [1, 1]} : vector<2x96xf32> to vector<2x32xf32>
    %434 = vector.broadcast %8 : vector<1x32xf32> to vector<2x32xf32>
    %435 = arith.addf %433, %434 : vector<2x32xf32>
    %436 = arith.mulf %423, %435 : vector<2x32xf32>
    %437 = arith.addf %432, %436 : vector<2x32xf32>
    %438 = math.tanh %437 : vector<2x32xf32>
    %cst_98 = arith.constant 1.000000e+00 : f32
    %439 = vector.broadcast %cst_98 : f32 to vector<2x32xf32>
    %440 = arith.subf %439, %431 : vector<2x32xf32>
    %441 = arith.mulf %440, %438 : vector<2x32xf32>
    %442 = arith.mulf %431, %376 : vector<2x32xf32>
    %443 = arith.addf %441, %442 : vector<2x32xf32>
    %444 = vector.shape_cast %378 : vector<2x1xi1> to vector<2x1xi1>
    %445 = vector.broadcast %444 : vector<2x1xi1> to vector<2x32xi1>
    %446 = arith.select %445, %443, %376 : vector<2x32xi1>, vector<2x32xf32>
    %c6_i32 = arith.constant 6 : i32
    %447 = vector.broadcast %c6_i32 : i32 to vector<2x1xi32>
    %448 = arith.cmpi sgt, %0, %447 : vector<2x1xi32>
    %449 = vector.extract_strided_slice %24 {offsets = [12, 0], sizes = [2, 96], strides = [1, 1]} : vector<16x96xf32> to vector<2x96xf32>
    %cst_99 = arith.constant dense<0.000000e+00> : vector<2x96xf32>
    %450 = tpu.matmul %411, %2, %cst_99 {dimension_numbers = #tpu.dot_dimension_numbers<[1], [0], [0], [1], [0, 0, 1, 1], [], []>} : vector<2x32xf32>, vector<32x96xf32>, vector<2x96xf32> -> vector<2x96xf32>
    %451 = vector.extract_strided_slice %449 {offsets = [0, 0], sizes = [2, 32], strides = [1, 1]} : vector<2x96xf32> to vector<2x32xf32>
    %452 = vector.extract_strided_slice %450 {offsets = [0, 0], sizes = [2, 32], strides = [1, 1]} : vector<2x96xf32> to vector<2x32xf32>
    %453 = arith.addf %451, %452 : vector<2x32xf32>
    %454 = arith.negf %453 : vector<2x32xf32>
    %455 = math.exp %454 : vector<2x32xf32>
    %cst_100 = arith.constant 1.000000e+00 : f32
    %456 = vector.broadcast %cst_100 : f32 to vector<2x32xf32>
    %457 = arith.addf %456, %455 : vector<2x32xf32>
    %458 = arith.divf %456, %457 : vector<2x32xf32>
    %459 = vector.extract_strided_slice %449 {offsets = [0, 32], sizes = [2, 32], strides = [1, 1]} : vector<2x96xf32> to vector<2x32xf32>
    %460 = vector.extract_strided_slice %450 {offsets = [0, 32], sizes = [2, 32], strides = [1, 1]} : vector<2x96xf32> to vector<2x32xf32>
    %461 = arith.addf %459, %460 : vector<2x32xf32>
    %462 = arith.negf %461 : vector<2x32xf32>
    %463 = math.exp %462 : vector<2x32xf32>
    %cst_101 = arith.constant 1.000000e+00 : f32
    %464 = vector.broadcast %cst_101 : f32 to vector<2x32xf32>
    %465 = arith.addf %464, %463 : vector<2x32xf32>
    %466 = arith.divf %464, %465 : vector<2x32xf32>
    %467 = vector.extract_strided_slice %449 {offsets = [0, 64], sizes = [2, 32], strides = [1, 1]} : vector<2x96xf32> to vector<2x32xf32>
    %468 = vector.extract_strided_slice %450 {offsets = [0, 64], sizes = [2, 32], strides = [1, 1]} : vector<2x96xf32> to vector<2x32xf32>
    %469 = vector.broadcast %4 : vector<1x32xf32> to vector<2x32xf32>
    %470 = arith.addf %468, %469 : vector<2x32xf32>
    %471 = arith.mulf %458, %470 : vector<2x32xf32>
    %472 = arith.addf %467, %471 : vector<2x32xf32>
    %473 = math.tanh %472 : vector<2x32xf32>
    %cst_102 = arith.constant 1.000000e+00 : f32
    %474 = vector.broadcast %cst_102 : f32 to vector<2x32xf32>
    %475 = arith.subf %474, %466 : vector<2x32xf32>
    %476 = arith.mulf %475, %473 : vector<2x32xf32>
    %477 = arith.mulf %466, %411 : vector<2x32xf32>
    %478 = arith.addf %476, %477 : vector<2x32xf32>
    %479 = vector.shape_cast %448 : vector<2x1xi1> to vector<2x1xi1>
    %480 = vector.broadcast %479 : vector<2x1xi1> to vector<2x32xi1>
    %481 = arith.select %480, %478, %411 : vector<2x32xi1>, vector<2x32xf32>
    %cst_103 = arith.constant dense<0.000000e+00> : vector<2x96xf32>
    %482 = tpu.matmul %481, %5, %cst_103 {dimension_numbers = #tpu.dot_dimension_numbers<[1], [0], [0], [1], [0, 0, 1, 1], [], []>} : vector<2x32xf32>, vector<32x96xf32>, vector<2x96xf32> -> vector<2x96xf32>
    %483 = vector.broadcast %7 : vector<1x96xf32> to vector<2x96xf32>
    %484 = arith.addf %482, %483 : vector<2x96xf32>
    %cst_104 = arith.constant dense<0.000000e+00> : vector<2x96xf32>
    %485 = tpu.matmul %446, %6, %cst_104 {dimension_numbers = #tpu.dot_dimension_numbers<[1], [0], [0], [1], [0, 0, 1, 1], [], []>} : vector<2x32xf32>, vector<32x96xf32>, vector<2x96xf32> -> vector<2x96xf32>
    %486 = vector.extract_strided_slice %484 {offsets = [0, 0], sizes = [2, 32], strides = [1, 1]} : vector<2x96xf32> to vector<2x32xf32>
    %487 = vector.extract_strided_slice %485 {offsets = [0, 0], sizes = [2, 32], strides = [1, 1]} : vector<2x96xf32> to vector<2x32xf32>
    %488 = arith.addf %486, %487 : vector<2x32xf32>
    %489 = arith.negf %488 : vector<2x32xf32>
    %490 = math.exp %489 : vector<2x32xf32>
    %cst_105 = arith.constant 1.000000e+00 : f32
    %491 = vector.broadcast %cst_105 : f32 to vector<2x32xf32>
    %492 = arith.addf %491, %490 : vector<2x32xf32>
    %493 = arith.divf %491, %492 : vector<2x32xf32>
    %494 = vector.extract_strided_slice %484 {offsets = [0, 32], sizes = [2, 32], strides = [1, 1]} : vector<2x96xf32> to vector<2x32xf32>
    %495 = vector.extract_strided_slice %485 {offsets = [0, 32], sizes = [2, 32], strides = [1, 1]} : vector<2x96xf32> to vector<2x32xf32>
    %496 = arith.addf %494, %495 : vector<2x32xf32>
    %497 = arith.negf %496 : vector<2x32xf32>
    %498 = math.exp %497 : vector<2x32xf32>
    %cst_106 = arith.constant 1.000000e+00 : f32
    %499 = vector.broadcast %cst_106 : f32 to vector<2x32xf32>
    %500 = arith.addf %499, %498 : vector<2x32xf32>
    %501 = arith.divf %499, %500 : vector<2x32xf32>
    %502 = vector.extract_strided_slice %484 {offsets = [0, 64], sizes = [2, 32], strides = [1, 1]} : vector<2x96xf32> to vector<2x32xf32>
    %503 = vector.extract_strided_slice %485 {offsets = [0, 64], sizes = [2, 32], strides = [1, 1]} : vector<2x96xf32> to vector<2x32xf32>
    %504 = vector.broadcast %8 : vector<1x32xf32> to vector<2x32xf32>
    %505 = arith.addf %503, %504 : vector<2x32xf32>
    %506 = arith.mulf %493, %505 : vector<2x32xf32>
    %507 = arith.addf %502, %506 : vector<2x32xf32>
    %508 = math.tanh %507 : vector<2x32xf32>
    %cst_107 = arith.constant 1.000000e+00 : f32
    %509 = vector.broadcast %cst_107 : f32 to vector<2x32xf32>
    %510 = arith.subf %509, %501 : vector<2x32xf32>
    %511 = arith.mulf %510, %508 : vector<2x32xf32>
    %512 = arith.mulf %501, %446 : vector<2x32xf32>
    %513 = arith.addf %511, %512 : vector<2x32xf32>
    %514 = vector.shape_cast %448 : vector<2x1xi1> to vector<2x1xi1>
    %515 = vector.broadcast %514 : vector<2x1xi1> to vector<2x32xi1>
    %516 = arith.select %515, %513, %446 : vector<2x32xi1>, vector<2x32xf32>
    %c7_i32 = arith.constant 7 : i32
    %517 = vector.broadcast %c7_i32 : i32 to vector<2x1xi32>
    %518 = arith.cmpi sgt, %0, %517 : vector<2x1xi32>
    %519 = vector.extract_strided_slice %24 {offsets = [14, 0], sizes = [2, 96], strides = [1, 1]} : vector<16x96xf32> to vector<2x96xf32>
    %cst_108 = arith.constant dense<0.000000e+00> : vector<2x96xf32>
    %520 = tpu.matmul %481, %2, %cst_108 {dimension_numbers = #tpu.dot_dimension_numbers<[1], [0], [0], [1], [0, 0, 1, 1], [], []>} : vector<2x32xf32>, vector<32x96xf32>, vector<2x96xf32> -> vector<2x96xf32>
    %521 = vector.extract_strided_slice %519 {offsets = [0, 0], sizes = [2, 32], strides = [1, 1]} : vector<2x96xf32> to vector<2x32xf32>
    %522 = vector.extract_strided_slice %520 {offsets = [0, 0], sizes = [2, 32], strides = [1, 1]} : vector<2x96xf32> to vector<2x32xf32>
    %523 = arith.addf %521, %522 : vector<2x32xf32>
    %524 = arith.negf %523 : vector<2x32xf32>
    %525 = math.exp %524 : vector<2x32xf32>
    %cst_109 = arith.constant 1.000000e+00 : f32
    %526 = vector.broadcast %cst_109 : f32 to vector<2x32xf32>
    %527 = arith.addf %526, %525 : vector<2x32xf32>
    %528 = arith.divf %526, %527 : vector<2x32xf32>
    %529 = vector.extract_strided_slice %519 {offsets = [0, 32], sizes = [2, 32], strides = [1, 1]} : vector<2x96xf32> to vector<2x32xf32>
    %530 = vector.extract_strided_slice %520 {offsets = [0, 32], sizes = [2, 32], strides = [1, 1]} : vector<2x96xf32> to vector<2x32xf32>
    %531 = arith.addf %529, %530 : vector<2x32xf32>
    %532 = arith.negf %531 : vector<2x32xf32>
    %533 = math.exp %532 : vector<2x32xf32>
    %cst_110 = arith.constant 1.000000e+00 : f32
    %534 = vector.broadcast %cst_110 : f32 to vector<2x32xf32>
    %535 = arith.addf %534, %533 : vector<2x32xf32>
    %536 = arith.divf %534, %535 : vector<2x32xf32>
    %537 = vector.extract_strided_slice %519 {offsets = [0, 64], sizes = [2, 32], strides = [1, 1]} : vector<2x96xf32> to vector<2x32xf32>
    %538 = vector.extract_strided_slice %520 {offsets = [0, 64], sizes = [2, 32], strides = [1, 1]} : vector<2x96xf32> to vector<2x32xf32>
    %539 = vector.broadcast %4 : vector<1x32xf32> to vector<2x32xf32>
    %540 = arith.addf %538, %539 : vector<2x32xf32>
    %541 = arith.mulf %528, %540 : vector<2x32xf32>
    %542 = arith.addf %537, %541 : vector<2x32xf32>
    %543 = math.tanh %542 : vector<2x32xf32>
    %cst_111 = arith.constant 1.000000e+00 : f32
    %544 = vector.broadcast %cst_111 : f32 to vector<2x32xf32>
    %545 = arith.subf %544, %536 : vector<2x32xf32>
    %546 = arith.mulf %545, %543 : vector<2x32xf32>
    %547 = arith.mulf %536, %481 : vector<2x32xf32>
    %548 = arith.addf %546, %547 : vector<2x32xf32>
    %549 = vector.shape_cast %518 : vector<2x1xi1> to vector<2x1xi1>
    %550 = vector.broadcast %549 : vector<2x1xi1> to vector<2x32xi1>
    %551 = arith.select %550, %548, %481 : vector<2x32xi1>, vector<2x32xf32>
    %cst_112 = arith.constant dense<0.000000e+00> : vector<2x96xf32>
    %552 = tpu.matmul %551, %5, %cst_112 {dimension_numbers = #tpu.dot_dimension_numbers<[1], [0], [0], [1], [0, 0, 1, 1], [], []>} : vector<2x32xf32>, vector<32x96xf32>, vector<2x96xf32> -> vector<2x96xf32>
    %553 = vector.broadcast %7 : vector<1x96xf32> to vector<2x96xf32>
    %554 = arith.addf %552, %553 : vector<2x96xf32>
    %cst_113 = arith.constant dense<0.000000e+00> : vector<2x96xf32>
    %555 = tpu.matmul %516, %6, %cst_113 {dimension_numbers = #tpu.dot_dimension_numbers<[1], [0], [0], [1], [0, 0, 1, 1], [], []>} : vector<2x32xf32>, vector<32x96xf32>, vector<2x96xf32> -> vector<2x96xf32>
    %556 = vector.extract_strided_slice %554 {offsets = [0, 0], sizes = [2, 32], strides = [1, 1]} : vector<2x96xf32> to vector<2x32xf32>
    %557 = vector.extract_strided_slice %555 {offsets = [0, 0], sizes = [2, 32], strides = [1, 1]} : vector<2x96xf32> to vector<2x32xf32>
    %558 = arith.addf %556, %557 : vector<2x32xf32>
    %559 = arith.negf %558 : vector<2x32xf32>
    %560 = math.exp %559 : vector<2x32xf32>
    %cst_114 = arith.constant 1.000000e+00 : f32
    %561 = vector.broadcast %cst_114 : f32 to vector<2x32xf32>
    %562 = arith.addf %561, %560 : vector<2x32xf32>
    %563 = arith.divf %561, %562 : vector<2x32xf32>
    %564 = vector.extract_strided_slice %554 {offsets = [0, 32], sizes = [2, 32], strides = [1, 1]} : vector<2x96xf32> to vector<2x32xf32>
    %565 = vector.extract_strided_slice %555 {offsets = [0, 32], sizes = [2, 32], strides = [1, 1]} : vector<2x96xf32> to vector<2x32xf32>
    %566 = arith.addf %564, %565 : vector<2x32xf32>
    %567 = arith.negf %566 : vector<2x32xf32>
    %568 = math.exp %567 : vector<2x32xf32>
    %cst_115 = arith.constant 1.000000e+00 : f32
    %569 = vector.broadcast %cst_115 : f32 to vector<2x32xf32>
    %570 = arith.addf %569, %568 : vector<2x32xf32>
    %571 = arith.divf %569, %570 : vector<2x32xf32>
    %572 = vector.extract_strided_slice %554 {offsets = [0, 64], sizes = [2, 32], strides = [1, 1]} : vector<2x96xf32> to vector<2x32xf32>
    %573 = vector.extract_strided_slice %555 {offsets = [0, 64], sizes = [2, 32], strides = [1, 1]} : vector<2x96xf32> to vector<2x32xf32>
    %574 = vector.broadcast %8 : vector<1x32xf32> to vector<2x32xf32>
    %575 = arith.addf %573, %574 : vector<2x32xf32>
    %576 = arith.mulf %563, %575 : vector<2x32xf32>
    %577 = arith.addf %572, %576 : vector<2x32xf32>
    %578 = math.tanh %577 : vector<2x32xf32>
    %cst_116 = arith.constant 1.000000e+00 : f32
    %579 = vector.broadcast %cst_116 : f32 to vector<2x32xf32>
    %580 = arith.subf %579, %571 : vector<2x32xf32>
    %581 = arith.mulf %580, %578 : vector<2x32xf32>
    %582 = arith.mulf %571, %516 : vector<2x32xf32>
    %583 = arith.addf %581, %582 : vector<2x32xf32>
    %584 = vector.shape_cast %518 : vector<2x1xi1> to vector<2x1xi1>
    %585 = vector.broadcast %584 : vector<2x1xi1> to vector<2x32xi1>
    %586 = arith.select %585, %583, %516 : vector<2x32xi1>, vector<2x32xf32>
    %c7_i32_117 = arith.constant 7 : i32
    %587 = vector.broadcast %c7_i32_117 : i32 to vector<2x1xi32>
    %588 = arith.cmpi sgt, %0, %587 : vector<2x1xi32>
    %cst_118 = arith.constant 0.000000e+00 : f32
    %589 = vector.shape_cast %588 : vector<2x1xi1> to vector<2x1xi1>
    %590 = vector.broadcast %589 : vector<2x1xi1> to vector<2x32xi1>
    %591 = vector.broadcast %cst_118 : f32 to vector<2x32xf32>
    %592 = arith.select %590, %586, %591 : vector<2x32xi1>, vector<2x32xf32>
    %cst_119 = arith.constant dense<0.000000e+00> : vector<2x8xf32>
    %593 = tpu.matmul %592, %17, %cst_119 {dimension_numbers = #tpu.dot_dimension_numbers<[1], [0], [0], [1], [0, 0, 1, 1], [], []>} : vector<2x32xf32>, vector<32x8xf32>, vector<2x8xf32> -> vector<2x8xf32>
    %594 = vector.broadcast %18 : vector<1x8xf32> to vector<2x8xf32>
    %595 = arith.addf %593, %594 : vector<2x8xf32>
    %cst_120 = arith.constant dense<0.000000e+00> : vector<2x96xf32>
    %596 = tpu.matmul %595, %9, %cst_120 {dimension_numbers = #tpu.dot_dimension_numbers<[1], [0], [0], [1], [0, 0, 1, 1], [], []>} : vector<2x8xf32>, vector<8x96xf32>, vector<2x96xf32> -> vector<2x96xf32>
    %597 = vector.broadcast %11 : vector<1x96xf32> to vector<2x96xf32>
    %598 = arith.addf %596, %597 : vector<2x96xf32>
    %cst_121 = arith.constant 0.000000e+00 : f32
    %599 = vector.broadcast %cst_121 : f32 to vector<2x32xf32>
    %cst_122 = arith.constant 0.000000e+00 : f32
    %600 = vector.broadcast %cst_122 : f32 to vector<2x32xf32>
    %c0_i32_123 = arith.constant 0 : i32
    %601 = vector.broadcast %c0_i32_123 : i32 to vector<2x1xi32>
    %602 = arith.cmpi sgt, %0, %601 : vector<2x1xi32>
    %cst_124 = arith.constant dense<0.000000e+00> : vector<2x96xf32>
    %603 = tpu.matmul %599, %10, %cst_124 {dimension_numbers = #tpu.dot_dimension_numbers<[1], [0], [0], [1], [0, 0, 1, 1], [], []>} : vector<2x32xf32>, vector<32x96xf32>, vector<2x96xf32> -> vector<2x96xf32>
    %604 = vector.extract_strided_slice %598 {offsets = [0, 0], sizes = [2, 32], strides = [1, 1]} : vector<2x96xf32> to vector<2x32xf32>
    %605 = vector.extract_strided_slice %603 {offsets = [0, 0], sizes = [2, 32], strides = [1, 1]} : vector<2x96xf32> to vector<2x32xf32>
    %606 = arith.addf %604, %605 : vector<2x32xf32>
    %607 = arith.negf %606 : vector<2x32xf32>
    %608 = math.exp %607 : vector<2x32xf32>
    %cst_125 = arith.constant 1.000000e+00 : f32
    %609 = vector.broadcast %cst_125 : f32 to vector<2x32xf32>
    %610 = arith.addf %609, %608 : vector<2x32xf32>
    %611 = arith.divf %609, %610 : vector<2x32xf32>
    %612 = vector.extract_strided_slice %598 {offsets = [0, 32], sizes = [2, 32], strides = [1, 1]} : vector<2x96xf32> to vector<2x32xf32>
    %613 = vector.extract_strided_slice %603 {offsets = [0, 32], sizes = [2, 32], strides = [1, 1]} : vector<2x96xf32> to vector<2x32xf32>
    %614 = arith.addf %612, %613 : vector<2x32xf32>
    %615 = arith.negf %614 : vector<2x32xf32>
    %616 = math.exp %615 : vector<2x32xf32>
    %cst_126 = arith.constant 1.000000e+00 : f32
    %617 = vector.broadcast %cst_126 : f32 to vector<2x32xf32>
    %618 = arith.addf %617, %616 : vector<2x32xf32>
    %619 = arith.divf %617, %618 : vector<2x32xf32>
    %620 = vector.extract_strided_slice %598 {offsets = [0, 64], sizes = [2, 32], strides = [1, 1]} : vector<2x96xf32> to vector<2x32xf32>
    %621 = vector.extract_strided_slice %603 {offsets = [0, 64], sizes = [2, 32], strides = [1, 1]} : vector<2x96xf32> to vector<2x32xf32>
    %622 = vector.broadcast %12 : vector<1x32xf32> to vector<2x32xf32>
    %623 = arith.addf %621, %622 : vector<2x32xf32>
    %624 = arith.mulf %611, %623 : vector<2x32xf32>
    %625 = arith.addf %620, %624 : vector<2x32xf32>
    %626 = math.tanh %625 : vector<2x32xf32>
    %cst_127 = arith.constant 1.000000e+00 : f32
    %627 = vector.broadcast %cst_127 : f32 to vector<2x32xf32>
    %628 = arith.subf %627, %619 : vector<2x32xf32>
    %629 = arith.mulf %628, %626 : vector<2x32xf32>
    %630 = arith.mulf %619, %599 : vector<2x32xf32>
    %631 = arith.addf %629, %630 : vector<2x32xf32>
    %632 = vector.shape_cast %602 : vector<2x1xi1> to vector<2x1xi1>
    %633 = vector.broadcast %632 : vector<2x1xi1> to vector<2x32xi1>
    %634 = arith.select %633, %631, %599 : vector<2x32xi1>, vector<2x32xf32>
    %cst_128 = arith.constant dense<0.000000e+00> : vector<2x96xf32>
    %635 = tpu.matmul %634, %13, %cst_128 {dimension_numbers = #tpu.dot_dimension_numbers<[1], [0], [0], [1], [0, 0, 1, 1], [], []>} : vector<2x32xf32>, vector<32x96xf32>, vector<2x96xf32> -> vector<2x96xf32>
    %636 = vector.broadcast %15 : vector<1x96xf32> to vector<2x96xf32>
    %637 = arith.addf %635, %636 : vector<2x96xf32>
    %cst_129 = arith.constant dense<0.000000e+00> : vector<2x96xf32>
    %638 = tpu.matmul %600, %14, %cst_129 {dimension_numbers = #tpu.dot_dimension_numbers<[1], [0], [0], [1], [0, 0, 1, 1], [], []>} : vector<2x32xf32>, vector<32x96xf32>, vector<2x96xf32> -> vector<2x96xf32>
    %639 = vector.extract_strided_slice %637 {offsets = [0, 0], sizes = [2, 32], strides = [1, 1]} : vector<2x96xf32> to vector<2x32xf32>
    %640 = vector.extract_strided_slice %638 {offsets = [0, 0], sizes = [2, 32], strides = [1, 1]} : vector<2x96xf32> to vector<2x32xf32>
    %641 = arith.addf %639, %640 : vector<2x32xf32>
    %642 = arith.negf %641 : vector<2x32xf32>
    %643 = math.exp %642 : vector<2x32xf32>
    %cst_130 = arith.constant 1.000000e+00 : f32
    %644 = vector.broadcast %cst_130 : f32 to vector<2x32xf32>
    %645 = arith.addf %644, %643 : vector<2x32xf32>
    %646 = arith.divf %644, %645 : vector<2x32xf32>
    %647 = vector.extract_strided_slice %637 {offsets = [0, 32], sizes = [2, 32], strides = [1, 1]} : vector<2x96xf32> to vector<2x32xf32>
    %648 = vector.extract_strided_slice %638 {offsets = [0, 32], sizes = [2, 32], strides = [1, 1]} : vector<2x96xf32> to vector<2x32xf32>
    %649 = arith.addf %647, %648 : vector<2x32xf32>
    %650 = arith.negf %649 : vector<2x32xf32>
    %651 = math.exp %650 : vector<2x32xf32>
    %cst_131 = arith.constant 1.000000e+00 : f32
    %652 = vector.broadcast %cst_131 : f32 to vector<2x32xf32>
    %653 = arith.addf %652, %651 : vector<2x32xf32>
    %654 = arith.divf %652, %653 : vector<2x32xf32>
    %655 = vector.extract_strided_slice %637 {offsets = [0, 64], sizes = [2, 32], strides = [1, 1]} : vector<2x96xf32> to vector<2x32xf32>
    %656 = vector.extract_strided_slice %638 {offsets = [0, 64], sizes = [2, 32], strides = [1, 1]} : vector<2x96xf32> to vector<2x32xf32>
    %657 = vector.broadcast %16 : vector<1x32xf32> to vector<2x32xf32>
    %658 = arith.addf %656, %657 : vector<2x32xf32>
    %659 = arith.mulf %646, %658 : vector<2x32xf32>
    %660 = arith.addf %655, %659 : vector<2x32xf32>
    %661 = math.tanh %660 : vector<2x32xf32>
    %cst_132 = arith.constant 1.000000e+00 : f32
    %662 = vector.broadcast %cst_132 : f32 to vector<2x32xf32>
    %663 = arith.subf %662, %654 : vector<2x32xf32>
    %664 = arith.mulf %663, %661 : vector<2x32xf32>
    %665 = arith.mulf %654, %600 : vector<2x32xf32>
    %666 = arith.addf %664, %665 : vector<2x32xf32>
    %667 = vector.shape_cast %602 : vector<2x1xi1> to vector<2x1xi1>
    %668 = vector.broadcast %667 : vector<2x1xi1> to vector<2x32xi1>
    %669 = arith.select %668, %666, %600 : vector<2x32xi1>, vector<2x32xf32>
    %cst_133 = arith.constant 0.000000e+00 : f32
    %670 = vector.shape_cast %602 : vector<2x1xi1> to vector<2x1xi1>
    %671 = vector.broadcast %670 : vector<2x1xi1> to vector<2x32xi1>
    %672 = vector.broadcast %cst_133 : f32 to vector<2x32xf32>
    %673 = arith.select %671, %669, %672 : vector<2x32xi1>, vector<2x32xf32>
    %c1_i32_134 = arith.constant 1 : i32
    %674 = vector.broadcast %c1_i32_134 : i32 to vector<2x1xi32>
    %675 = arith.cmpi sgt, %0, %674 : vector<2x1xi32>
    %cst_135 = arith.constant dense<0.000000e+00> : vector<2x96xf32>
    %676 = tpu.matmul %634, %10, %cst_135 {dimension_numbers = #tpu.dot_dimension_numbers<[1], [0], [0], [1], [0, 0, 1, 1], [], []>} : vector<2x32xf32>, vector<32x96xf32>, vector<2x96xf32> -> vector<2x96xf32>
    %677 = vector.extract_strided_slice %598 {offsets = [0, 0], sizes = [2, 32], strides = [1, 1]} : vector<2x96xf32> to vector<2x32xf32>
    %678 = vector.extract_strided_slice %676 {offsets = [0, 0], sizes = [2, 32], strides = [1, 1]} : vector<2x96xf32> to vector<2x32xf32>
    %679 = arith.addf %677, %678 : vector<2x32xf32>
    %680 = arith.negf %679 : vector<2x32xf32>
    %681 = math.exp %680 : vector<2x32xf32>
    %cst_136 = arith.constant 1.000000e+00 : f32
    %682 = vector.broadcast %cst_136 : f32 to vector<2x32xf32>
    %683 = arith.addf %682, %681 : vector<2x32xf32>
    %684 = arith.divf %682, %683 : vector<2x32xf32>
    %685 = vector.extract_strided_slice %598 {offsets = [0, 32], sizes = [2, 32], strides = [1, 1]} : vector<2x96xf32> to vector<2x32xf32>
    %686 = vector.extract_strided_slice %676 {offsets = [0, 32], sizes = [2, 32], strides = [1, 1]} : vector<2x96xf32> to vector<2x32xf32>
    %687 = arith.addf %685, %686 : vector<2x32xf32>
    %688 = arith.negf %687 : vector<2x32xf32>
    %689 = math.exp %688 : vector<2x32xf32>
    %cst_137 = arith.constant 1.000000e+00 : f32
    %690 = vector.broadcast %cst_137 : f32 to vector<2x32xf32>
    %691 = arith.addf %690, %689 : vector<2x32xf32>
    %692 = arith.divf %690, %691 : vector<2x32xf32>
    %693 = vector.extract_strided_slice %598 {offsets = [0, 64], sizes = [2, 32], strides = [1, 1]} : vector<2x96xf32> to vector<2x32xf32>
    %694 = vector.extract_strided_slice %676 {offsets = [0, 64], sizes = [2, 32], strides = [1, 1]} : vector<2x96xf32> to vector<2x32xf32>
    %695 = vector.broadcast %12 : vector<1x32xf32> to vector<2x32xf32>
    %696 = arith.addf %694, %695 : vector<2x32xf32>
    %697 = arith.mulf %684, %696 : vector<2x32xf32>
    %698 = arith.addf %693, %697 : vector<2x32xf32>
    %699 = math.tanh %698 : vector<2x32xf32>
    %cst_138 = arith.constant 1.000000e+00 : f32
    %700 = vector.broadcast %cst_138 : f32 to vector<2x32xf32>
    %701 = arith.subf %700, %692 : vector<2x32xf32>
    %702 = arith.mulf %701, %699 : vector<2x32xf32>
    %703 = arith.mulf %692, %634 : vector<2x32xf32>
    %704 = arith.addf %702, %703 : vector<2x32xf32>
    %705 = vector.shape_cast %675 : vector<2x1xi1> to vector<2x1xi1>
    %706 = vector.broadcast %705 : vector<2x1xi1> to vector<2x32xi1>
    %707 = arith.select %706, %704, %634 : vector<2x32xi1>, vector<2x32xf32>
    %cst_139 = arith.constant dense<0.000000e+00> : vector<2x96xf32>
    %708 = tpu.matmul %707, %13, %cst_139 {dimension_numbers = #tpu.dot_dimension_numbers<[1], [0], [0], [1], [0, 0, 1, 1], [], []>} : vector<2x32xf32>, vector<32x96xf32>, vector<2x96xf32> -> vector<2x96xf32>
    %709 = vector.broadcast %15 : vector<1x96xf32> to vector<2x96xf32>
    %710 = arith.addf %708, %709 : vector<2x96xf32>
    %cst_140 = arith.constant dense<0.000000e+00> : vector<2x96xf32>
    %711 = tpu.matmul %669, %14, %cst_140 {dimension_numbers = #tpu.dot_dimension_numbers<[1], [0], [0], [1], [0, 0, 1, 1], [], []>} : vector<2x32xf32>, vector<32x96xf32>, vector<2x96xf32> -> vector<2x96xf32>
    %712 = vector.extract_strided_slice %710 {offsets = [0, 0], sizes = [2, 32], strides = [1, 1]} : vector<2x96xf32> to vector<2x32xf32>
    %713 = vector.extract_strided_slice %711 {offsets = [0, 0], sizes = [2, 32], strides = [1, 1]} : vector<2x96xf32> to vector<2x32xf32>
    %714 = arith.addf %712, %713 : vector<2x32xf32>
    %715 = arith.negf %714 : vector<2x32xf32>
    %716 = math.exp %715 : vector<2x32xf32>
    %cst_141 = arith.constant 1.000000e+00 : f32
    %717 = vector.broadcast %cst_141 : f32 to vector<2x32xf32>
    %718 = arith.addf %717, %716 : vector<2x32xf32>
    %719 = arith.divf %717, %718 : vector<2x32xf32>
    %720 = vector.extract_strided_slice %710 {offsets = [0, 32], sizes = [2, 32], strides = [1, 1]} : vector<2x96xf32> to vector<2x32xf32>
    %721 = vector.extract_strided_slice %711 {offsets = [0, 32], sizes = [2, 32], strides = [1, 1]} : vector<2x96xf32> to vector<2x32xf32>
    %722 = arith.addf %720, %721 : vector<2x32xf32>
    %723 = arith.negf %722 : vector<2x32xf32>
    %724 = math.exp %723 : vector<2x32xf32>
    %cst_142 = arith.constant 1.000000e+00 : f32
    %725 = vector.broadcast %cst_142 : f32 to vector<2x32xf32>
    %726 = arith.addf %725, %724 : vector<2x32xf32>
    %727 = arith.divf %725, %726 : vector<2x32xf32>
    %728 = vector.extract_strided_slice %710 {offsets = [0, 64], sizes = [2, 32], strides = [1, 1]} : vector<2x96xf32> to vector<2x32xf32>
    %729 = vector.extract_strided_slice %711 {offsets = [0, 64], sizes = [2, 32], strides = [1, 1]} : vector<2x96xf32> to vector<2x32xf32>
    %730 = vector.broadcast %16 : vector<1x32xf32> to vector<2x32xf32>
    %731 = arith.addf %729, %730 : vector<2x32xf32>
    %732 = arith.mulf %719, %731 : vector<2x32xf32>
    %733 = arith.addf %728, %732 : vector<2x32xf32>
    %734 = math.tanh %733 : vector<2x32xf32>
    %cst_143 = arith.constant 1.000000e+00 : f32
    %735 = vector.broadcast %cst_143 : f32 to vector<2x32xf32>
    %736 = arith.subf %735, %727 : vector<2x32xf32>
    %737 = arith.mulf %736, %734 : vector<2x32xf32>
    %738 = arith.mulf %727, %669 : vector<2x32xf32>
    %739 = arith.addf %737, %738 : vector<2x32xf32>
    %740 = vector.shape_cast %675 : vector<2x1xi1> to vector<2x1xi1>
    %741 = vector.broadcast %740 : vector<2x1xi1> to vector<2x32xi1>
    %742 = arith.select %741, %739, %669 : vector<2x32xi1>, vector<2x32xf32>
    %cst_144 = arith.constant 0.000000e+00 : f32
    %743 = vector.shape_cast %675 : vector<2x1xi1> to vector<2x1xi1>
    %744 = vector.broadcast %743 : vector<2x1xi1> to vector<2x32xi1>
    %745 = vector.broadcast %cst_144 : f32 to vector<2x32xf32>
    %746 = arith.select %744, %742, %745 : vector<2x32xi1>, vector<2x32xf32>
    %c2_i32_145 = arith.constant 2 : i32
    %747 = vector.broadcast %c2_i32_145 : i32 to vector<2x1xi32>
    %748 = arith.cmpi sgt, %0, %747 : vector<2x1xi32>
    %cst_146 = arith.constant dense<0.000000e+00> : vector<2x96xf32>
    %749 = tpu.matmul %707, %10, %cst_146 {dimension_numbers = #tpu.dot_dimension_numbers<[1], [0], [0], [1], [0, 0, 1, 1], [], []>} : vector<2x32xf32>, vector<32x96xf32>, vector<2x96xf32> -> vector<2x96xf32>
    %750 = vector.extract_strided_slice %598 {offsets = [0, 0], sizes = [2, 32], strides = [1, 1]} : vector<2x96xf32> to vector<2x32xf32>
    %751 = vector.extract_strided_slice %749 {offsets = [0, 0], sizes = [2, 32], strides = [1, 1]} : vector<2x96xf32> to vector<2x32xf32>
    %752 = arith.addf %750, %751 : vector<2x32xf32>
    %753 = arith.negf %752 : vector<2x32xf32>
    %754 = math.exp %753 : vector<2x32xf32>
    %cst_147 = arith.constant 1.000000e+00 : f32
    %755 = vector.broadcast %cst_147 : f32 to vector<2x32xf32>
    %756 = arith.addf %755, %754 : vector<2x32xf32>
    %757 = arith.divf %755, %756 : vector<2x32xf32>
    %758 = vector.extract_strided_slice %598 {offsets = [0, 32], sizes = [2, 32], strides = [1, 1]} : vector<2x96xf32> to vector<2x32xf32>
    %759 = vector.extract_strided_slice %749 {offsets = [0, 32], sizes = [2, 32], strides = [1, 1]} : vector<2x96xf32> to vector<2x32xf32>
    %760 = arith.addf %758, %759 : vector<2x32xf32>
    %761 = arith.negf %760 : vector<2x32xf32>
    %762 = math.exp %761 : vector<2x32xf32>
    %cst_148 = arith.constant 1.000000e+00 : f32
    %763 = vector.broadcast %cst_148 : f32 to vector<2x32xf32>
    %764 = arith.addf %763, %762 : vector<2x32xf32>
    %765 = arith.divf %763, %764 : vector<2x32xf32>
    %766 = vector.extract_strided_slice %598 {offsets = [0, 64], sizes = [2, 32], strides = [1, 1]} : vector<2x96xf32> to vector<2x32xf32>
    %767 = vector.extract_strided_slice %749 {offsets = [0, 64], sizes = [2, 32], strides = [1, 1]} : vector<2x96xf32> to vector<2x32xf32>
    %768 = vector.broadcast %12 : vector<1x32xf32> to vector<2x32xf32>
    %769 = arith.addf %767, %768 : vector<2x32xf32>
    %770 = arith.mulf %757, %769 : vector<2x32xf32>
    %771 = arith.addf %766, %770 : vector<2x32xf32>
    %772 = math.tanh %771 : vector<2x32xf32>
    %cst_149 = arith.constant 1.000000e+00 : f32
    %773 = vector.broadcast %cst_149 : f32 to vector<2x32xf32>
    %774 = arith.subf %773, %765 : vector<2x32xf32>
    %775 = arith.mulf %774, %772 : vector<2x32xf32>
    %776 = arith.mulf %765, %707 : vector<2x32xf32>
    %777 = arith.addf %775, %776 : vector<2x32xf32>
    %778 = vector.shape_cast %748 : vector<2x1xi1> to vector<2x1xi1>
    %779 = vector.broadcast %778 : vector<2x1xi1> to vector<2x32xi1>
    %780 = arith.select %779, %777, %707 : vector<2x32xi1>, vector<2x32xf32>
    %cst_150 = arith.constant dense<0.000000e+00> : vector<2x96xf32>
    %781 = tpu.matmul %780, %13, %cst_150 {dimension_numbers = #tpu.dot_dimension_numbers<[1], [0], [0], [1], [0, 0, 1, 1], [], []>} : vector<2x32xf32>, vector<32x96xf32>, vector<2x96xf32> -> vector<2x96xf32>
    %782 = vector.broadcast %15 : vector<1x96xf32> to vector<2x96xf32>
    %783 = arith.addf %781, %782 : vector<2x96xf32>
    %cst_151 = arith.constant dense<0.000000e+00> : vector<2x96xf32>
    %784 = tpu.matmul %742, %14, %cst_151 {dimension_numbers = #tpu.dot_dimension_numbers<[1], [0], [0], [1], [0, 0, 1, 1], [], []>} : vector<2x32xf32>, vector<32x96xf32>, vector<2x96xf32> -> vector<2x96xf32>
    %785 = vector.extract_strided_slice %783 {offsets = [0, 0], sizes = [2, 32], strides = [1, 1]} : vector<2x96xf32> to vector<2x32xf32>
    %786 = vector.extract_strided_slice %784 {offsets = [0, 0], sizes = [2, 32], strides = [1, 1]} : vector<2x96xf32> to vector<2x32xf32>
    %787 = arith.addf %785, %786 : vector<2x32xf32>
    %788 = arith.negf %787 : vector<2x32xf32>
    %789 = math.exp %788 : vector<2x32xf32>
    %cst_152 = arith.constant 1.000000e+00 : f32
    %790 = vector.broadcast %cst_152 : f32 to vector<2x32xf32>
    %791 = arith.addf %790, %789 : vector<2x32xf32>
    %792 = arith.divf %790, %791 : vector<2x32xf32>
    %793 = vector.extract_strided_slice %783 {offsets = [0, 32], sizes = [2, 32], strides = [1, 1]} : vector<2x96xf32> to vector<2x32xf32>
    %794 = vector.extract_strided_slice %784 {offsets = [0, 32], sizes = [2, 32], strides = [1, 1]} : vector<2x96xf32> to vector<2x32xf32>
    %795 = arith.addf %793, %794 : vector<2x32xf32>
    %796 = arith.negf %795 : vector<2x32xf32>
    %797 = math.exp %796 : vector<2x32xf32>
    %cst_153 = arith.constant 1.000000e+00 : f32
    %798 = vector.broadcast %cst_153 : f32 to vector<2x32xf32>
    %799 = arith.addf %798, %797 : vector<2x32xf32>
    %800 = arith.divf %798, %799 : vector<2x32xf32>
    %801 = vector.extract_strided_slice %783 {offsets = [0, 64], sizes = [2, 32], strides = [1, 1]} : vector<2x96xf32> to vector<2x32xf32>
    %802 = vector.extract_strided_slice %784 {offsets = [0, 64], sizes = [2, 32], strides = [1, 1]} : vector<2x96xf32> to vector<2x32xf32>
    %803 = vector.broadcast %16 : vector<1x32xf32> to vector<2x32xf32>
    %804 = arith.addf %802, %803 : vector<2x32xf32>
    %805 = arith.mulf %792, %804 : vector<2x32xf32>
    %806 = arith.addf %801, %805 : vector<2x32xf32>
    %807 = math.tanh %806 : vector<2x32xf32>
    %cst_154 = arith.constant 1.000000e+00 : f32
    %808 = vector.broadcast %cst_154 : f32 to vector<2x32xf32>
    %809 = arith.subf %808, %800 : vector<2x32xf32>
    %810 = arith.mulf %809, %807 : vector<2x32xf32>
    %811 = arith.mulf %800, %742 : vector<2x32xf32>
    %812 = arith.addf %810, %811 : vector<2x32xf32>
    %813 = vector.shape_cast %748 : vector<2x1xi1> to vector<2x1xi1>
    %814 = vector.broadcast %813 : vector<2x1xi1> to vector<2x32xi1>
    %815 = arith.select %814, %812, %742 : vector<2x32xi1>, vector<2x32xf32>
    %cst_155 = arith.constant 0.000000e+00 : f32
    %816 = vector.shape_cast %748 : vector<2x1xi1> to vector<2x1xi1>
    %817 = vector.broadcast %816 : vector<2x1xi1> to vector<2x32xi1>
    %818 = vector.broadcast %cst_155 : f32 to vector<2x32xf32>
    %819 = arith.select %817, %815, %818 : vector<2x32xi1>, vector<2x32xf32>
    %c3_i32_156 = arith.constant 3 : i32
    %820 = vector.broadcast %c3_i32_156 : i32 to vector<2x1xi32>
    %821 = arith.cmpi sgt, %0, %820 : vector<2x1xi32>
    %cst_157 = arith.constant dense<0.000000e+00> : vector<2x96xf32>
    %822 = tpu.matmul %780, %10, %cst_157 {dimension_numbers = #tpu.dot_dimension_numbers<[1], [0], [0], [1], [0, 0, 1, 1], [], []>} : vector<2x32xf32>, vector<32x96xf32>, vector<2x96xf32> -> vector<2x96xf32>
    %823 = vector.extract_strided_slice %598 {offsets = [0, 0], sizes = [2, 32], strides = [1, 1]} : vector<2x96xf32> to vector<2x32xf32>
    %824 = vector.extract_strided_slice %822 {offsets = [0, 0], sizes = [2, 32], strides = [1, 1]} : vector<2x96xf32> to vector<2x32xf32>
    %825 = arith.addf %823, %824 : vector<2x32xf32>
    %826 = arith.negf %825 : vector<2x32xf32>
    %827 = math.exp %826 : vector<2x32xf32>
    %cst_158 = arith.constant 1.000000e+00 : f32
    %828 = vector.broadcast %cst_158 : f32 to vector<2x32xf32>
    %829 = arith.addf %828, %827 : vector<2x32xf32>
    %830 = arith.divf %828, %829 : vector<2x32xf32>
    %831 = vector.extract_strided_slice %598 {offsets = [0, 32], sizes = [2, 32], strides = [1, 1]} : vector<2x96xf32> to vector<2x32xf32>
    %832 = vector.extract_strided_slice %822 {offsets = [0, 32], sizes = [2, 32], strides = [1, 1]} : vector<2x96xf32> to vector<2x32xf32>
    %833 = arith.addf %831, %832 : vector<2x32xf32>
    %834 = arith.negf %833 : vector<2x32xf32>
    %835 = math.exp %834 : vector<2x32xf32>
    %cst_159 = arith.constant 1.000000e+00 : f32
    %836 = vector.broadcast %cst_159 : f32 to vector<2x32xf32>
    %837 = arith.addf %836, %835 : vector<2x32xf32>
    %838 = arith.divf %836, %837 : vector<2x32xf32>
    %839 = vector.extract_strided_slice %598 {offsets = [0, 64], sizes = [2, 32], strides = [1, 1]} : vector<2x96xf32> to vector<2x32xf32>
    %840 = vector.extract_strided_slice %822 {offsets = [0, 64], sizes = [2, 32], strides = [1, 1]} : vector<2x96xf32> to vector<2x32xf32>
    %841 = vector.broadcast %12 : vector<1x32xf32> to vector<2x32xf32>
    %842 = arith.addf %840, %841 : vector<2x32xf32>
    %843 = arith.mulf %830, %842 : vector<2x32xf32>
    %844 = arith.addf %839, %843 : vector<2x32xf32>
    %845 = math.tanh %844 : vector<2x32xf32>
    %cst_160 = arith.constant 1.000000e+00 : f32
    %846 = vector.broadcast %cst_160 : f32 to vector<2x32xf32>
    %847 = arith.subf %846, %838 : vector<2x32xf32>
    %848 = arith.mulf %847, %845 : vector<2x32xf32>
    %849 = arith.mulf %838, %780 : vector<2x32xf32>
    %850 = arith.addf %848, %849 : vector<2x32xf32>
    %851 = vector.shape_cast %821 : vector<2x1xi1> to vector<2x1xi1>
    %852 = vector.broadcast %851 : vector<2x1xi1> to vector<2x32xi1>
    %853 = arith.select %852, %850, %780 : vector<2x32xi1>, vector<2x32xf32>
    %cst_161 = arith.constant dense<0.000000e+00> : vector<2x96xf32>
    %854 = tpu.matmul %853, %13, %cst_161 {dimension_numbers = #tpu.dot_dimension_numbers<[1], [0], [0], [1], [0, 0, 1, 1], [], []>} : vector<2x32xf32>, vector<32x96xf32>, vector<2x96xf32> -> vector<2x96xf32>
    %855 = vector.broadcast %15 : vector<1x96xf32> to vector<2x96xf32>
    %856 = arith.addf %854, %855 : vector<2x96xf32>
    %cst_162 = arith.constant dense<0.000000e+00> : vector<2x96xf32>
    %857 = tpu.matmul %815, %14, %cst_162 {dimension_numbers = #tpu.dot_dimension_numbers<[1], [0], [0], [1], [0, 0, 1, 1], [], []>} : vector<2x32xf32>, vector<32x96xf32>, vector<2x96xf32> -> vector<2x96xf32>
    %858 = vector.extract_strided_slice %856 {offsets = [0, 0], sizes = [2, 32], strides = [1, 1]} : vector<2x96xf32> to vector<2x32xf32>
    %859 = vector.extract_strided_slice %857 {offsets = [0, 0], sizes = [2, 32], strides = [1, 1]} : vector<2x96xf32> to vector<2x32xf32>
    %860 = arith.addf %858, %859 : vector<2x32xf32>
    %861 = arith.negf %860 : vector<2x32xf32>
    %862 = math.exp %861 : vector<2x32xf32>
    %cst_163 = arith.constant 1.000000e+00 : f32
    %863 = vector.broadcast %cst_163 : f32 to vector<2x32xf32>
    %864 = arith.addf %863, %862 : vector<2x32xf32>
    %865 = arith.divf %863, %864 : vector<2x32xf32>
    %866 = vector.extract_strided_slice %856 {offsets = [0, 32], sizes = [2, 32], strides = [1, 1]} : vector<2x96xf32> to vector<2x32xf32>
    %867 = vector.extract_strided_slice %857 {offsets = [0, 32], sizes = [2, 32], strides = [1, 1]} : vector<2x96xf32> to vector<2x32xf32>
    %868 = arith.addf %866, %867 : vector<2x32xf32>
    %869 = arith.negf %868 : vector<2x32xf32>
    %870 = math.exp %869 : vector<2x32xf32>
    %cst_164 = arith.constant 1.000000e+00 : f32
    %871 = vector.broadcast %cst_164 : f32 to vector<2x32xf32>
    %872 = arith.addf %871, %870 : vector<2x32xf32>
    %873 = arith.divf %871, %872 : vector<2x32xf32>
    %874 = vector.extract_strided_slice %856 {offsets = [0, 64], sizes = [2, 32], strides = [1, 1]} : vector<2x96xf32> to vector<2x32xf32>
    %875 = vector.extract_strided_slice %857 {offsets = [0, 64], sizes = [2, 32], strides = [1, 1]} : vector<2x96xf32> to vector<2x32xf32>
    %876 = vector.broadcast %16 : vector<1x32xf32> to vector<2x32xf32>
    %877 = arith.addf %875, %876 : vector<2x32xf32>
    %878 = arith.mulf %865, %877 : vector<2x32xf32>
    %879 = arith.addf %874, %878 : vector<2x32xf32>
    %880 = math.tanh %879 : vector<2x32xf32>
    %cst_165 = arith.constant 1.000000e+00 : f32
    %881 = vector.broadcast %cst_165 : f32 to vector<2x32xf32>
    %882 = arith.subf %881, %873 : vector<2x32xf32>
    %883 = arith.mulf %882, %880 : vector<2x32xf32>
    %884 = arith.mulf %873, %815 : vector<2x32xf32>
    %885 = arith.addf %883, %884 : vector<2x32xf32>
    %886 = vector.shape_cast %821 : vector<2x1xi1> to vector<2x1xi1>
    %887 = vector.broadcast %886 : vector<2x1xi1> to vector<2x32xi1>
    %888 = arith.select %887, %885, %815 : vector<2x32xi1>, vector<2x32xf32>
    %cst_166 = arith.constant 0.000000e+00 : f32
    %889 = vector.shape_cast %821 : vector<2x1xi1> to vector<2x1xi1>
    %890 = vector.broadcast %889 : vector<2x1xi1> to vector<2x32xi1>
    %891 = vector.broadcast %cst_166 : f32 to vector<2x32xf32>
    %892 = arith.select %890, %888, %891 : vector<2x32xi1>, vector<2x32xf32>
    %c4_i32_167 = arith.constant 4 : i32
    %893 = vector.broadcast %c4_i32_167 : i32 to vector<2x1xi32>
    %894 = arith.cmpi sgt, %0, %893 : vector<2x1xi32>
    %cst_168 = arith.constant dense<0.000000e+00> : vector<2x96xf32>
    %895 = tpu.matmul %853, %10, %cst_168 {dimension_numbers = #tpu.dot_dimension_numbers<[1], [0], [0], [1], [0, 0, 1, 1], [], []>} : vector<2x32xf32>, vector<32x96xf32>, vector<2x96xf32> -> vector<2x96xf32>
    %896 = vector.extract_strided_slice %598 {offsets = [0, 0], sizes = [2, 32], strides = [1, 1]} : vector<2x96xf32> to vector<2x32xf32>
    %897 = vector.extract_strided_slice %895 {offsets = [0, 0], sizes = [2, 32], strides = [1, 1]} : vector<2x96xf32> to vector<2x32xf32>
    %898 = arith.addf %896, %897 : vector<2x32xf32>
    %899 = arith.negf %898 : vector<2x32xf32>
    %900 = math.exp %899 : vector<2x32xf32>
    %cst_169 = arith.constant 1.000000e+00 : f32
    %901 = vector.broadcast %cst_169 : f32 to vector<2x32xf32>
    %902 = arith.addf %901, %900 : vector<2x32xf32>
    %903 = arith.divf %901, %902 : vector<2x32xf32>
    %904 = vector.extract_strided_slice %598 {offsets = [0, 32], sizes = [2, 32], strides = [1, 1]} : vector<2x96xf32> to vector<2x32xf32>
    %905 = vector.extract_strided_slice %895 {offsets = [0, 32], sizes = [2, 32], strides = [1, 1]} : vector<2x96xf32> to vector<2x32xf32>
    %906 = arith.addf %904, %905 : vector<2x32xf32>
    %907 = arith.negf %906 : vector<2x32xf32>
    %908 = math.exp %907 : vector<2x32xf32>
    %cst_170 = arith.constant 1.000000e+00 : f32
    %909 = vector.broadcast %cst_170 : f32 to vector<2x32xf32>
    %910 = arith.addf %909, %908 : vector<2x32xf32>
    %911 = arith.divf %909, %910 : vector<2x32xf32>
    %912 = vector.extract_strided_slice %598 {offsets = [0, 64], sizes = [2, 32], strides = [1, 1]} : vector<2x96xf32> to vector<2x32xf32>
    %913 = vector.extract_strided_slice %895 {offsets = [0, 64], sizes = [2, 32], strides = [1, 1]} : vector<2x96xf32> to vector<2x32xf32>
    %914 = vector.broadcast %12 : vector<1x32xf32> to vector<2x32xf32>
    %915 = arith.addf %913, %914 : vector<2x32xf32>
    %916 = arith.mulf %903, %915 : vector<2x32xf32>
    %917 = arith.addf %912, %916 : vector<2x32xf32>
    %918 = math.tanh %917 : vector<2x32xf32>
    %cst_171 = arith.constant 1.000000e+00 : f32
    %919 = vector.broadcast %cst_171 : f32 to vector<2x32xf32>
    %920 = arith.subf %919, %911 : vector<2x32xf32>
    %921 = arith.mulf %920, %918 : vector<2x32xf32>
    %922 = arith.mulf %911, %853 : vector<2x32xf32>
    %923 = arith.addf %921, %922 : vector<2x32xf32>
    %924 = vector.shape_cast %894 : vector<2x1xi1> to vector<2x1xi1>
    %925 = vector.broadcast %924 : vector<2x1xi1> to vector<2x32xi1>
    %926 = arith.select %925, %923, %853 : vector<2x32xi1>, vector<2x32xf32>
    %cst_172 = arith.constant dense<0.000000e+00> : vector<2x96xf32>
    %927 = tpu.matmul %926, %13, %cst_172 {dimension_numbers = #tpu.dot_dimension_numbers<[1], [0], [0], [1], [0, 0, 1, 1], [], []>} : vector<2x32xf32>, vector<32x96xf32>, vector<2x96xf32> -> vector<2x96xf32>
    %928 = vector.broadcast %15 : vector<1x96xf32> to vector<2x96xf32>
    %929 = arith.addf %927, %928 : vector<2x96xf32>
    %cst_173 = arith.constant dense<0.000000e+00> : vector<2x96xf32>
    %930 = tpu.matmul %888, %14, %cst_173 {dimension_numbers = #tpu.dot_dimension_numbers<[1], [0], [0], [1], [0, 0, 1, 1], [], []>} : vector<2x32xf32>, vector<32x96xf32>, vector<2x96xf32> -> vector<2x96xf32>
    %931 = vector.extract_strided_slice %929 {offsets = [0, 0], sizes = [2, 32], strides = [1, 1]} : vector<2x96xf32> to vector<2x32xf32>
    %932 = vector.extract_strided_slice %930 {offsets = [0, 0], sizes = [2, 32], strides = [1, 1]} : vector<2x96xf32> to vector<2x32xf32>
    %933 = arith.addf %931, %932 : vector<2x32xf32>
    %934 = arith.negf %933 : vector<2x32xf32>
    %935 = math.exp %934 : vector<2x32xf32>
    %cst_174 = arith.constant 1.000000e+00 : f32
    %936 = vector.broadcast %cst_174 : f32 to vector<2x32xf32>
    %937 = arith.addf %936, %935 : vector<2x32xf32>
    %938 = arith.divf %936, %937 : vector<2x32xf32>
    %939 = vector.extract_strided_slice %929 {offsets = [0, 32], sizes = [2, 32], strides = [1, 1]} : vector<2x96xf32> to vector<2x32xf32>
    %940 = vector.extract_strided_slice %930 {offsets = [0, 32], sizes = [2, 32], strides = [1, 1]} : vector<2x96xf32> to vector<2x32xf32>
    %941 = arith.addf %939, %940 : vector<2x32xf32>
    %942 = arith.negf %941 : vector<2x32xf32>
    %943 = math.exp %942 : vector<2x32xf32>
    %cst_175 = arith.constant 1.000000e+00 : f32
    %944 = vector.broadcast %cst_175 : f32 to vector<2x32xf32>
    %945 = arith.addf %944, %943 : vector<2x32xf32>
    %946 = arith.divf %944, %945 : vector<2x32xf32>
    %947 = vector.extract_strided_slice %929 {offsets = [0, 64], sizes = [2, 32], strides = [1, 1]} : vector<2x96xf32> to vector<2x32xf32>
    %948 = vector.extract_strided_slice %930 {offsets = [0, 64], sizes = [2, 32], strides = [1, 1]} : vector<2x96xf32> to vector<2x32xf32>
    %949 = vector.broadcast %16 : vector<1x32xf32> to vector<2x32xf32>
    %950 = arith.addf %948, %949 : vector<2x32xf32>
    %951 = arith.mulf %938, %950 : vector<2x32xf32>
    %952 = arith.addf %947, %951 : vector<2x32xf32>
    %953 = math.tanh %952 : vector<2x32xf32>
    %cst_176 = arith.constant 1.000000e+00 : f32
    %954 = vector.broadcast %cst_176 : f32 to vector<2x32xf32>
    %955 = arith.subf %954, %946 : vector<2x32xf32>
    %956 = arith.mulf %955, %953 : vector<2x32xf32>
    %957 = arith.mulf %946, %888 : vector<2x32xf32>
    %958 = arith.addf %956, %957 : vector<2x32xf32>
    %959 = vector.shape_cast %894 : vector<2x1xi1> to vector<2x1xi1>
    %960 = vector.broadcast %959 : vector<2x1xi1> to vector<2x32xi1>
    %961 = arith.select %960, %958, %888 : vector<2x32xi1>, vector<2x32xf32>
    %cst_177 = arith.constant 0.000000e+00 : f32
    %962 = vector.shape_cast %894 : vector<2x1xi1> to vector<2x1xi1>
    %963 = vector.broadcast %962 : vector<2x1xi1> to vector<2x32xi1>
    %964 = vector.broadcast %cst_177 : f32 to vector<2x32xf32>
    %965 = arith.select %963, %961, %964 : vector<2x32xi1>, vector<2x32xf32>
    %c5_i32_178 = arith.constant 5 : i32
    %966 = vector.broadcast %c5_i32_178 : i32 to vector<2x1xi32>
    %967 = arith.cmpi sgt, %0, %966 : vector<2x1xi32>
    %cst_179 = arith.constant dense<0.000000e+00> : vector<2x96xf32>
    %968 = tpu.matmul %926, %10, %cst_179 {dimension_numbers = #tpu.dot_dimension_numbers<[1], [0], [0], [1], [0, 0, 1, 1], [], []>} : vector<2x32xf32>, vector<32x96xf32>, vector<2x96xf32> -> vector<2x96xf32>
    %969 = vector.extract_strided_slice %598 {offsets = [0, 0], sizes = [2, 32], strides = [1, 1]} : vector<2x96xf32> to vector<2x32xf32>
    %970 = vector.extract_strided_slice %968 {offsets = [0, 0], sizes = [2, 32], strides = [1, 1]} : vector<2x96xf32> to vector<2x32xf32>
    %971 = arith.addf %969, %970 : vector<2x32xf32>
    %972 = arith.negf %971 : vector<2x32xf32>
    %973 = math.exp %972 : vector<2x32xf32>
    %cst_180 = arith.constant 1.000000e+00 : f32
    %974 = vector.broadcast %cst_180 : f32 to vector<2x32xf32>
    %975 = arith.addf %974, %973 : vector<2x32xf32>
    %976 = arith.divf %974, %975 : vector<2x32xf32>
    %977 = vector.extract_strided_slice %598 {offsets = [0, 32], sizes = [2, 32], strides = [1, 1]} : vector<2x96xf32> to vector<2x32xf32>
    %978 = vector.extract_strided_slice %968 {offsets = [0, 32], sizes = [2, 32], strides = [1, 1]} : vector<2x96xf32> to vector<2x32xf32>
    %979 = arith.addf %977, %978 : vector<2x32xf32>
    %980 = arith.negf %979 : vector<2x32xf32>
    %981 = math.exp %980 : vector<2x32xf32>
    %cst_181 = arith.constant 1.000000e+00 : f32
    %982 = vector.broadcast %cst_181 : f32 to vector<2x32xf32>
    %983 = arith.addf %982, %981 : vector<2x32xf32>
    %984 = arith.divf %982, %983 : vector<2x32xf32>
    %985 = vector.extract_strided_slice %598 {offsets = [0, 64], sizes = [2, 32], strides = [1, 1]} : vector<2x96xf32> to vector<2x32xf32>
    %986 = vector.extract_strided_slice %968 {offsets = [0, 64], sizes = [2, 32], strides = [1, 1]} : vector<2x96xf32> to vector<2x32xf32>
    %987 = vector.broadcast %12 : vector<1x32xf32> to vector<2x32xf32>
    %988 = arith.addf %986, %987 : vector<2x32xf32>
    %989 = arith.mulf %976, %988 : vector<2x32xf32>
    %990 = arith.addf %985, %989 : vector<2x32xf32>
    %991 = math.tanh %990 : vector<2x32xf32>
    %cst_182 = arith.constant 1.000000e+00 : f32
    %992 = vector.broadcast %cst_182 : f32 to vector<2x32xf32>
    %993 = arith.subf %992, %984 : vector<2x32xf32>
    %994 = arith.mulf %993, %991 : vector<2x32xf32>
    %995 = arith.mulf %984, %926 : vector<2x32xf32>
    %996 = arith.addf %994, %995 : vector<2x32xf32>
    %997 = vector.shape_cast %967 : vector<2x1xi1> to vector<2x1xi1>
    %998 = vector.broadcast %997 : vector<2x1xi1> to vector<2x32xi1>
    %999 = arith.select %998, %996, %926 : vector<2x32xi1>, vector<2x32xf32>
    %cst_183 = arith.constant dense<0.000000e+00> : vector<2x96xf32>
    %1000 = tpu.matmul %999, %13, %cst_183 {dimension_numbers = #tpu.dot_dimension_numbers<[1], [0], [0], [1], [0, 0, 1, 1], [], []>} : vector<2x32xf32>, vector<32x96xf32>, vector<2x96xf32> -> vector<2x96xf32>
    %1001 = vector.broadcast %15 : vector<1x96xf32> to vector<2x96xf32>
    %1002 = arith.addf %1000, %1001 : vector<2x96xf32>
    %cst_184 = arith.constant dense<0.000000e+00> : vector<2x96xf32>
    %1003 = tpu.matmul %961, %14, %cst_184 {dimension_numbers = #tpu.dot_dimension_numbers<[1], [0], [0], [1], [0, 0, 1, 1], [], []>} : vector<2x32xf32>, vector<32x96xf32>, vector<2x96xf32> -> vector<2x96xf32>
    %1004 = vector.extract_strided_slice %1002 {offsets = [0, 0], sizes = [2, 32], strides = [1, 1]} : vector<2x96xf32> to vector<2x32xf32>
    %1005 = vector.extract_strided_slice %1003 {offsets = [0, 0], sizes = [2, 32], strides = [1, 1]} : vector<2x96xf32> to vector<2x32xf32>
    %1006 = arith.addf %1004, %1005 : vector<2x32xf32>
    %1007 = arith.negf %1006 : vector<2x32xf32>
    %1008 = math.exp %1007 : vector<2x32xf32>
    %cst_185 = arith.constant 1.000000e+00 : f32
    %1009 = vector.broadcast %cst_185 : f32 to vector<2x32xf32>
    %1010 = arith.addf %1009, %1008 : vector<2x32xf32>
    %1011 = arith.divf %1009, %1010 : vector<2x32xf32>
    %1012 = vector.extract_strided_slice %1002 {offsets = [0, 32], sizes = [2, 32], strides = [1, 1]} : vector<2x96xf32> to vector<2x32xf32>
    %1013 = vector.extract_strided_slice %1003 {offsets = [0, 32], sizes = [2, 32], strides = [1, 1]} : vector<2x96xf32> to vector<2x32xf32>
    %1014 = arith.addf %1012, %1013 : vector<2x32xf32>
    %1015 = arith.negf %1014 : vector<2x32xf32>
    %1016 = math.exp %1015 : vector<2x32xf32>
    %cst_186 = arith.constant 1.000000e+00 : f32
    %1017 = vector.broadcast %cst_186 : f32 to vector<2x32xf32>
    %1018 = arith.addf %1017, %1016 : vector<2x32xf32>
    %1019 = arith.divf %1017, %1018 : vector<2x32xf32>
    %1020 = vector.extract_strided_slice %1002 {offsets = [0, 64], sizes = [2, 32], strides = [1, 1]} : vector<2x96xf32> to vector<2x32xf32>
    %1021 = vector.extract_strided_slice %1003 {offsets = [0, 64], sizes = [2, 32], strides = [1, 1]} : vector<2x96xf32> to vector<2x32xf32>
    %1022 = vector.broadcast %16 : vector<1x32xf32> to vector<2x32xf32>
    %1023 = arith.addf %1021, %1022 : vector<2x32xf32>
    %1024 = arith.mulf %1011, %1023 : vector<2x32xf32>
    %1025 = arith.addf %1020, %1024 : vector<2x32xf32>
    %1026 = math.tanh %1025 : vector<2x32xf32>
    %cst_187 = arith.constant 1.000000e+00 : f32
    %1027 = vector.broadcast %cst_187 : f32 to vector<2x32xf32>
    %1028 = arith.subf %1027, %1019 : vector<2x32xf32>
    %1029 = arith.mulf %1028, %1026 : vector<2x32xf32>
    %1030 = arith.mulf %1019, %961 : vector<2x32xf32>
    %1031 = arith.addf %1029, %1030 : vector<2x32xf32>
    %1032 = vector.shape_cast %967 : vector<2x1xi1> to vector<2x1xi1>
    %1033 = vector.broadcast %1032 : vector<2x1xi1> to vector<2x32xi1>
    %1034 = arith.select %1033, %1031, %961 : vector<2x32xi1>, vector<2x32xf32>
    %cst_188 = arith.constant 0.000000e+00 : f32
    %1035 = vector.shape_cast %967 : vector<2x1xi1> to vector<2x1xi1>
    %1036 = vector.broadcast %1035 : vector<2x1xi1> to vector<2x32xi1>
    %1037 = vector.broadcast %cst_188 : f32 to vector<2x32xf32>
    %1038 = arith.select %1036, %1034, %1037 : vector<2x32xi1>, vector<2x32xf32>
    %c6_i32_189 = arith.constant 6 : i32
    %1039 = vector.broadcast %c6_i32_189 : i32 to vector<2x1xi32>
    %1040 = arith.cmpi sgt, %0, %1039 : vector<2x1xi32>
    %cst_190 = arith.constant dense<0.000000e+00> : vector<2x96xf32>
    %1041 = tpu.matmul %999, %10, %cst_190 {dimension_numbers = #tpu.dot_dimension_numbers<[1], [0], [0], [1], [0, 0, 1, 1], [], []>} : vector<2x32xf32>, vector<32x96xf32>, vector<2x96xf32> -> vector<2x96xf32>
    %1042 = vector.extract_strided_slice %598 {offsets = [0, 0], sizes = [2, 32], strides = [1, 1]} : vector<2x96xf32> to vector<2x32xf32>
    %1043 = vector.extract_strided_slice %1041 {offsets = [0, 0], sizes = [2, 32], strides = [1, 1]} : vector<2x96xf32> to vector<2x32xf32>
    %1044 = arith.addf %1042, %1043 : vector<2x32xf32>
    %1045 = arith.negf %1044 : vector<2x32xf32>
    %1046 = math.exp %1045 : vector<2x32xf32>
    %cst_191 = arith.constant 1.000000e+00 : f32
    %1047 = vector.broadcast %cst_191 : f32 to vector<2x32xf32>
    %1048 = arith.addf %1047, %1046 : vector<2x32xf32>
    %1049 = arith.divf %1047, %1048 : vector<2x32xf32>
    %1050 = vector.extract_strided_slice %598 {offsets = [0, 32], sizes = [2, 32], strides = [1, 1]} : vector<2x96xf32> to vector<2x32xf32>
    %1051 = vector.extract_strided_slice %1041 {offsets = [0, 32], sizes = [2, 32], strides = [1, 1]} : vector<2x96xf32> to vector<2x32xf32>
    %1052 = arith.addf %1050, %1051 : vector<2x32xf32>
    %1053 = arith.negf %1052 : vector<2x32xf32>
    %1054 = math.exp %1053 : vector<2x32xf32>
    %cst_192 = arith.constant 1.000000e+00 : f32
    %1055 = vector.broadcast %cst_192 : f32 to vector<2x32xf32>
    %1056 = arith.addf %1055, %1054 : vector<2x32xf32>
    %1057 = arith.divf %1055, %1056 : vector<2x32xf32>
    %1058 = vector.extract_strided_slice %598 {offsets = [0, 64], sizes = [2, 32], strides = [1, 1]} : vector<2x96xf32> to vector<2x32xf32>
    %1059 = vector.extract_strided_slice %1041 {offsets = [0, 64], sizes = [2, 32], strides = [1, 1]} : vector<2x96xf32> to vector<2x32xf32>
    %1060 = vector.broadcast %12 : vector<1x32xf32> to vector<2x32xf32>
    %1061 = arith.addf %1059, %1060 : vector<2x32xf32>
    %1062 = arith.mulf %1049, %1061 : vector<2x32xf32>
    %1063 = arith.addf %1058, %1062 : vector<2x32xf32>
    %1064 = math.tanh %1063 : vector<2x32xf32>
    %cst_193 = arith.constant 1.000000e+00 : f32
    %1065 = vector.broadcast %cst_193 : f32 to vector<2x32xf32>
    %1066 = arith.subf %1065, %1057 : vector<2x32xf32>
    %1067 = arith.mulf %1066, %1064 : vector<2x32xf32>
    %1068 = arith.mulf %1057, %999 : vector<2x32xf32>
    %1069 = arith.addf %1067, %1068 : vector<2x32xf32>
    %1070 = vector.shape_cast %1040 : vector<2x1xi1> to vector<2x1xi1>
    %1071 = vector.broadcast %1070 : vector<2x1xi1> to vector<2x32xi1>
    %1072 = arith.select %1071, %1069, %999 : vector<2x32xi1>, vector<2x32xf32>
    %cst_194 = arith.constant dense<0.000000e+00> : vector<2x96xf32>
    %1073 = tpu.matmul %1072, %13, %cst_194 {dimension_numbers = #tpu.dot_dimension_numbers<[1], [0], [0], [1], [0, 0, 1, 1], [], []>} : vector<2x32xf32>, vector<32x96xf32>, vector<2x96xf32> -> vector<2x96xf32>
    %1074 = vector.broadcast %15 : vector<1x96xf32> to vector<2x96xf32>
    %1075 = arith.addf %1073, %1074 : vector<2x96xf32>
    %cst_195 = arith.constant dense<0.000000e+00> : vector<2x96xf32>
    %1076 = tpu.matmul %1034, %14, %cst_195 {dimension_numbers = #tpu.dot_dimension_numbers<[1], [0], [0], [1], [0, 0, 1, 1], [], []>} : vector<2x32xf32>, vector<32x96xf32>, vector<2x96xf32> -> vector<2x96xf32>
    %1077 = vector.extract_strided_slice %1075 {offsets = [0, 0], sizes = [2, 32], strides = [1, 1]} : vector<2x96xf32> to vector<2x32xf32>
    %1078 = vector.extract_strided_slice %1076 {offsets = [0, 0], sizes = [2, 32], strides = [1, 1]} : vector<2x96xf32> to vector<2x32xf32>
    %1079 = arith.addf %1077, %1078 : vector<2x32xf32>
    %1080 = arith.negf %1079 : vector<2x32xf32>
    %1081 = math.exp %1080 : vector<2x32xf32>
    %cst_196 = arith.constant 1.000000e+00 : f32
    %1082 = vector.broadcast %cst_196 : f32 to vector<2x32xf32>
    %1083 = arith.addf %1082, %1081 : vector<2x32xf32>
    %1084 = arith.divf %1082, %1083 : vector<2x32xf32>
    %1085 = vector.extract_strided_slice %1075 {offsets = [0, 32], sizes = [2, 32], strides = [1, 1]} : vector<2x96xf32> to vector<2x32xf32>
    %1086 = vector.extract_strided_slice %1076 {offsets = [0, 32], sizes = [2, 32], strides = [1, 1]} : vector<2x96xf32> to vector<2x32xf32>
    %1087 = arith.addf %1085, %1086 : vector<2x32xf32>
    %1088 = arith.negf %1087 : vector<2x32xf32>
    %1089 = math.exp %1088 : vector<2x32xf32>
    %cst_197 = arith.constant 1.000000e+00 : f32
    %1090 = vector.broadcast %cst_197 : f32 to vector<2x32xf32>
    %1091 = arith.addf %1090, %1089 : vector<2x32xf32>
    %1092 = arith.divf %1090, %1091 : vector<2x32xf32>
    %1093 = vector.extract_strided_slice %1075 {offsets = [0, 64], sizes = [2, 32], strides = [1, 1]} : vector<2x96xf32> to vector<2x32xf32>
    %1094 = vector.extract_strided_slice %1076 {offsets = [0, 64], sizes = [2, 32], strides = [1, 1]} : vector<2x96xf32> to vector<2x32xf32>
    %1095 = vector.broadcast %16 : vector<1x32xf32> to vector<2x32xf32>
    %1096 = arith.addf %1094, %1095 : vector<2x32xf32>
    %1097 = arith.mulf %1084, %1096 : vector<2x32xf32>
    %1098 = arith.addf %1093, %1097 : vector<2x32xf32>
    %1099 = math.tanh %1098 : vector<2x32xf32>
    %cst_198 = arith.constant 1.000000e+00 : f32
    %1100 = vector.broadcast %cst_198 : f32 to vector<2x32xf32>
    %1101 = arith.subf %1100, %1092 : vector<2x32xf32>
    %1102 = arith.mulf %1101, %1099 : vector<2x32xf32>
    %1103 = arith.mulf %1092, %1034 : vector<2x32xf32>
    %1104 = arith.addf %1102, %1103 : vector<2x32xf32>
    %1105 = vector.shape_cast %1040 : vector<2x1xi1> to vector<2x1xi1>
    %1106 = vector.broadcast %1105 : vector<2x1xi1> to vector<2x32xi1>
    %1107 = arith.select %1106, %1104, %1034 : vector<2x32xi1>, vector<2x32xf32>
    %cst_199 = arith.constant 0.000000e+00 : f32
    %1108 = vector.shape_cast %1040 : vector<2x1xi1> to vector<2x1xi1>
    %1109 = vector.broadcast %1108 : vector<2x1xi1> to vector<2x32xi1>
    %1110 = vector.broadcast %cst_199 : f32 to vector<2x32xf32>
    %1111 = arith.select %1109, %1107, %1110 : vector<2x32xi1>, vector<2x32xf32>
    %c7_i32_200 = arith.constant 7 : i32
    %1112 = vector.broadcast %c7_i32_200 : i32 to vector<2x1xi32>
    %1113 = arith.cmpi sgt, %0, %1112 : vector<2x1xi32>
    %cst_201 = arith.constant dense<0.000000e+00> : vector<2x96xf32>
    %1114 = tpu.matmul %1072, %10, %cst_201 {dimension_numbers = #tpu.dot_dimension_numbers<[1], [0], [0], [1], [0, 0, 1, 1], [], []>} : vector<2x32xf32>, vector<32x96xf32>, vector<2x96xf32> -> vector<2x96xf32>
    %1115 = vector.extract_strided_slice %598 {offsets = [0, 0], sizes = [2, 32], strides = [1, 1]} : vector<2x96xf32> to vector<2x32xf32>
    %1116 = vector.extract_strided_slice %1114 {offsets = [0, 0], sizes = [2, 32], strides = [1, 1]} : vector<2x96xf32> to vector<2x32xf32>
    %1117 = arith.addf %1115, %1116 : vector<2x32xf32>
    %1118 = arith.negf %1117 : vector<2x32xf32>
    %1119 = math.exp %1118 : vector<2x32xf32>
    %cst_202 = arith.constant 1.000000e+00 : f32
    %1120 = vector.broadcast %cst_202 : f32 to vector<2x32xf32>
    %1121 = arith.addf %1120, %1119 : vector<2x32xf32>
    %1122 = arith.divf %1120, %1121 : vector<2x32xf32>
    %1123 = vector.extract_strided_slice %598 {offsets = [0, 32], sizes = [2, 32], strides = [1, 1]} : vector<2x96xf32> to vector<2x32xf32>
    %1124 = vector.extract_strided_slice %1114 {offsets = [0, 32], sizes = [2, 32], strides = [1, 1]} : vector<2x96xf32> to vector<2x32xf32>
    %1125 = arith.addf %1123, %1124 : vector<2x32xf32>
    %1126 = arith.negf %1125 : vector<2x32xf32>
    %1127 = math.exp %1126 : vector<2x32xf32>
    %cst_203 = arith.constant 1.000000e+00 : f32
    %1128 = vector.broadcast %cst_203 : f32 to vector<2x32xf32>
    %1129 = arith.addf %1128, %1127 : vector<2x32xf32>
    %1130 = arith.divf %1128, %1129 : vector<2x32xf32>
    %1131 = vector.extract_strided_slice %598 {offsets = [0, 64], sizes = [2, 32], strides = [1, 1]} : vector<2x96xf32> to vector<2x32xf32>
    %1132 = vector.extract_strided_slice %1114 {offsets = [0, 64], sizes = [2, 32], strides = [1, 1]} : vector<2x96xf32> to vector<2x32xf32>
    %1133 = vector.broadcast %12 : vector<1x32xf32> to vector<2x32xf32>
    %1134 = arith.addf %1132, %1133 : vector<2x32xf32>
    %1135 = arith.mulf %1122, %1134 : vector<2x32xf32>
    %1136 = arith.addf %1131, %1135 : vector<2x32xf32>
    %1137 = math.tanh %1136 : vector<2x32xf32>
    %cst_204 = arith.constant 1.000000e+00 : f32
    %1138 = vector.broadcast %cst_204 : f32 to vector<2x32xf32>
    %1139 = arith.subf %1138, %1130 : vector<2x32xf32>
    %1140 = arith.mulf %1139, %1137 : vector<2x32xf32>
    %1141 = arith.mulf %1130, %1072 : vector<2x32xf32>
    %1142 = arith.addf %1140, %1141 : vector<2x32xf32>
    %1143 = vector.shape_cast %1113 : vector<2x1xi1> to vector<2x1xi1>
    %1144 = vector.broadcast %1143 : vector<2x1xi1> to vector<2x32xi1>
    %1145 = arith.select %1144, %1142, %1072 : vector<2x32xi1>, vector<2x32xf32>
    %cst_205 = arith.constant dense<0.000000e+00> : vector<2x96xf32>
    %1146 = tpu.matmul %1145, %13, %cst_205 {dimension_numbers = #tpu.dot_dimension_numbers<[1], [0], [0], [1], [0, 0, 1, 1], [], []>} : vector<2x32xf32>, vector<32x96xf32>, vector<2x96xf32> -> vector<2x96xf32>
    %1147 = vector.broadcast %15 : vector<1x96xf32> to vector<2x96xf32>
    %1148 = arith.addf %1146, %1147 : vector<2x96xf32>
    %cst_206 = arith.constant dense<0.000000e+00> : vector<2x96xf32>
    %1149 = tpu.matmul %1107, %14, %cst_206 {dimension_numbers = #tpu.dot_dimension_numbers<[1], [0], [0], [1], [0, 0, 1, 1], [], []>} : vector<2x32xf32>, vector<32x96xf32>, vector<2x96xf32> -> vector<2x96xf32>
    %1150 = vector.extract_strided_slice %1148 {offsets = [0, 0], sizes = [2, 32], strides = [1, 1]} : vector<2x96xf32> to vector<2x32xf32>
    %1151 = vector.extract_strided_slice %1149 {offsets = [0, 0], sizes = [2, 32], strides = [1, 1]} : vector<2x96xf32> to vector<2x32xf32>
    %1152 = arith.addf %1150, %1151 : vector<2x32xf32>
    %1153 = arith.negf %1152 : vector<2x32xf32>
    %1154 = math.exp %1153 : vector<2x32xf32>
    %cst_207 = arith.constant 1.000000e+00 : f32
    %1155 = vector.broadcast %cst_207 : f32 to vector<2x32xf32>
    %1156 = arith.addf %1155, %1154 : vector<2x32xf32>
    %1157 = arith.divf %1155, %1156 : vector<2x32xf32>
    %1158 = vector.extract_strided_slice %1148 {offsets = [0, 32], sizes = [2, 32], strides = [1, 1]} : vector<2x96xf32> to vector<2x32xf32>
    %1159 = vector.extract_strided_slice %1149 {offsets = [0, 32], sizes = [2, 32], strides = [1, 1]} : vector<2x96xf32> to vector<2x32xf32>
    %1160 = arith.addf %1158, %1159 : vector<2x32xf32>
    %1161 = arith.negf %1160 : vector<2x32xf32>
    %1162 = math.exp %1161 : vector<2x32xf32>
    %cst_208 = arith.constant 1.000000e+00 : f32
    %1163 = vector.broadcast %cst_208 : f32 to vector<2x32xf32>
    %1164 = arith.addf %1163, %1162 : vector<2x32xf32>
    %1165 = arith.divf %1163, %1164 : vector<2x32xf32>
    %1166 = vector.extract_strided_slice %1148 {offsets = [0, 64], sizes = [2, 32], strides = [1, 1]} : vector<2x96xf32> to vector<2x32xf32>
    %1167 = vector.extract_strided_slice %1149 {offsets = [0, 64], sizes = [2, 32], strides = [1, 1]} : vector<2x96xf32> to vector<2x32xf32>
    %1168 = vector.broadcast %16 : vector<1x32xf32> to vector<2x32xf32>
    %1169 = arith.addf %1167, %1168 : vector<2x32xf32>
    %1170 = arith.mulf %1157, %1169 : vector<2x32xf32>
    %1171 = arith.addf %1166, %1170 : vector<2x32xf32>
    %1172 = math.tanh %1171 : vector<2x32xf32>
    %cst_209 = arith.constant 1.000000e+00 : f32
    %1173 = vector.broadcast %cst_209 : f32 to vector<2x32xf32>
    %1174 = arith.subf %1173, %1165 : vector<2x32xf32>
    %1175 = arith.mulf %1174, %1172 : vector<2x32xf32>
    %1176 = arith.mulf %1165, %1107 : vector<2x32xf32>
    %1177 = arith.addf %1175, %1176 : vector<2x32xf32>
    %1178 = vector.shape_cast %1113 : vector<2x1xi1> to vector<2x1xi1>
    %1179 = vector.broadcast %1178 : vector<2x1xi1> to vector<2x32xi1>
    %1180 = arith.select %1179, %1177, %1107 : vector<2x32xi1>, vector<2x32xf32>
    %cst_210 = arith.constant 0.000000e+00 : f32
    %1181 = vector.shape_cast %1113 : vector<2x1xi1> to vector<2x1xi1>
    %1182 = vector.broadcast %1181 : vector<2x1xi1> to vector<2x32xi1>
    %1183 = vector.broadcast %cst_210 : f32 to vector<2x32xf32>
    %1184 = arith.select %1182, %1180, %1183 : vector<2x32xi1>, vector<2x32xf32>
    %1185 = tpu.concatenate %673, %746, %819, %892, %965, %1038, %1111, %1184 in 0 : vector<2x32xf32>, vector<2x32xf32>, vector<2x32xf32>, vector<2x32xf32>, vector<2x32xf32>, vector<2x32xf32>, vector<2x32xf32>, vector<2x32xf32> -> vector<16x32xf32>
    %cst_211 = arith.constant dense<0.000000e+00> : vector<16x4xf32>
    %1186 = tpu.matmul %1185, %19, %cst_211 {dimension_numbers = #tpu.dot_dimension_numbers<[1], [0], [0], [1], [0, 0, 1, 1], [], []>} : vector<16x32xf32>, vector<32x4xf32>, vector<16x4xf32> -> vector<16x4xf32>
    %1187 = vector.broadcast %20 : vector<1x4xf32> to vector<16x4xf32>
    %1188 = arith.addf %1186, %1187 : vector<16x4xf32>
    %c0_212 = arith.constant 0 : index
    %c0_213 = arith.constant 0 : index
    %1189 = vector.load %arg22[%c0_212, %c0_213] : memref<16x4xf32, #tpu.memory_space<vmem>>, vector<16x4xf32>
    tpu.vector_store %arg22[%c0_212, %c0_213], %1188 {strides = array<i32>} : memref<16x4xf32, #tpu.memory_space<vmem>>, vector<16x4xf32>,
    return
  }
}

</mosaic_0001>

<bundles_post_ra>
// kernel: forward.1
= control target key start
LH: loop header
LB: loop body
LE: loop exit
PB: predicated region body
PF: predicated region fallthrough
CT: control target
= control target key end

     0   :  { %s4413_s0 = inlined_call_operand.vmem [shape: f32[16,4], index: 0, kind: input, shape index: {}]   ;;  %s4414_s1 = inlined_call_operand.vmem [shape: s32[2,1], index: 1, kind: input, shape index: {}]   ;;  %s4415_s2 = inlined_call_operand.vmem [shape: f32[4,96], index: 2, kind: input, shape index: {}]   ;;  %s4416_s3 = inlined_call_operand.vmem [shape: f32[32,96], index: 3, kind: input, shape index: {}]   ;;  %s4417_s4 = inlined_call_operand.vmem [shape: f32[1,96], index: 4, kind: input, shape index: {}]   ;;  %s4418_s5 = inlined_call_operand.vmem [shape: f32[1,32], index: 5, kind: input, shape index: {}]   ;;  %s4419_s6 = inlined_call_operand.vmem [shape: f32[32,96], index: 6, kind: input, shape index: {}]   ;;  %s4420_s7 = inlined_call_operand.hbm [shape: f32[32,96], index: 7, kind: input, shape index: {}]   ;;  %s4421_s8 = inlined_call_operand.vmem [shape: f32[1,96], index: 8, kind: input, shape index: {}]   ;;  %s4422_s9 = inlined_call_operand.vmem [shape: f32[1,32], index: 9, kind: input, shape index: {}]   ;;  %s4423_s10 = inlined_call_operand.vmem [shape: f32[32,8], index: 10, kind: input, shape index: {}]   ;;  %s4424_s11 = inlined_call_operand.vmem [shape: f32[1,8], index: 11, kind: input, shape index: {}]   ;;  %s4425_s12 = inlined_call_operand.vmem [shape: f32[8,96], index: 12, kind: input, shape index: {}]   ;;  %s4426_s13 = inlined_call_operand.hbm [shape: f32[32,96], index: 13, kind: input, shape index: {}]   ;;  %s4427_s14 = inlined_call_operand.vmem [shape: f32[1,96], index: 14, kind: input, shape index: {}]   ;;  %s4428_s15 = inlined_call_operand.vmem [shape: f32[1,32], index: 15, kind: input, shape index: {}]   ;;  %s4429_s16 = inlined_call_operand.hbm [shape: f32[32,96], index: 16, kind: input, shape index: {}]   ;;  %s4430_s17 = inlined_call_operand.hbm [shape: f32[32,96], index: 17, kind: input, shape index: {}]   ;;  %s4431_s18 = inlined_call_operand.vmem [shape: f32[1,96], index: 18, kind: input, shape index: {}]   ;;  %s4432_s19 = inlined_call_operand.vmem [shape: f32[1,32], index: 19, kind: input, shape index: {}]   ;;  %s4433_s20 = inlined_call_operand.vmem [shape: f32[32,4], index: 20, kind: input, shape index: {}]   ;;  %s4434_s21 = inlined_call_operand.vmem [shape: f32[1,4], index: 21, kind: input, shape index: {}]   ;;  %s4435_s22 = inlined_call_operand.vmem [shape: f32[16,4], index: 22, kind: output, shape index: {}]  }
   0x1   :  { %4440 = sst [smem:[#allocation12_spill]] %s4413_s0 }
   0x2   :  { %4441 = sst [smem:[#allocation13_spill]] %s4414_s1 }
   0x3   :  { %4442 = sst [smem:[#allocation14_spill]] %s4415_s2 }
   0x4   :  { %4443 = sst [smem:[#allocation15_spill]] %s4416_s3 }
   0x5   :  { %4444 = sst [smem:[#allocation16_spill]] %s4417_s4 }
   0x6   :  { %4445 = sst [smem:[#allocation17_spill]] %s4418_s5 }
   0x7   :  { %4446 = sst [smem:[#allocation18_spill]] %s4419_s6 }
   0x8   :  { %27 = vsyncpa [#allocation3], 0 }
   0x9   :  { %28 = vsyncpa [#allocation5], 0 }
   0xa   :  { %29 = vsyncpa [#allocation8], 0  ;;  %s71_s29 = sshll.u32 %s4426_s13, 4  ;;  %s3326_s30 = smov [#allocation4]   ;;  %s72_s29 = int_to_ptr.hbm [resolvable:$true] %s71_s29 }
   0xb   :  { %s73_s4 = sshll.u32 %s3326_s30, 4  ;;  %s48_s1 = sshll.u32 %s4420_s7, 4  ;;  %s74_s4 = int_to_ptr.vmem [resolvable:$true] %s73_s4  ;;  %s49_s1 = int_to_ptr.hbm [resolvable:$true] %s48_s1 }
   0xc   :  { %s3327_s5 = smov 128   ;;  %s3328_s24 = smov 8  }
   0xd   :  { %79 = dma.hbm_to_vmem [thread:$0]  %s72_s29, 512, %s74_s4, [#allocation5], %s3327_s5, %s3327_s5, %s3328_s24  }
   0xe   :  { %s3329_s6 = smov [#allocation2]   ;;  %s88_s27 = sshll.u32 %s4429_s16, 4  ;;  %s89_s27 = int_to_ptr.hbm [resolvable:$true] %s88_s27 }
   0xf   :  { %s50_s25 = sshll.u32 %s3329_s6, 4  ;;  %s101_s28 = sshll.u32 %s4430_s17, 4  ;;  %s51_s25 = int_to_ptr.vmem [resolvable:$true] %s50_s25  ;;  %s102_s28 = int_to_ptr.hbm [resolvable:$true] %s101_s28 }
  0x10   :  { %56 = dma.hbm_to_vmem [thread:$0]  %s49_s1, 512, %s51_s25, [#allocation3], %s3327_s5, %s3327_s5, %s3328_s24  }
  0x11   :  { %s3330_s30 = smov [#allocation6]   ;;  %s3331_s7 = smov [#allocation7]  }
  0x12   :  { %s90_s0 = sshll.u32 %s3330_s30, 4  ;;  %s103_s29 = sshll.u32 %s3331_s7, 4  ;;  %s91_s0 = int_to_ptr.vmem [resolvable:$true] %s90_s0  ;;  %s104_s29 = int_to_ptr.vmem [resolvable:$true] %s103_s29 }
  0x13   :  { %96 = dma.hbm_to_vmem [thread:$0]  %s89_s27, 512, %s91_s0, [#allocation5], %s3327_s5, %s3327_s5, %s3328_s24  }
  0x14   :  { %109 = dma.hbm_to_vmem [thread:$0]  %s102_s28, 512, %s104_s29, [#allocation8], %s3327_s5, %s3327_s5, %s3328_s24  }
  0x15   :  { %3320 = dma.done.wait [#allocation3], 512  }
  0x16   :  { %3321 = vsyncadd [#allocation3], 4294966784 }
  0x17   :  { %3322 = dma.done.wait [#allocation5], 1024  }
  0x18   :  { %3323 = vsyncadd [#allocation5], 4294966272 }
  0x19   :  { %3324 = dma.done.wait [#allocation8], 512  }
  0x1a   :  { %3325 = vsyncadd [#allocation8], 4294966784  ;;  %vm191_vm0 = vcmask 1043456   ;;  %vm184_vm1 = vcmask 31744   ;;  %s4447_s17 = sld [smem:[#allocation14_spill]]  ;;  %s3332_s29 = smov 64  }
  0x1b   :  { %s4448_s6 = sld [smem:[#allocation12_spill]]  ;;  %v3333_v8 = vmov 0.0   ;;  %v3334_v34 = vmov 0   ;;  %s3335_s5 = smov 96   ;;  %v3539_v39 = vld [vmem:[#allocation2 + $0x18] sm:$0xff]  ;;  %v3541_v40 = vld [vmem:[#allocation2 + $0x10] sm:$0xff] }
  0x1c   :  { %s4449_s2 = sld [smem:[#allocation15_spill]]  ;;  %3012 = vset.pattern.permute.xlu2 %v3334_v34  ;;  %3013 = vset.pattern.permute.xlu1 %v3334_v34  ;;  %v3017_v41 = vld [vmem:[%s4422_s9] ss:$0 sm:$0xff]  ;;  %v3552_v43 = vld [vmem:[#allocation2 + $0x8] sm:$0xff]  ;;  %vm219_vm8 = vcmask 261120  }
  0x1d   :  { %s4450_s30 = sld [smem:[#allocation17_spill]]  ;;  %3014 = vset.pattern.permute.xlu0 %v3334_v34  ;;  %334 = vmatpush.msra.mxu3 %v3539_v39  ;;  %v3568_v46 = vld [vmem:[#allocation2] sm:$0xff] }
  0x1e   :  { %s4451_s1 = sld [smem:[#allocation16_spill]]  ;;  %v3631_v62 = vld [vmem:[%s4421_s8] ss:$0 sm:$0xff] }
  0x1f   :  { %s4452_s26 = sld [smem:[#allocation13_spill]]  ;;  %335 = vmatpush.msra.mxu3 %v3541_v40 }
  0x20   :  { %v135_v0 = vld [vmem:[%s4447_s17] sm:$0xf]  ;;  %s4453_s28 = sld [smem:[#allocation18_spill]] }
  0x21   :  { %v180_v1 = vld [vmem:[%s4448_s6 + $0x8] sm:$0xff]  ;;  %3000 = vmatpush.msk.msra.mxu1 %vm191_vm0, %v135_v0  ;;  %2917 = vmatpush.msk.msra.mxu0 %vm191_vm0, %v135_v0  ;;  %v179_v3 = vld [vmem:[%s4448_s6] sm:$0xff] }
  0x22   :  { %v3473_v2 = vld [vmem:[%s4449_s2 + $0x18] sm:$0xff]  ;;  %2919 = vmatmul.msk.f32.vlgmr.msra.gmra.mxu1 %vm184_vm1, %v180_v1  ;;  %v3484_v4 = vld [vmem:[%s4449_s2 + $0x10] sm:$0xff]  ;;  %2918 = vmatmul.msk.f32.vlgmr.msra.gmra.mxu0 %vm184_vm1, %v179_v3  ;;  %v3494_v6 = vld [vmem:[%s4449_s2 + $0x8] sm:$0xff] }
  0x23   :  { %v3015_v5 = vld [vmem:[%s4450_s30] ss:$0 sm:$0xff]  ;;  %235 = vmatpush.msrb.mxu1 %v3473_v2  ;;  %569 = vmatpush.msrb.mxu0 %v3473_v2 }
  0x24   :  { %265 = vrot.lane.b32.xlu0 %v3015_v5, %s3332_s29  ;;  %v3503_v7 = vld [vmem:[%s4449_s2] sm:$0xff]  ;;  %336 = vmatpush.msra.mxu3 %v3552_v43 }
  0x25   :  { %236 = vmatpush.msrb.mxu1 %v3484_v4  ;;  %570 = vmatpush.msrb.mxu0 %v3484_v4  ;;  %v3016_v9 = vld [vmem:[%s4451_s1] ss:$0 sm:$0xff]  ;;  %s3336_s1 = smov 32  }
  0x26   :  { %v3530_v33 = vld [vmem:[%s4452_s26] sm:$0x3]  ;;  %v3550_v42 = vld [vmem:[%s4453_s28 + $0x18] sm:$0xff]  ;;  %v3558_v44 = vld [vmem:[%s4453_s28 + $0x10] sm:$0xff]  ;;  %337 = vmatpush.msra.mxu3 %v3568_v46 }
  0x27   :  { %237 = vmatpush.msrb.mxu1 %v3494_v6  ;;  %571 = vmatpush.msrb.mxu0 %v3494_v6  ;;  %vm218_vm6 = vcmp.gt.s32.totalorder %v3530_v33, 0  ;;  %v3566_v45 = vld [vmem:[%s4453_s28 + $0x8] sm:$0xff]  ;;  %v3576_v47 = vld [vmem:[%s4453_s28] sm:$0xff] }
  0x28   :  { %v288_v35 = vsel %vm218_vm6, 1, %v3334_v34  ;;  %314 = vmatpush.msra.mxu2 %v3550_v42  ;;  %338 = vmatmul.f32.vlgmr.msra.gmra.mxu3 %v3333_v8 }
  0x29   :  { %238 = vmatpush.msrb.mxu1 %v3503_v7  ;;  %572 = vmatpush.msrb.mxu0 %v3503_v7 }
  0x2a   :  { %239 = vmatmul.f32.vlgmr.msrb.gmra.mxu1 %v3333_v8  ;;  %290 = vperm.xlu2 %3012, %v288_v35  }
  0x2b   :  { %401 = vmatpush.msra.mxu1 %v3473_v2  ;;  %315 = vmatpush.msra.mxu2 %v3558_v44 }
  0x2c   :  { %820 = vmatpush.msra.mxu0 %v3550_v42  ;;  %507 = vmatpush.msrb.mxu3 %v3539_v39 }
  0x2d   :  { %402 = vmatpush.msra.mxu1 %v3484_v4  ;;  %316 = vmatpush.msra.mxu2 %v3566_v45 }
  0x2e   :  { %821 = vmatpush.msra.mxu0 %v3558_v44  ;;  %508 = vmatpush.msrb.mxu3 %v3541_v40 }
  0x2f   :  { %403 = vmatpush.msra.mxu1 %v3494_v6  ;;  %317 = vmatpush.msra.mxu2 %v3576_v47 }
  0x30   :  { %822 = vmatpush.msra.mxu0 %v3566_v45  ;;  %509 = vmatpush.msrb.mxu3 %v3552_v43 }
  0x31   :  { %404 = vmatpush.msra.mxu1 %v3503_v7  ;;  %482 = vmatpush.msrb.mxu2 %v3550_v42 }
  0x32   :  { %823 = vmatpush.msra.mxu0 %v3576_v47  ;;  %510 = vmatpush.msrb.mxu3 %v3568_v46 }
  0x33   :  { %651 = vmatpush.msrb.mxu1 %v3550_v42  ;;  %483 = vmatpush.msrb.mxu2 %v3558_v44 }
  0x34   :  { %738 = vmatpush.msra.mxu3 %v3473_v2 }
  0x35   :  { %652 = vmatpush.msrb.mxu1 %v3558_v44  ;;  %484 = vmatpush.msrb.mxu2 %v3566_v45 }
  0x36   :  { %739 = vmatpush.msra.mxu3 %v3484_v4 }
  0x37   :  { %653 = vmatpush.msrb.mxu1 %v3566_v45  ;;  %485 = vmatpush.msrb.mxu2 %v3576_v47 }
  0x38   :  { %740 = vmatpush.msra.mxu3 %v3494_v6 }
  0x39   :  { %654 = vmatpush.msrb.mxu1 %v3576_v47 }
  0x3a   :  { %741 = vmatpush.msra.mxu3 %v3503_v7 }
  0x84   :  { %v3600_v49 = vpop.permute.xlu2 %290 }
  0x85   :  { %vm292_vm7 = vcmp.eq.s32.totalorder %v3600_v49, 1 }
  0x96   :  { %v3519_v12 = vpop.permute.xlu0 %265 }
  0x9f   :  { %v215_v10 = vpop.f32.mrf.mxu1  ;;  %v212_v15 = vpop.f32.mrf.mxu0 }
  0xa0   :  { %v3517_v11 = vadd.f32 %v3016_v9, %v215_v10  ;;  %v3523_v16 = vadd.f32 %v3016_v9, %v212_v15 }
  0xa7   :  { %v240_v13 = vpop.f32.mrf.mxu1 }
  0xa8   :  { %v268_v14 = vadd.f32 %v3519_v12, %v240_v13  ;;  %v243_v17 = vadd.f32 %v240_v13, %v3523_v16 }
  0xaa   :  { %270 = vrot.lane.b32.xlu0 %v268_v14, %s3332_s29  ;;  %v2920_v18 = vmul.f32 -1.442695, %v243_v17 }
  0xab   :  { %v339_v57 = vpop.f32.mrf.mxu3 }
  0xac   :  { %3025 = vpow2.f32 %v2920_v18 }
  0xb2   :  { %v3026_v19 = vpop.eup %3025  ;;  %364 = vrot.lane.b32.xlu0 %v3017_v41, %s3332_s29 }
  0xb3   :  { %v247_v20 = vadd.f32 1.0, %v3026_v19 }
  0xb5   :  { %3027 = vrcp.f32 %v247_v20  ;;  %v259_v26 = vand.u32 2147483648, %v247_v20  ;;  %vm253_vm3 = vweird.f32 %v247_v20  ;;  %v257_v27 = vand.u32 2147483647, %v247_v20 }
  0xb7   :  { %v260_v29 = vor.u32 1.1754944e-38, %v259_v26  ;;  %vm258_vm5 = vcmp.eq.f32.partialorder %v257_v27, 8.507059e+37 }
  0xbb   :  { %v3028_v21 = vpop.eup %3027 }
  0xbc   :  { %v249_v22 = vmul.f32 %v3028_v21, %v247_v20  ;;  %vm254_vm2 = vweird.f32 %v3028_v21 }
  0xbd   :  { %vm255_vm4 = vmor %vm253_vm3, %vm254_vm2  ;;  %vm388_vm3 = vcmp.gt.s32.totalorder %v3530_v33, 1 }
  0xbe   :  { %v250_v23 = vsub.f32 1.0, %v249_v22 }
  0xc0   :  { %v251_v24 = vmul.f32 %v3028_v21, %v250_v23 }
  0xc2   :  { %v252_v25 = vadd.f32 %v3028_v21, %v251_v24 }
  0xc4   :  { %v256_v28 = vsel %vm255_vm4, %v3028_v21, %v252_v25 }
  0xc5   :  { %v261_v31 = vsel %vm258_vm5, %v260_v29, %v256_v28 }
  0xc6   :  { %v280_v48 = vsub.f32 1.0, %v261_v31  ;;  %v286_v51 = vmul.f32 0.0, %v261_v31 }
 0x11c   :  { %v271_v30 = vpop.permute.xlu0 %270 }
 0x11d   :  { %v273_v32 = vmul.f32 %v271_v30, %v261_v31 }
 0x11f   :  { %275 = vrot.lane.b32.xlu1 %v273_v32, %s3332_s29 }
 0x124   :  { %v3623_v56 = vpop.permute.xlu0 %364 }
 0x125   :  { %v367_v58 = vadd.f32 %v3623_v56, %v339_v57 }
 0x191   :  { %v276_v36 = vpop.permute.xlu1 %275 }
 0x192   :  { %v278_v37 = vadd.f32 %v276_v36, %v3523_v16 }
 0x194   :  { %3029 = vtanh.f32 %v278_v37 }
 0x19a   :  { %v3030_v38 = vpop.eup %3029 }
 0x19b   :  { %282 = vrot.lane.b32.xlu1 %v3030_v38, %s3335_s5 }
 0x20d   :  { %v283_v50 = vpop.permute.xlu1 %282 }
 0x20e   :  { %v285_v52 = vmul.f32 %v283_v50, %v280_v48 }
 0x210   :  { %v287_v53 = vadd.f32 %v286_v51, %v285_v52 }
 0x212   :  { %v3605_v54 = vsel %vm292_vm7, %v287_v53, 0.0 }
 0x213   :  { %298 = vrot.lane.b32.xlu2 %v3605_v54, %s3335_s5 }
 0x21b   :  { %369 = vrot.lane.b32.xlu2 %v367_v58, %s3332_s29 }
 0x26d   :  { %v3609_v55 = vpop.permute.xlu2 %298 }
 0x26e   :  { %2921 = vmatmul.msk.f32.vlgmr.msra.gmra.mxu2 %vm219_vm8, %v3609_v55  ;;  %2923 = vmatmul.msk.f32.vlgmr.msra.gmra.mxu1 %vm219_vm8, %v3609_v55 }
 0x26f   :  { %676 = vmatpush.msra.mxu2 %v3539_v39  ;;  %845 = vmatpush.msra.mxu1 %v3539_v39 }
 0x271   :  { %677 = vmatpush.msra.mxu2 %v3541_v40  ;;  %846 = vmatpush.msra.mxu1 %v3541_v40 }
 0x273   :  { %678 = vmatpush.msra.mxu2 %v3552_v43  ;;  %847 = vmatpush.msra.mxu1 %v3552_v43 }
 0x275   :  { %679 = vmatpush.msra.mxu2 %v3568_v46  ;;  %848 = vmatpush.msra.mxu1 %v3568_v46  ;;  %v370_v21 = vpop.permute.xlu2 %369 }
 0x2eb   :  { %v406_v59 = vpop.f32.mrf.mxu1 }
 0x2ec   :  { %v432_v60 = vadd.f32 %v406_v59, %v3519_v12  ;;  %v410_v25 = vrot.slane %v406_v59, 6 }
 0x2ee   :  { %v434_v61 = vrot.slane %v432_v60, 6  ;;  %v412_v26 = vadd.f32 %v410_v25, %v3523_v16 }
 0x2f0   :  { %435 = vrot.lane.b32.xlu1 %v434_v61, %s3332_s29  ;;  %v2924_v27 = vmul.f32 -1.442695, %v412_v26 }
 0x2f1   :  { %v319_v63 = vpop.f32.mrf.mxu2 }
 0x2f2   :  { %v320_v0 = vadd.f32 %v3631_v62, %v319_v63  ;;  %v455_v63 = vsel %vm388_vm3, 1, %v3334_v34 }
 0x2f4   :  { %v342_v1 = vadd.f32 %v339_v57, %v320_v0 }
 0x2f6   :  { %v2922_v3 = vmul.f32 -1.442695, %v342_v1 }
 0x2f8   :  { %3031 = vpow2.f32 %v2922_v3 }
 0x2fe   :  { %v3032_v5 = vpop.eup %3031 }
 0x2ff   :  { %v346_v9 = vadd.f32 1.0, %v3032_v5 }
 0x301   :  { %3033 = vrcp.f32 %v346_v9  ;;  %v358_v15 = vand.u32 2147483648, %v346_v9  ;;  %v356_v18 = vand.u32 2147483647, %v346_v9  ;;  %vm352_vm10 = vweird.f32 %v346_v9 }
 0x302   :  { %3035 = vpow2.f32 %v2924_v27 }
 0x303   :  { %v359_v20 = vor.u32 1.1754944e-38, %v358_v15  ;;  %vm357_vm12 = vcmp.eq.f32.partialorder %v356_v18, 8.507059e+37 }
 0x307   :  { %v3034_v10 = vpop.eup %3033 }
 0x308   :  { %v348_v13 = vmul.f32 %v3034_v10, %v346_v9  ;;  %vm353_vm9 = vweird.f32 %v3034_v10  ;;  %v3036_v28 = vpop.eup %3035 }
 0x309   :  { %vm354_vm11 = vmor %vm352_vm10, %vm353_vm9  ;;  %v416_v29 = vadd.f32 1.0, %v3036_v28 }
 0x30a   :  { %v349_v14 = vsub.f32 1.0, %v348_v13  ;;  %v451_v13 = vrot.slane %v3605_v54, 6 }
 0x30b   :  { %3037 = vrcp.f32 %v416_v29  ;;  %v428_v37 = vand.u32 2147483648, %v416_v29  ;;  %vm422_vm14 = vweird.f32 %v416_v29  ;;  %v426_v38 = vand.u32 2147483647, %v416_v29 }
 0x30c   :  { %v350_v17 = vmul.f32 %v3034_v10, %v349_v14 }
 0x30d   :  { %v429_v48 = vor.u32 1.1754944e-38, %v428_v37  ;;  %vm427_vm2 = vcmp.eq.f32.partialorder %v426_v38, 8.507059e+37 }
 0x30e   :  { %v351_v19 = vadd.f32 %v3034_v10, %v350_v17 }
 0x310   :  { %v355_v22 = vsel %vm354_vm11, %v3034_v10, %v351_v19 }
 0x311   :  { %v360_v23 = vsel %vm357_vm12, %v359_v20, %v355_v22  ;;  %v3038_v30 = vpop.eup %3037 }
 0x312   :  { %v372_v24 = vmul.f32 %v370_v21, %v360_v23  ;;  %v418_v31 = vmul.f32 %v3038_v30, %v416_v29  ;;  %vm423_vm13 = vweird.f32 %v3038_v30  ;;  %v379_v1 = vsub.f32 1.0, %v360_v23 }
 0x313   :  { %vm424_vm15 = vmor %vm422_vm14, %vm423_vm13  ;;  %v385_v5 = vmul.f32 0.0, %v360_v23 }
 0x314   :  { %374 = vrot.lane.b32.xlu1 %v372_v24, %s3332_s29  ;;  %v419_v32 = vsub.f32 1.0, %v418_v31 }
 0x316   :  { %v420_v35 = vmul.f32 %v3038_v30, %v419_v32 }
 0x318   :  { %v421_v36 = vadd.f32 %v3038_v30, %v420_v35 }
 0x31a   :  { %v425_v41 = vsel %vm424_vm15, %v3038_v30, %v421_v36  ;;  %vm556_vm15 = vcmp.gt.s32.totalorder %v3530_v33, 2 }
 0x31b   :  { %v430_v51 = vsel %vm427_vm2, %v429_v48, %v425_v41 }
 0x31c   :  { %457 = vperm.xlu1 %3013, %v455_v63   ;;  %v445_v14 = vsub.f32 1.0, %v430_v51  ;;  %v453_v18 = vmul.f32 %v451_v13, %v430_v51 }
 0x362   :  { %v436_v50 = vpop.permute.xlu1 %435 }
 0x363   :  { %v438_v52 = vmul.f32 %v436_v50, %v430_v51 }
 0x365   :  { %440 = vrot.lane.b32.xlu0 %v438_v52, %s3332_s29 }
 0x386   :  { %v375_v53 = vpop.permute.xlu1 %374 }
 0x387   :  { %v377_v57 = vadd.f32 %v375_v53, %v320_v0 }
 0x389   :  { %3039 = vtanh.f32 %v377_v57 }
 0x38e   :  { %v3656_v54 = vpop.permute.xlu1 %457 }
 0x38f   :  { %v3040_v58 = vpop.eup %3039  ;;  %vm459_vm4 = vcmp.eq.s32.totalorder %v3656_v54, 1 }
 0x390   :  { %381 = vrot.lane.b32.xlu0 %v3040_v58, %s3335_s5 }
 0x3d7   :  { %v441_v59 = vpop.permute.xlu0 %440 }
 0x3d8   :  { %v443_v60 = vadd.f32 %v441_v59, %v3523_v16 }
 0x3da   :  { %3041 = vtanh.f32 %v443_v60 }
 0x3e0   :  { %v3042_v61 = vpop.eup %3041 }
 0x3e1   :  { %447 = vrot.lane.b32.xlu2 %v3042_v61, %s3335_s5 }
 0x402   :  { %v382_v3 = vpop.permute.xlu0 %381 }
 0x403   :  { %v384_v0 = vmul.f32 %v382_v3, %v379_v1 }
 0x405   :  { %v386_v9 = vadd.f32 %v385_v5, %v384_v0 }
 0x407   :  { %v3645_v10 = vsel %vm292_vm7, %v386_v9, 0.0 }
 0x408   :  { %491 = vrot.lane.b32.xlu0 %v3645_v10, %s3335_s5 }
 0x43b   :  { %v448_v15 = vpop.permute.xlu2 %447 }
 0x43c   :  { %v450_v17 = vmul.f32 %v448_v15, %v445_v14 }
 0x43e   :  { %v454_v19 = vadd.f32 %v453_v18, %v450_v17 }
 0x440   :  { %v461_v20 = vrot.slane %v454_v19, 2 }
 0x442   :  { %462 = vrot.lane.b32.xlu2 %v461_v20, %s3335_s5 }
 0x47a   :  { %v492_v21 = vpop.permute.xlu0 %491 }
 0x47b   :  { %2926 = vmatmul.msk.f32.vlgmr.msrb.gmra.mxu3 %vm219_vm8, %v492_v21 }
 0x47c   :  { %981 = vmatpush.msrb.mxu3 %v3550_v42 }
 0x47e   :  { %982 = vmatpush.msrb.mxu3 %v3558_v44 }
 0x480   :  { %983 = vmatpush.msrb.mxu3 %v3566_v45 }
 0x482   :  { %984 = vmatpush.msrb.mxu3 %v3576_v47 }
 0x49c   :  { %v463_v22 = vpop.permute.xlu2 %462 }
 0x49d   :  { %v3662_v23 = vsel %vm459_vm4, %v463_v22, %v3609_v55 }
 0x49e   :  { %2925 = vmatmul.msk.f32.vlgmr.msrb.gmra.mxu2 %vm219_vm8, %v3662_v23  ;;  %2928 = vmatmul.msk.f32.vlgmr.msrb.gmra.mxu0 %vm219_vm8, %v3662_v23 }
 0x49f   :  { %907 = vmatpush.msrb.mxu2 %v3473_v2  ;;  %1006 = vmatpush.msrb.mxu0 %v3539_v39 }
 0x4a1   :  { %908 = vmatpush.msrb.mxu2 %v3484_v4  ;;  %1007 = vmatpush.msrb.mxu0 %v3541_v40 }
 0x4a3   :  { %909 = vmatpush.msrb.mxu2 %v3494_v6  ;;  %1008 = vmatpush.msrb.mxu0 %v3552_v43 }
 0x4a5   :  { %910 = vmatpush.msrb.mxu2 %v3503_v7  ;;  %1009 = vmatpush.msrb.mxu0 %v3568_v46 }
 0x4fe   :  { %v512_v55 = vpop.f32.mrf.mxu3 }
 0x4ff   :  { %v535_v24 = vadd.f32 %v512_v55, %v3623_v56 }
 0x501   :  { %537 = vrot.lane.b32.xlu2 %v535_v24, %s3332_s29 }
 0x51b   :  { %v574_v25 = vpop.f32.mrf.mxu0 }
 0x51c   :  { %v600_v26 = vadd.f32 %v574_v25, %v3519_v12  ;;  %v578_v60 = vrot.slane %v574_v25, 4 }
 0x51e   :  { %v602_v27 = vrot.slane %v600_v26, 4  ;;  %v580_v61 = vadd.f32 %v578_v60, %v3523_v16 }
 0x520   :  { %603 = vrot.lane.b32.xlu1 %v602_v27, %s3332_s29  ;;  %v2929_v63 = vmul.f32 -1.442695, %v580_v61 }
 0x521   :  { %v487_v28 = vpop.f32.mrf.mxu2 }
 0x522   :  { %v488_v29 = vadd.f32 %v3631_v62, %v487_v28 }
 0x524   :  { %v515_v30 = vadd.f32 %v512_v55, %v488_v29  ;;  %v619_v55 = vrot.slane %v3662_v23, 4 }
 0x526   :  { %v2927_v31 = vmul.f32 -1.442695, %v515_v30 }
 0x528   :  { %3043 = vpow2.f32 %v2927_v31  ;;  %v625_v31 = vsel %vm556_vm15, 1, %v3334_v34 }
 0x52e   :  { %v3044_v32 = vpop.eup %3043 }
 0x52f   :  { %v519_v35 = vadd.f32 1.0, %v3044_v32 }
 0x531   :  { %3045 = vrcp.f32 %v519_v35  ;;  %v531_v50 = vand.u32 2147483648, %v519_v35  ;;  %vm525_vm6 = vweird.f32 %v519_v35  ;;  %v529_v51 = vand.u32 2147483647, %v519_v35 }
 0x532   :  { %3047 = vpow2.f32 %v2929_v63 }
 0x533   :  { %v532_v53 = vor.u32 1.1754944e-38, %v531_v50  ;;  %vm530_vm10 = vcmp.eq.f32.partialorder %v529_v51, 8.507059e+37 }
 0x537   :  { %v3046_v36 = vpop.eup %3045 }
 0x538   :  { %v521_v37 = vmul.f32 %v3046_v36, %v519_v35  ;;  %vm526_vm5 = vweird.f32 %v3046_v36  ;;  %v3048_v1 = vpop.eup %3047 }
 0x539   :  { %vm527_vm9 = vmor %vm525_vm6, %vm526_vm5  ;;  %v584_v3 = vadd.f32 1.0, %v3048_v1 }
 0x53a   :  { %v522_v38 = vsub.f32 1.0, %v521_v37 }
 0x53b   :  { %3049 = vrcp.f32 %v584_v3  ;;  %v596_v15 = vand.u32 2147483648, %v584_v3  ;;  %vm590_vm12 = vweird.f32 %v584_v3  ;;  %v594_v17 = vand.u32 2147483647, %v584_v3 }
 0x53c   :  { %v523_v41 = vmul.f32 %v3046_v36, %v522_v38 }
 0x53d   :  { %v597_v19 = vor.u32 1.1754944e-38, %v596_v15  ;;  %vm595_vm14 = vcmp.eq.f32.partialorder %v594_v17, 8.507059e+37 }
 0x53e   :  { %v524_v48 = vadd.f32 %v3046_v36, %v523_v41 }
 0x540   :  { %v528_v52 = vsel %vm527_vm9, %v3046_v36, %v524_v48 }
 0x541   :  { %v533_v57 = vsel %vm530_vm10, %v532_v53, %v528_v52  ;;  %v3050_v5 = vpop.eup %3049 }
 0x542   :  { %v586_v0 = vmul.f32 %v3050_v5, %v584_v3  ;;  %vm591_vm11 = vweird.f32 %v3050_v5  ;;  %v547_v32 = vsub.f32 1.0, %v533_v57 }
 0x543   :  { %vm592_vm13 = vmor %vm590_vm12, %vm591_vm11 }
 0x544   :  { %v587_v9 = vsub.f32 1.0, %v586_v0 }
 0x546   :  { %v588_v13 = vmul.f32 %v3050_v5, %v587_v9 }
 0x548   :  { %v589_v14 = vadd.f32 %v3050_v5, %v588_v13 }
 0x54a   :  { %v593_v18 = vsel %vm592_vm13, %v3050_v5, %v589_v14 }
 0x54b   :  { %v598_v21 = vsel %vm595_vm14, %v597_v19, %v593_v18  ;;  %vm725_vm14 = vcmp.gt.s32.totalorder %v3530_v33, 3 }
 0x54c   :  { %v613_v48 = vsub.f32 1.0, %v598_v21 }
 0x55b   :  { %v538_v58 = vpop.permute.xlu2 %537 }
 0x55c   :  { %v540_v59 = vmul.f32 %v538_v58, %v533_v57 }
 0x55e   :  { %542 = vrot.lane.b32.xlu1 %v540_v59, %s3332_s29 }
 0x592   :  { %v604_v20 = vpop.permute.xlu1 %603 }
 0x593   :  { %v606_v22 = vmul.f32 %v604_v20, %v598_v21 }
 0x595   :  { %608 = vrot.lane.b32.xlu0 %v606_v22, %s3332_s29 }
 0x59d   :  { %620 = vrot.lane.b32.xlu0 %v619_v55, %s3336_s1 }
 0x5d0   :  { %v543_v24 = vpop.permute.xlu1 %542 }
 0x5d1   :  { %v545_v25 = vadd.f32 %v543_v24, %v488_v29  ;;  %v553_v29 = vmul.f32 %v533_v57, %v3645_v10 }
 0x5d3   :  { %3051 = vtanh.f32 %v545_v25 }
 0x5d9   :  { %v3052_v26 = vpop.eup %3051 }
 0x5da   :  { %549 = vrot.lane.b32.xlu1 %v3052_v26, %s3335_s5 }
 0x607   :  { %v609_v27 = vpop.permute.xlu0 %608 }
 0x608   :  { %v611_v28 = vadd.f32 %v609_v27, %v3523_v16 }
 0x60a   :  { %3053 = vtanh.f32 %v611_v28 }
 0x60f   :  { %v621_v41 = vpop.permute.xlu0 %620 }
 0x610   :  { %v3054_v30 = vpop.eup %3053  ;;  %v623_v51 = vmul.f32 %v621_v41, %v598_v21 }
 0x611   :  { %615 = vrot.lane.b32.xlu2 %v3054_v30, %s3335_s5 }
 0x619   :  { %627 = vperm.xlu2 %3012, %v625_v31  }
 0x64c   :  { %v550_v35 = vpop.permute.xlu1 %549 }
 0x64d   :  { %v552_v36 = vmul.f32 %v550_v35, %v547_v32 }
 0x64f   :  { %v554_v37 = vadd.f32 %v553_v29, %v552_v36 }
 0x651   :  { %v3695_v38 = vsel %vm459_vm4, %v554_v37, %v3645_v10 }
 0x652   :  { %660 = vrot.lane.b32.xlu1 %v3695_v38, %s3335_s5 }
 0x66b   :  { %v616_v50 = vpop.permute.xlu2 %615 }
 0x66c   :  { %v618_v52 = vmul.f32 %v616_v50, %v613_v48 }
 0x66e   :  { %v624_v53 = vadd.f32 %v623_v51, %v618_v52 }
 0x670   :  { %v631_v58 = vrot.slane %v624_v53, 4 }
 0x672   :  { %632 = vrot.lane.b32.xlu0 %v631_v58, %s3335_s5 }
 0x673   :  { %v3705_v10 = vpop.permute.xlu2 %627 }
 0x674   :  { %vm629_vm2 = vcmp.eq.s32.totalorder %v3705_v10, 1 }
 0x6c4   :  { %v661_v57 = vpop.permute.xlu1 %660 }
 0x6c5   :  { %2931 = vmatmul.msk.f32.vlgmr.msra.gmra.mxu2 %vm219_vm8, %v661_v57 }
 0x6c6   :  { %1149 = vmatpush.msra.mxu2 %v3550_v42 }
 0x6c8   :  { %1150 = vmatpush.msra.mxu2 %v3558_v44 }
 0x6ca   :  { %1151 = vmatpush.msra.mxu2 %v3566_v45 }
 0x6cc   :  { %1152 = vmatpush.msra.mxu2 %v3576_v47 }
 0x6e4   :  { %v633_v59 = vpop.permute.xlu0 %632 }
 0x6e5   :  { %v3711_v60 = vsel %vm629_vm2, %v633_v59, %v3662_v23 }
 0x6e6   :  { %2930 = vmatmul.msk.f32.vlgmr.msrb.gmra.mxu1 %vm219_vm8, %v3711_v60  ;;  %2933 = vmatmul.msk.f32.vlgmr.msra.gmra.mxu3 %vm219_vm8, %v3711_v60 }
 0x6e7   :  { %1068 = vmatpush.msrb.mxu1 %v3473_v2  ;;  %1174 = vmatpush.msra.mxu3 %v3539_v39 }
 0x6e9   :  { %1069 = vmatpush.msrb.mxu1 %v3484_v4  ;;  %1175 = vmatpush.msra.mxu3 %v3541_v40 }
 0x6eb   :  { %1070 = vmatpush.msrb.mxu1 %v3494_v6  ;;  %1176 = vmatpush.msra.mxu3 %v3552_v43 }
 0x6ed   :  { %1071 = vmatpush.msrb.mxu1 %v3503_v7  ;;  %1177 = vmatpush.msra.mxu3 %v3568_v46 }
 0x748   :  { %v681_v23 = vpop.f32.mrf.mxu2 }
 0x749   :  { %v704_v61 = vadd.f32 %v681_v23, %v3623_v56 }
 0x74b   :  { %706 = vrot.lane.b32.xlu0 %v704_v61, %s3332_s29  ;;  %v788_v61 = vrot.slane %v3711_v60, 2 }
 0x763   :  { %v656_v5 = vpop.f32.mrf.mxu1 }
 0x764   :  { %v657_v0 = vadd.f32 %v3631_v62, %v656_v5 }
 0x766   :  { %v684_v9 = vadd.f32 %v681_v23, %v657_v0 }
 0x768   :  { %v2932_v13 = vmul.f32 -1.442695, %v684_v9 }
 0x769   :  { %v743_v63 = vpop.f32.mrf.mxu3 }
 0x76a   :  { %v769_v1 = vadd.f32 %v743_v63, %v3519_v12  ;;  %v747_v14 = vrot.slane %v743_v63, 2  ;;  %3055 = vpow2.f32 %v2932_v13 }
 0x76c   :  { %v771_v3 = vrot.slane %v769_v1, 2  ;;  %v749_v15 = vadd.f32 %v747_v14, %v3523_v16 }
 0x76e   :  { %772 = vrot.lane.b32.xlu2 %v771_v3, %s3332_s29  ;;  %v2934_v18 = vmul.f32 -1.442695, %v749_v15 }
 0x770   :  { %v3056_v17 = vpop.eup %3055  ;;  %3057 = vpow2.f32 %v2934_v18 }
 0x771   :  { %v688_v19 = vadd.f32 1.0, %v3056_v17 }
 0x773   :  { %3059 = vrcp.f32 %v688_v19  ;;  %v700_v30 = vand.u32 2147483648, %v688_v19  ;;  %vm694_vm5 = vweird.f32 %v688_v19  ;;  %v698_v31 = vand.u32 2147483647, %v688_v19 }
 0x775   :  { %v701_v29 = vor.u32 1.1754944e-38, %v700_v30  ;;  %vm699_vm9 = vcmp.eq.f32.partialorder %v698_v31, 8.507059e+37 }
 0x776   :  { %v3058_v20 = vpop.eup %3057 }
 0x777   :  { %v753_v22 = vadd.f32 1.0, %v3058_v20 }
 0x779   :  { %v3060_v21 = vpop.eup %3059  ;;  %3061 = vrcp.f32 %v753_v22  ;;  %v765_v51 = vand.u32 2147483648, %v753_v22  ;;  %vm759_vm11 = vweird.f32 %v753_v22  ;;  %v763_v52 = vand.u32 2147483647, %v753_v22 }
 0x77a   :  { %v690_v55 = vmul.f32 %v3060_v21, %v688_v19  ;;  %vm695_vm3 = vweird.f32 %v3060_v21 }
 0x77b   :  { %vm696_vm6 = vmor %vm694_vm5, %vm695_vm3  ;;  %v766_v58 = vor.u32 1.1754944e-38, %v765_v51  ;;  %vm764_vm13 = vcmp.eq.f32.partialorder %v763_v52, 8.507059e+37 }
 0x77c   :  { %v691_v24 = vsub.f32 1.0, %v690_v55 }
 0x77e   :  { %v692_v26 = vmul.f32 %v3060_v21, %v691_v24 }
 0x77f   :  { %v3062_v25 = vpop.eup %3061 }
 0x780   :  { %v755_v27 = vmul.f32 %v3062_v25, %v753_v22  ;;  %v693_v28 = vadd.f32 %v3060_v21, %v692_v26  ;;  %vm760_vm10 = vweird.f32 %v3062_v25 }
 0x781   :  { %vm761_vm12 = vmor %vm759_vm11, %vm760_vm10 }
 0x782   :  { %v756_v32 = vsub.f32 1.0, %v755_v27  ;;  %v697_v35 = vsel %vm696_vm6, %v3060_v21, %v693_v28 }
 0x783   :  { %v702_v37 = vsel %vm699_vm9, %v701_v29, %v697_v35 }
 0x784   :  { %v757_v41 = vmul.f32 %v3062_v25, %v756_v32  ;;  %v716_v14 = vsub.f32 1.0, %v702_v37  ;;  %v722_v17 = vmul.f32 %v702_v37, %v3695_v38 }
 0x786   :  { %v758_v50 = vadd.f32 %v3062_v25, %v757_v41 }
 0x788   :  { %v762_v53 = vsel %vm761_vm12, %v3062_v25, %v758_v50 }
 0x789   :  { %v767_v59 = vsel %vm764_vm13, %v766_v58, %v762_v53 }
 0x78a   :  { %v782_v21 = vsub.f32 1.0, %v767_v59 }
 0x7bd   :  { %v707_v36 = vpop.permute.xlu0 %706 }
 0x7be   :  { %v709_v48 = vmul.f32 %v707_v36, %v702_v37 }
 0x7c0   :  { %711 = vrot.lane.b32.xlu2 %v709_v48, %s3332_s29 }
 0x7c8   :  { %v773_v57 = vpop.permute.xlu2 %772 }
 0x7c9   :  { %v775_v23 = vmul.f32 %v773_v57, %v767_v59 }
 0x7cb   :  { %777 = vrot.lane.b32.xlu1 %v775_v23, %s3332_s29 }
 0x7d3   :  { %789 = vrot.lane.b32.xlu1 %v788_v61, %s3336_s1 }
 0x81a   :  { %v712_v63 = vpop.permute.xlu2 %711 }
 0x81b   :  { %v714_v1 = vadd.f32 %v712_v63, %v657_v0 }
 0x81d   :  { %3063 = vtanh.f32 %v714_v1 }
 0x823   :  { %v3064_v3 = vpop.eup %3063 }
 0x824   :  { %718 = vrot.lane.b32.xlu2 %v3064_v3, %s3335_s5 }
 0x83d   :  { %v778_v5 = vpop.permute.xlu1 %777 }
 0x83e   :  { %v780_v9 = vadd.f32 %v778_v5, %v3523_v16  ;;  %v794_v16 = vsel %vm725_vm14, 1, %v3334_v34  ;;  %vm894_vm14 = vcmp.gt.s32.totalorder %v3530_v33, 4 }
 0x840   :  { %3065 = vtanh.f32 %v780_v9 }
 0x845   :  { %v790_v20 = vpop.permute.xlu1 %789 }
 0x846   :  { %v3066_v13 = vpop.eup %3065  ;;  %v792_v55 = vmul.f32 %v790_v20, %v767_v59 }
 0x847   :  { %784 = vrot.lane.b32.xlu0 %v3066_v13, %s3335_s5 }
 0x84f   :  { %796 = vperm.xlu0 %3014, %v794_v16  }
 0x87e   :  { %v719_v15 = vpop.permute.xlu2 %718 }
 0x87f   :  { %v721_v18 = vmul.f32 %v719_v15, %v716_v14 }
 0x881   :  { %v723_v19 = vadd.f32 %v722_v17, %v721_v18 }
 0x883   :  { %v3742_v0 = vsel %vm629_vm2, %v723_v19, %v3695_v38 }
 0x884   :  { %829 = vrot.lane.b32.xlu2 %v3742_v0, %s3335_s5 }
 0x8b9   :  { %v785_v22 = vpop.permute.xlu0 %784 }
 0x8ba   :  { %v787_v24 = vmul.f32 %v785_v22, %v782_v21 }
 0x8bc   :  { %v793_v25 = vadd.f32 %v792_v55, %v787_v24 }
 0x8be   :  { %v800_v26 = vrot.slane %v793_v25, 6 }
 0x8c0   :  { %801 = vrot.lane.b32.xlu1 %v800_v26, %s3335_s5 }
 0x8c1   :  { %v3754_v38 = vpop.permute.xlu0 %796 }
 0x8c2   :  { %vm798_vm15 = vcmp.eq.s32.totalorder %v3754_v38, 1 }
 0x8de   :  { %v830_v27 = vpop.permute.xlu2 %829 }
 0x8df   :  { %2936 = vmatmul.msk.f32.vlgmr.msra.gmra.mxu1 %vm219_vm8, %v830_v27  ;;  %v958_v27 = vsel %vm894_vm14, 1, %v3334_v34 }
 0x8e0   :  { %1318 = vmatpush.msra.mxu1 %v3550_v42 }
 0x8e2   :  { %1319 = vmatpush.msra.mxu1 %v3558_v44 }
 0x8e4   :  { %1320 = vmatpush.msra.mxu1 %v3566_v45 }
 0x8e6   :  { %1321 = vmatpush.msra.mxu1 %v3576_v47 }
 0x932   :  { %v802_v28 = vpop.permute.xlu1 %801 }
 0x933   :  { %v3760_v30 = vsel %vm798_vm15, %v802_v28, %v3711_v60 }
 0x934   :  { %2935 = vmatmul.msk.f32.vlgmr.msra.gmra.mxu0 %vm219_vm8, %v3760_v30  ;;  %2938 = vmatmul.msk.f32.vlgmr.msrb.gmra.mxu2 %vm219_vm8, %v3760_v30 }
 0x935   :  { %1236 = vmatpush.msra.mxu0 %v3473_v2  ;;  %1343 = vmatpush.msrb.mxu2 %v3539_v39 }
 0x937   :  { %1237 = vmatpush.msra.mxu0 %v3484_v4  ;;  %1344 = vmatpush.msrb.mxu2 %v3541_v40 }
 0x939   :  { %1238 = vmatpush.msra.mxu0 %v3494_v6  ;;  %1345 = vmatpush.msrb.mxu2 %v3552_v43 }
 0x93b   :  { %1239 = vmatpush.msra.mxu0 %v3503_v7  ;;  %1346 = vmatpush.msrb.mxu2 %v3568_v46 }
 0x95c   :  { %v850_v60 = vpop.f32.mrf.mxu1 }
 0x95d   :  { %v873_v31 = vadd.f32 %v850_v60, %v3623_v56 }
 0x95f   :  { %875 = vrot.lane.b32.xlu1 %v873_v31, %s3332_s29 }
 0x9b1   :  { %v825_v2 = vpop.f32.mrf.mxu0 }
 0x9b2   :  { %v826_v32 = vadd.f32 %v3631_v62, %v825_v2 }
 0x9b4   :  { %v853_v35 = vadd.f32 %v850_v60, %v826_v32 }
 0x9b6   :  { %v2937_v4 = vmul.f32 -1.442695, %v853_v35 }
 0x9b7   :  { %v912_v29 = vpop.f32.mrf.mxu2 }
 0x9b8   :  { %3067 = vpow2.f32 %v2937_v4  ;;  %v935_v6 = vadd.f32 %v912_v29, %v3519_v12  ;;  %v915_v63 = vadd.f32 %v912_v29, %v3517_v11 }
 0x9ba   :  { %937 = vrot.lane.b32.xlu2 %v935_v6, %s3332_s29  ;;  %v2939_v1 = vmul.f32 -1.442695, %v915_v63 }
 0x9be   :  { %v3068_v36 = vpop.eup %3067 }
 0x9bf   :  { %v857_v7 = vadd.f32 1.0, %v3068_v36 }
 0x9c1   :  { %3069 = vrcp.f32 %v857_v7  ;;  %v869_v50 = vand.u32 2147483648, %v857_v7  ;;  %v867_v52 = vand.u32 2147483647, %v857_v7  ;;  %vm863_vm5 = vweird.f32 %v857_v7 }
 0x9c2   :  { %3071 = vpow2.f32 %v2939_v1 }
 0x9c3   :  { %v870_v58 = vor.u32 1.1754944e-38, %v869_v50  ;;  %vm868_vm9 = vcmp.eq.f32.partialorder %v867_v52, 8.507059e+37  ;;  %v3217_v52 = vld [vmem:[%s4449_s2 + $0x18] sm:$0xff] }
 0x9c7   :  { %v3070_v37 = vpop.eup %3069 }
 0x9c8   :  { %v859_v41 = vmul.f32 %v3070_v37, %v857_v7  ;;  %vm864_vm3 = vweird.f32 %v3070_v37  ;;  %v3072_v3 = vpop.eup %3071 }
 0x9c9   :  { %vm865_vm6 = vmor %vm863_vm5, %vm864_vm3  ;;  %v919_v5 = vadd.f32 1.0, %v3072_v3 }
 0x9ca   :  { %v860_v48 = vsub.f32 1.0, %v859_v41 }
 0x9cb   :  { %3073 = vrcp.f32 %v919_v5  ;;  %v931_v18 = vand.u32 2147483648, %v919_v5  ;;  %vm925_vm11 = vweird.f32 %v919_v5  ;;  %v929_v19 = vand.u32 2147483647, %v919_v5 }
 0x9cc   :  { %v861_v51 = vmul.f32 %v3070_v37, %v860_v48 }
 0x9cd   :  { %v932_v20 = vor.u32 1.1754944e-38, %v931_v18  ;;  %vm930_vm13 = vcmp.eq.f32.partialorder %v929_v19, 8.507059e+37 }
 0x9ce   :  { %v862_v53 = vadd.f32 %v3070_v37, %v861_v51 }
 0x9d0   :  { %v866_v57 = vsel %vm865_vm6, %v3070_v37, %v862_v53 }
 0x9d1   :  { %v876_v59 = vpop.permute.xlu1 %875  ;;  %v871_v23 = vsel %vm868_vm9, %v870_v58, %v866_v57  ;;  %v3074_v9 = vpop.eup %3073 }
 0x9d2   :  { %v878_v61 = vmul.f32 %v876_v59, %v871_v23  ;;  %v921_v13 = vmul.f32 %v3074_v9, %v919_v5  ;;  %vm926_vm10 = vweird.f32 %v3074_v9  ;;  %v885_v2 = vsub.f32 1.0, %v871_v23 }
 0x9d3   :  { %vm927_vm12 = vmor %vm925_vm11, %vm926_vm10 }
 0x9d4   :  { %880 = vrot.lane.b32.xlu0 %v878_v61, %s3332_s29  ;;  %v922_v14 = vsub.f32 1.0, %v921_v13 }
 0x9d6   :  { %v923_v15 = vmul.f32 %v3074_v9, %v922_v14 }
 0x9d8   :  { %v924_v17 = vadd.f32 %v3074_v9, %v923_v15 }
 0x9da   :  { %v928_v16 = vsel %vm927_vm12, %v3074_v9, %v924_v17 }
 0x9db   :  { %v933_v21 = vsel %vm930_vm13, %v932_v20, %v928_v16 }
 0x9dc   :  { %v947_v6 = vsub.f32 1.0, %v933_v21 }
 0xa14   :  { %v938_v22 = vpop.permute.xlu2 %937 }
 0xa15   :  { %v940_v55 = vmul.f32 %v938_v22, %v933_v21 }
 0xa17   :  { %942 = vrot.lane.b32.xlu1 %v940_v55, %s3332_s29 }
 0xa1f   :  { %953 = vrot.lane.b32.xlu1 %v3760_v30, %s3336_s1 }
 0xa46   :  { %v881_v24 = vpop.permute.xlu0 %880 }
 0xa47   :  { %v883_v25 = vadd.f32 %v881_v24, %v826_v32  ;;  %v891_v32 = vmul.f32 %v871_v23, %v3742_v0 }
 0xa49   :  { %3075 = vtanh.f32 %v883_v25 }
 0xa4f   :  { %v3076_v26 = vpop.eup %3075 }
 0xa50   :  { %887 = vrot.lane.b32.xlu2 %v3076_v26, %s3335_s5 }
 0xa58   :  { %960 = vperm.xlu2 %3012, %v958_v27  }
 0xa89   :  { %v943_v28 = vpop.permute.xlu1 %942 }
 0xa8a   :  { %v945_v60 = vadd.f32 %v943_v28, %v3517_v11 }
 0xa8c   :  { %3077 = vtanh.f32 %v945_v60 }
 0xa91   :  { %v954_v29 = vpop.permute.xlu1 %953 }
 0xa92   :  { %v3078_v31 = vpop.eup %3077  ;;  %v956_v7 = vmul.f32 %v954_v29, %v933_v21 }
 0xa93   :  { %949 = vrot.lane.b32.xlu0 %v3078_v31, %s3335_s5 }
 0xaaa   :  { %v888_v30 = vpop.permute.xlu2 %887 }
 0xaab   :  { %v890_v35 = vmul.f32 %v888_v30, %v885_v2 }
 0xaad   :  { %v892_v4 = vadd.f32 %v891_v32, %v890_v35 }
 0xaaf   :  { %v3793_v33 = vsel %vm798_vm15, %v892_v4, %v3742_v0 }
 0xab0   :  { %990 = vrot.lane.b32.xlu0 %v3793_v33, %s3335_s5 }
 0xab2   :  { %v3797_v37 = vpop.permute.xlu2 %960 }
 0xab3   :  { %vm962_vm3 = vcmp.eq.s32.totalorder %v3797_v37, 1 }
 0xb05   :  { %v950_v36 = vpop.permute.xlu0 %949 }
 0xb06   :  { %v952_v41 = vmul.f32 %v950_v36, %v947_v6 }
 0xb08   :  { %v957_v48 = vadd.f32 %v956_v7, %v952_v41  ;;  %v3845_v7 = vld [vmem:[%s4452_s26] sm:$0x3] }
 0xb0a   :  { %v3802_v50 = vsel %vm962_vm3, %v957_v48, %v954_v29 }
 0xb0b   :  { %965 = vrot.lane.b32.xlu1 %v3802_v50, %s3335_s5 }
 0xb22   :  { %v991_v0 = vpop.permute.xlu0 %990 }
 0xb23   :  { %2941 = vmatmul.msk.f32.vlgmr.msrb.gmra.mxu0 %vm219_vm8, %v991_v0 }
 0xb24   :  { %1487 = vmatpush.msrb.mxu0 %v3550_v42  ;;  %v3218_v42 = vld [vmem:[%s4449_s2 + $0x10] sm:$0xff] }
 0xb26   :  { %1488 = vmatpush.msrb.mxu0 %v3558_v44  ;;  %v3219_v44 = vld [vmem:[%s4449_s2 + $0x8] sm:$0xff] }
 0xb28   :  { %1489 = vmatpush.msrb.mxu0 %v3566_v45  ;;  %v3220_v45 = vld [vmem:[%s4449_s2] sm:$0xff] }
 0xb2a   :  { %1490 = vmatpush.msrb.mxu0 %v3576_v47 }
 0xb7d   :  { %v3811_v51 = vpop.permute.xlu1 %965 }
 0xb7e   :  { %2940 = vmatmul.msk.f32.vlgmr.msrb.gmra.mxu3 %vm219_vm8, %v3811_v51  ;;  %2943 = vmatmul.msk.f32.vlgmr.msrb.gmra.mxu1 %vm219_vm8, %v3811_v51 }
 0xb7f   :  { %1405 = vmatpush.msrb.mxu3 %v3217_v52  ;;  %1512 = vmatpush.msrb.mxu1 %v3539_v39 }
 0xb81   :  { %1406 = vmatpush.msrb.mxu3 %v3218_v42  ;;  %1513 = vmatpush.msrb.mxu1 %v3541_v40 }
 0xb83   :  { %1407 = vmatpush.msrb.mxu3 %v3219_v44  ;;  %1514 = vmatpush.msrb.mxu1 %v3552_v43 }
 0xb85   :  { %1408 = vmatpush.msrb.mxu3 %v3220_v45  ;;  %1515 = vmatpush.msrb.mxu1 %v3568_v46 }
 0xba0   :  { %v1011_v39 = vpop.f32.mrf.mxu0 }
 0xba1   :  { %v1034_v47 = vadd.f32 %v1011_v39, %v3623_v56 }
 0xba3   :  { %1036 = vrot.lane.b32.xlu2 %v1034_v47, %s3332_s29 }
 0xbfb   :  { %v1073_v40 = vpop.f32.mrf.mxu1 }
 0xbfc   :  { %v1099_v53 = vadd.f32 %v1073_v40, %v3519_v12  ;;  %v1077_v16 = vrot.slane %v1073_v40, 6 }
 0xbfe   :  { %v1101_v58 = vrot.slane %v1099_v53, 6  ;;  %v1079_v20 = vadd.f32 %v1077_v16, %v3517_v11  ;;  %v1118_v53 = vrot.slane %v3802_v50, 6 }
 0xc00   :  { %1102 = vrot.lane.b32.xlu0 %v1101_v58, %s3332_s29  ;;  %v2944_v21 = vmul.f32 -1.442695, %v1079_v20 }
 0xc01   :  { %v986_v57 = vpop.f32.mrf.mxu3 }
 0xc02   :  { %v987_v43 = vadd.f32 %v3631_v62, %v986_v57  ;;  %v1037_v62 = vpop.permute.xlu2 %1036 }
 0xc04   :  { %v1014_v59 = vadd.f32 %v1011_v39, %v987_v43 }
 0xc06   :  { %v2942_v23 = vmul.f32 -1.442695, %v1014_v59 }
 0xc08   :  { %3079 = vpow2.f32 %v2942_v23 }
 0xc0e   :  { %v3080_v61 = vpop.eup %3079 }
 0xc0f   :  { %v1018_v63 = vadd.f32 1.0, %v3080_v61 }
 0xc11   :  { %3081 = vrcp.f32 %v1018_v63  ;;  %v1030_v5 = vand.u32 2147483648, %v1018_v63  ;;  %v1028_v13 = vand.u32 2147483647, %v1018_v63  ;;  %vm1024_vm6 = vweird.f32 %v1018_v63 }
 0xc12   :  { %3083 = vpow2.f32 %v2944_v21 }
 0xc13   :  { %v1031_v15 = vor.u32 1.1754944e-38, %v1030_v5  ;;  %vm1029_vm10 = vcmp.eq.f32.partialorder %v1028_v13, 8.507059e+37 }
 0xc17   :  { %v3082_v46 = vpop.eup %3081 }
 0xc18   :  { %v1020_v1 = vmul.f32 %v3082_v46, %v1018_v63  ;;  %vm1025_vm5 = vweird.f32 %v3082_v46  ;;  %v3084_v22 = vpop.eup %3083 }
 0xc19   :  { %vm1026_vm9 = vmor %vm1024_vm6, %vm1025_vm5  ;;  %v1083_v55 = vadd.f32 1.0, %v3084_v22  ;;  %vm1055_vm5 = vcmp.gt.s32.totalorder %v3845_v7, 5 }
 0xc1a   :  { %v1021_v3 = vsub.f32 1.0, %v1020_v1  ;;  %v1122_v41 = vsel %vm1055_vm5, 1, %v3334_v34 }
 0xc1b   :  { %3085 = vrcp.f32 %v1083_v55  ;;  %v1095_v60 = vand.u32 2147483648, %v1083_v55  ;;  %vm1089_vm12 = vweird.f32 %v1083_v55  ;;  %v1093_v31 = vand.u32 2147483647, %v1083_v55 }
 0xc1c   :  { %v1022_v9 = vmul.f32 %v3082_v46, %v1021_v3 }
 0xc1d   :  { %v1096_v30 = vor.u32 1.1754944e-38, %v1095_v60  ;;  %vm1094_vm14 = vcmp.eq.f32.partialorder %v1093_v31, 8.507059e+37 }
 0xc1e   :  { %v1023_v14 = vadd.f32 %v3082_v46, %v1022_v9 }
 0xc20   :  { %v1027_v17 = vsel %vm1026_vm9, %v3082_v46, %v1023_v14 }
 0xc21   :  { %v1032_v18 = vsel %vm1029_vm10, %v1031_v15, %v1027_v17  ;;  %v3086_v24 = vpop.eup %3085 }
 0xc22   :  { %v1039_v19 = vmul.f32 %v1037_v62, %v1032_v18  ;;  %v1085_v25 = vmul.f32 %v3086_v24, %v1083_v55  ;;  %vm1090_vm11 = vweird.f32 %v3086_v24  ;;  %v1046_v42 = vsub.f32 1.0, %v1032_v18 }
 0xc23   :  { %vm1091_vm13 = vmor %vm1089_vm12, %vm1090_vm11  ;;  %v1052_v45 = vmul.f32 %v1032_v18, %v3793_v33 }
 0xc24   :  { %1041 = vrot.lane.b32.xlu1 %v1039_v19, %s3332_s29  ;;  %v1086_v26 = vsub.f32 1.0, %v1085_v25 }
 0xc26   :  { %v1087_v27 = vmul.f32 %v3086_v24, %v1086_v26 }
 0xc28   :  { %v1088_v28 = vadd.f32 %v3086_v24, %v1087_v27 }
 0xc2a   :  { %v1092_v2 = vsel %vm1091_vm13, %v3086_v24, %v1088_v28 }
 0xc2b   :  { %v1097_v35 = vsel %vm1094_vm14, %v1096_v30, %v1092_v2 }
 0xc2c   :  { %v1112_v58 = vsub.f32 1.0, %v1097_v35 }
 0xc72   :  { %v1103_v32 = vpop.permute.xlu0 %1102 }
 0xc73   :  { %v1105_v4 = vmul.f32 %v1103_v32, %v1097_v35 }
 0xc75   :  { %1107 = vrot.lane.b32.xlu2 %v1105_v4, %s3332_s29 }
 0xc96   :  { %v1042_v29 = vpop.permute.xlu1 %1041 }
 0xc97   :  { %v1044_v6 = vadd.f32 %v1042_v29, %v987_v43  ;;  %v1120_v43 = vmul.f32 %v1118_v53, %v1097_v35 }
 0xc99   :  { %3087 = vtanh.f32 %v1044_v6 }
 0xc9f   :  { %v3088_v36 = vpop.eup %3087 }
 0xca0   :  { %1048 = vrot.lane.b32.xlu0 %v3088_v36, %s3335_s5 }
 0xca8   :  { %1124 = vperm.xlu0 %3014, %v1122_v41  }
 0xccf   :  { %v1108_v48 = vpop.permute.xlu2 %1107 }
 0xcd0   :  { %v1110_v0 = vadd.f32 %v1108_v48, %v3517_v11 }
 0xcd2   :  { %3089 = vtanh.f32 %v1110_v0 }
 0xcd8   :  { %v3090_v52 = vpop.eup %3089 }
 0xcd9   :  { %1114 = vrot.lane.b32.xlu1 %v3090_v52, %s3335_s5 }
 0xd12   :  { %v1049_v44 = vpop.permute.xlu0 %1048 }
 0xd13   :  { %v1051_v39 = vmul.f32 %v1049_v44, %v1046_v42 }
 0xd15   :  { %v1053_v47 = vadd.f32 %v1052_v45, %v1051_v39 }
 0xd17   :  { %v3855_v40 = vsel %vm962_vm3, %v1053_v47, %v3793_v33 }
 0xd18   :  { %1158 = vrot.lane.b32.xlu2 %v3855_v40, %s3335_s5 }
 0xd1a   :  { %v3862_v46 = vpop.permute.xlu0 %1124 }
 0xd1b   :  { %vm1126_vm6 = vcmp.eq.s32.totalorder %v3862_v46, 1 }
 0xd4b   :  { %v1115_v57 = vpop.permute.xlu1 %1114 }
 0xd4c   :  { %v1117_v59 = vmul.f32 %v1115_v57, %v1112_v58 }
 0xd4e   :  { %v1121_v23 = vadd.f32 %v1120_v43, %v1117_v59 }
 0xd50   :  { %v1128_v61 = vrot.slane %v1121_v23, 2 }
 0xd52   :  { %1129 = vrot.lane.b32.xlu1 %v1128_v61, %s3335_s5 }
 0xd72   :  { %v1159_v63 = vpop.permute.xlu2 %1158 }
 0xd73   :  { %2946 = vmatmul.msk.f32.vlgmr.msra.gmra.mxu3 %vm219_vm8, %v1159_v63 }
 0xdc4   :  { %v1130_v33 = vpop.permute.xlu1 %1129 }
 0xdc5   :  { %v3868_v50 = vsel %vm1126_vm6, %v1130_v33, %v3811_v51  ;;  %v3881_v51 = vld [vmem:[%s4421_s8] ss:$0 sm:$0xff] }
 0xdc6   :  { %2945 = vmatmul.msk.f32.vlgmr.msra.gmra.mxu2 %vm219_vm8, %v3868_v50  ;;  %2948 = vmatmul.msk.f32.vlgmr.msra.gmra.mxu0 %vm219_vm8, %v3868_v50  ;;  %v1286_v53 = vrot.slane %v3868_v50, 4 }
 0xdf6   :  { %v1179_v1 = vpop.f32.mrf.mxu3 }
 0xdf7   :  { %v1202_v3 = vadd.f32 %v1179_v1, %v3623_v56 }
 0xdf9   :  { %1204 = vrot.lane.b32.xlu2 %v1202_v3, %s3332_s29 }
 0xe43   :  { %v1241_v5 = vpop.f32.mrf.mxu0 }
 0xe44   :  { %v1267_v9 = vadd.f32 %v1241_v5, %v3519_v12  ;;  %v1245_v2 = vrot.slane %v1241_v5, 4 }
 0xe46   :  { %v1269_v13 = vrot.slane %v1267_v9, 4  ;;  %v1247_v30 = vadd.f32 %v1245_v2, %v3517_v11 }
 0xe48   :  { %1270 = vrot.lane.b32.xlu0 %v1269_v13, %s3332_s29  ;;  %v2949_v32 = vmul.f32 -1.442695, %v1247_v30 }
 0xe49   :  { %v1154_v14 = vpop.f32.mrf.mxu2 }
 0xe4a   :  { %v1155_v15 = vadd.f32 %v3881_v51, %v1154_v14 }
 0xe4c   :  { %v1182_v17 = vadd.f32 %v1179_v1, %v1155_v15 }
 0xe4e   :  { %v2947_v62 = vmul.f32 -1.442695, %v1182_v17 }
 0xe50   :  { %3091 = vpow2.f32 %v2947_v62 }
 0xe53   :  { %v1205_v28 = vpop.permute.xlu2 %1204 }
 0xe56   :  { %v3092_v18 = vpop.eup %3091 }
 0xe57   :  { %v1186_v19 = vadd.f32 1.0, %v3092_v18 }
 0xe59   :  { %3093 = vrcp.f32 %v1186_v19  ;;  %v1198_v22 = vand.u32 2147483648, %v1186_v19  ;;  %v1196_v24 = vand.u32 2147483647, %v1186_v19  ;;  %vm1192_vm10 = vweird.f32 %v1186_v19 }
 0xe5a   :  { %3095 = vpow2.f32 %v2949_v32 }
 0xe5b   :  { %v1199_v26 = vor.u32 1.1754944e-38, %v1198_v22  ;;  %vm1197_vm12 = vcmp.eq.f32.partialorder %v1196_v24, 8.507059e+37 }
 0xe5f   :  { %v3094_v16 = vpop.eup %3093 }
 0xe60   :  { %v1188_v20 = vmul.f32 %v3094_v16, %v1186_v19  ;;  %vm1193_vm9 = vweird.f32 %v3094_v16  ;;  %v3096_v35 = vpop.eup %3095 }
 0xe61   :  { %vm1194_vm11 = vmor %vm1192_vm10, %vm1193_vm9  ;;  %v1251_v4 = vadd.f32 1.0, %v3096_v35  ;;  %vm1223_vm10 = vcmp.gt.s32.totalorder %v3845_v7, 6 }
 0xe62   :  { %v1189_v21 = vsub.f32 1.0, %v1188_v20  ;;  %v1292_v63 = vsel %vm1223_vm10, 1, %v3334_v34 }
 0xe63   :  { %3097 = vrcp.f32 %v1251_v4  ;;  %v1263_v0 = vand.u32 2147483648, %v1251_v4  ;;  %vm1257_vm14 = vweird.f32 %v1251_v4  ;;  %v1261_v52 = vand.u32 2147483647, %v1251_v4 }
 0xe64   :  { %v1190_v55 = vmul.f32 %v3094_v16, %v1189_v21 }
 0xe65   :  { %v1264_v44 = vor.u32 1.1754944e-38, %v1263_v0  ;;  %vm1262_vm9 = vcmp.eq.f32.partialorder %v1261_v52, 8.507059e+37 }
 0xe66   :  { %v1191_v25 = vadd.f32 %v3094_v16, %v1190_v55 }
 0xe68   :  { %v1195_v27 = vsel %vm1194_vm11, %v3094_v16, %v1191_v25 }
 0xe69   :  { %v1200_v60 = vsel %vm1197_vm12, %v1199_v26, %v1195_v27  ;;  %v3098_v29 = vpop.eup %3097 }
 0xe6a   :  { %v1207_v31 = vmul.f32 %v1205_v28, %v1200_v60  ;;  %v1253_v6 = vmul.f32 %v3098_v29, %v1251_v4  ;;  %vm1258_vm13 = vweird.f32 %v3098_v29  ;;  %v1214_v33 = vsub.f32 1.0, %v1200_v60 }
 0xe6b   :  { %vm1259_vm5 = vmor %vm1257_vm14, %vm1258_vm13  ;;  %v1220_v3 = vmul.f32 %v1200_v60, %v3855_v40 }
 0xe6c   :  { %1209 = vrot.lane.b32.xlu1 %v1207_v31, %s3332_s29  ;;  %v1254_v36 = vsub.f32 1.0, %v1253_v6 }
 0xe6e   :  { %v1255_v41 = vmul.f32 %v3098_v29, %v1254_v36 }
 0xe70   :  { %v1256_v48 = vadd.f32 %v3098_v29, %v1255_v41 }
 0xe72   :  { %v1260_v42 = vsel %vm1259_vm5, %v3098_v29, %v1256_v48 }
 0xe73   :  { %v1265_v39 = vsel %vm1262_vm9, %v1264_v44, %v1260_v42 }
 0xeba   :  { %v1271_v45 = vpop.permute.xlu0 %1270 }
 0xebb   :  { %v1273_v47 = vmul.f32 %v1271_v45, %v1265_v39 }
 0xebd   :  { %1275 = vrot.lane.b32.xlu2 %v1273_v47, %s3332_s29 }
 0xec5   :  { %1287 = vrot.lane.b32.xlu2 %v1286_v53, %s3336_s1 }
 0xede   :  { %v1210_v58 = vpop.permute.xlu1 %1209 }
 0xedf   :  { %v1212_v57 = vadd.f32 %v1210_v58, %v1155_v15  ;;  %v1280_v15 = vsub.f32 1.0, %v1265_v39 }
 0xee1   :  { %3099 = vtanh.f32 %v1212_v57 }
 0xee7   :  { %v3100_v43 = vpop.eup %3099 }
 0xee8   :  { %1216 = vrot.lane.b32.xlu0 %v3100_v43, %s3335_s5 }
 0xf17   :  { %v1276_v59 = vpop.permute.xlu2 %1275 }
 0xf18   :  { %v1278_v23 = vadd.f32 %v1276_v59, %v3517_v11 }
 0xf1a   :  { %3101 = vtanh.f32 %v1278_v23 }
 0xf1f   :  { %v1288_v14 = vpop.permute.xlu2 %1287 }
 0xf20   :  { %v3102_v61 = vpop.eup %3101  ;;  %v1290_v62 = vmul.f32 %v1288_v14, %v1265_v39 }
 0xf21   :  { %1282 = vrot.lane.b32.xlu1 %v3102_v61, %s3335_s5 }
 0xf29   :  { %1294 = vperm.xlu1 %3013, %v1292_v63  }
 0xf5a   :  { %v1217_v1 = vpop.permute.xlu0 %1216 }
 0xf5b   :  { %v1219_v5 = vmul.f32 %v1217_v1, %v1214_v33 }
 0xf5d   :  { %v1221_v9 = vadd.f32 %v1220_v3, %v1219_v5 }
 0xf5f   :  { %v3898_v13 = vsel %vm1126_vm6, %v1221_v9, %v3855_v40 }
 0xf60   :  { %1327 = vrot.lane.b32.xlu0 %v3898_v13, %s3335_s5 }
 0xf93   :  { %v1283_v17 = vpop.permute.xlu1 %1282 }
 0xf94   :  { %v1285_v18 = vmul.f32 %v1283_v17, %v1280_v15 }
 0xf96   :  { %v1291_v19 = vadd.f32 %v1290_v62, %v1285_v18 }
 0xf98   :  { %v1298_v16 = vrot.slane %v1291_v19, 4 }
 0xf9a   :  { %1299 = vrot.lane.b32.xlu2 %v1298_v16, %s3335_s5 }
 0xf9b   :  { %v3904_v21 = vpop.permute.xlu1 %1294 }
 0xf9c   :  { %vm1296_vm11 = vcmp.eq.s32.totalorder %v3904_v21, 1 }
 0xfd2   :  { %v1328_v20 = vpop.permute.xlu0 %1327 }
 0xfd3   :  { %2951 = vmatmul.msk.f32.vlgmr.msrb.gmra.mxu2 %vm219_vm8, %v1328_v20 }
 0xff4   :  { %v1300_v40 = vpop.permute.xlu2 %1299 }
 0xff5   :  { %v3910_v22 = vsel %vm1296_vm11, %v1300_v40, %v3868_v50 }
 0xff6   :  { %2950 = vmatmul.msk.f32.vlgmr.msra.gmra.mxu1 %vm219_vm8, %v3910_v22  ;;  %2953 = vmatmul.msk.f32.vlgmr.msrb.gmra.mxu3 %vm219_vm8, %v3910_v22  ;;  %v1455_v14 = vrot.slane %v3910_v22, 2 }
0x1056   :  { %v1348_v55 = vpop.f32.mrf.mxu2 }
0x1057   :  { %v1371_v24 = vadd.f32 %v1348_v55, %v3623_v56 }
0x1059   :  { %1373 = vrot.lane.b32.xlu0 %v1371_v24, %s3332_s29 }
0x1073   :  { %v1323_v28 = vpop.f32.mrf.mxu1 }
0x1074   :  { %v1324_v50 = vadd.f32 %v3881_v51, %v1323_v28 }
0x1076   :  { %v1351_v60 = vadd.f32 %v1348_v55, %v1324_v50 }
0x1078   :  { %v2952_v31 = vmul.f32 -1.442695, %v1351_v60 }
0x1079   :  { %v1410_v25 = vpop.f32.mrf.mxu3 }
0x107a   :  { %v1436_v26 = vadd.f32 %v1410_v25, %v3519_v12  ;;  %3103 = vpow2.f32 %v2952_v31  ;;  %v1414_v4 = vrot.slane %v1410_v25, 2 }
0x107c   :  { %v1438_v27 = vrot.slane %v1436_v26, 2  ;;  %v1416_v6 = vadd.f32 %v1414_v4, %v3517_v11 }
0x107e   :  { %1439 = vrot.lane.b32.xlu1 %v1438_v27, %s3332_s29  ;;  %v2954_v12 = vmul.f32 -1.442695, %v1416_v6 }
0x1080   :  { %v3104_v2 = vpop.eup %3103 }
0x1081   :  { %v1355_v30 = vadd.f32 1.0, %v3104_v2 }
0x1083   :  { %3105 = vrcp.f32 %v1355_v30  ;;  %v1367_v48 = vand.u32 2147483648, %v1355_v30  ;;  %vm1361_vm13 = vweird.f32 %v1355_v30  ;;  %v1365_v0 = vand.u32 2147483647, %v1355_v30 }
0x1084   :  { %3107 = vpow2.f32 %v2954_v12 }
0x1085   :  { %v1368_v42 = vor.u32 1.1754944e-38, %v1367_v48  ;;  %vm1366_vm5 = vcmp.eq.f32.partialorder %v1365_v0, 8.507059e+37 }
0x1089   :  { %v3106_v32 = vpop.eup %3105 }
0x108a   :  { %v1357_v35 = vmul.f32 %v3106_v32, %v1355_v30  ;;  %vm1362_vm12 = vweird.f32 %v3106_v32  ;;  %v3108_v47 = vpop.eup %3107 }
0x108b   :  { %vm1363_vm14 = vmor %vm1361_vm13, %vm1362_vm12  ;;  %v1420_v53 = vadd.f32 1.0, %v3108_v47 }
0x108c   :  { %v1358_v29 = vsub.f32 1.0, %v1357_v35 }
0x108d   :  { %3109 = vrcp.f32 %v1420_v53  ;;  %v1432_v61 = vand.u32 2147483648, %v1420_v53  ;;  %vm1426_vm10 = vweird.f32 %v1420_v53  ;;  %v1430_v63 = vand.u32 2147483647, %v1420_v53 }
0x108e   :  { %v1359_v36 = vmul.f32 %v3106_v32, %v1358_v29 }
0x108f   :  { %v1433_v1 = vor.u32 1.1754944e-38, %v1432_v61  ;;  %vm1431_vm13 = vcmp.eq.f32.partialorder %v1430_v63, 8.507059e+37  ;;  %v171_v61 = vld [vmem:[%s4423_s10 + $0x10] sm:$0xff]  ;;  %v170_v63 = vld [vmem:[%s4423_s10 + $0x8] sm:$0xff] }
0x1090   :  { %v1360_v41 = vadd.f32 %v3106_v32, %v1359_v36 }
0x1092   :  { %v1364_v52 = vsel %vm1363_vm14, %v3106_v32, %v1360_v41  ;;  %vm1392_vm14 = vcmp.gt.s32.totalorder %v3845_v7, 7 }
0x1093   :  { %v1369_v45 = vsel %vm1366_vm5, %v1368_v42, %v1364_v52  ;;  %v3110_v58 = vpop.eup %3109  ;;  %v1461_v20 = vsel %vm1392_vm14, 1, %v3334_v34  ;;  %vm1592_vm14 = vcmask 64512  }
0x1094   :  { %v1422_v57 = vmul.f32 %v3110_v58, %v1420_v53  ;;  %vm1427_vm9 = vweird.f32 %v3110_v58  ;;  %v1383_v40 = vsub.f32 1.0, %v1369_v45  ;;  %v1389_v24 = vmul.f32 %v1369_v45, %v3898_v13 }
0x1095   :  { %vm1428_vm12 = vmor %vm1426_vm10, %vm1427_vm9 }
0x1096   :  { %v1423_v43 = vsub.f32 1.0, %v1422_v57 }
0x1098   :  { %v1424_v59 = vmul.f32 %v3110_v58, %v1423_v43 }
0x109a   :  { %v1425_v23 = vadd.f32 %v3110_v58, %v1424_v59 }
0x109c   :  { %v1429_v33 = vsel %vm1428_vm12, %v3110_v58, %v1425_v23  ;;  %v172_v23 = vld [vmem:[%s4423_s10 + $0x18] sm:$0xff] }
0x109d   :  { %v1434_v5 = vsel %vm1431_vm13, %v1433_v1, %v1429_v33  ;;  %1581 = vmatpush.msra.mxu2 %v172_v23  ;;  %v169_v33 = vld [vmem:[%s4423_s10] sm:$0xff] }
0x109e   :  { %v1449_v28 = vsub.f32 1.0, %v1434_v5 }
0x109f   :  { %1582 = vmatpush.msra.mxu2 %v171_v61 }
0x10a1   :  { %1583 = vmatpush.msra.mxu2 %v170_v63 }
0x10a3   :  { %1584 = vmatpush.msra.mxu2 %v169_v33 }
0x10cb   :  { %v1374_v44 = vpop.permute.xlu0 %1373 }
0x10cc   :  { %v1376_v39 = vmul.f32 %v1374_v44, %v1369_v45 }
0x10ce   :  { %1378 = vrot.lane.b32.xlu2 %v1376_v39, %s3332_s29 }
0x10f0   :  { %v1440_v3 = vpop.permute.xlu1 %1439 }
0x10f1   :  { %v1442_v9 = vmul.f32 %v1440_v3, %v1434_v5 }
0x10f3   :  { %1444 = vrot.lane.b32.xlu0 %v1442_v9, %s3332_s29 }
0x10fb   :  { %1456 = vrot.lane.b32.xlu0 %v1455_v14, %s3336_s1 }
0x1128   :  { %v1379_v15 = vpop.permute.xlu2 %1378 }
0x1129   :  { %v1381_v17 = vadd.f32 %v1379_v15, %v1324_v50 }
0x112b   :  { %3111 = vtanh.f32 %v1381_v17  ;;  %v3965_v17 = vld [vmem:[#allocation4 + $0x18] sm:$0xff] }
0x112c   :  { %1628 = vmatpush.msra.mxu0 %v3965_v17 }
0x1131   :  { %v3112_v62 = vpop.eup %3111 }
0x1132   :  { %1385 = vrot.lane.b32.xlu1 %v3112_v62, %s3335_s5  ;;  %v3967_v62 = vld [vmem:[#allocation4 + $0x10] sm:$0xff] }
0x1133   :  { %1629 = vmatpush.msra.mxu0 %v3967_v62 }
0x1165   :  { %v1445_v18 = vpop.permute.xlu0 %1444 }
0x1166   :  { %v1447_v19 = vadd.f32 %v1445_v18, %v3517_v11  ;;  %v3019_v18 = vld [vmem:[%s4428_s15] ss:$0 sm:$0xff] }
0x1168   :  { %3113 = vtanh.f32 %v1447_v19  ;;  %v152_v19 = vld [vmem:[%s4425_s12] sm:$0xff] }
0x1169   :  { %1611 = vmatpush.msra.mxu3 %v152_v19 }
0x116b   :  { %1788 = vmatpush.msrb.mxu3 %v3965_v17 }
0x116d   :  { %v1457_v11 = vpop.permute.xlu0 %1456  ;;  %1789 = vmatpush.msrb.mxu3 %v3967_v62 }
0x116e   :  { %v3114_v16 = vpop.eup %3113  ;;  %v1459_v60 = vmul.f32 %v1457_v11, %v1434_v5 }
0x116f   :  { %1451 = vrot.lane.b32.xlu2 %v3114_v16, %s3335_s5  ;;  %v3976_v16 = vld [vmem:[#allocation4 + $0x8] sm:$0xff] }
0x1170   :  { %1630 = vmatpush.msra.mxu0 %v3976_v16  ;;  %1790 = vmatpush.msrb.mxu3 %v3976_v16 }
0x1177   :  { %1463 = vperm.xlu2 %3012, %v1461_v20   ;;  %v3980_v20 = vld [vmem:[#allocation4] sm:$0xff] }
0x1178   :  { %1631 = vmatpush.msra.mxu0 %v3980_v20  ;;  %1791 = vmatpush.msrb.mxu3 %v3980_v20 }
0x11a4   :  { %v1386_v55 = vpop.permute.xlu1 %1385 }
0x11a5   :  { %v1388_v25 = vmul.f32 %v1386_v55, %v1383_v40 }
0x11a7   :  { %v1390_v26 = vadd.f32 %v1389_v24, %v1388_v25 }
0x11a9   :  { %v1391_v27 = vsel %vm1296_vm11, %v1390_v26, %v3898_v13  ;;  %v3020_v26 = vld [vmem:[%s4424_s11] ss:$0 sm:$0xff] }
0x11aa   :  { %1496 = vrot.lane.b32.xlu1 %v1391_v27, %s3335_s5 }
0x11c9   :  { %v1452_v50 = vpop.permute.xlu2 %1451 }
0x11ca   :  { %v1454_v7 = vmul.f32 %v1452_v50, %v1449_v28  ;;  %v3021_v28 = vld [vmem:[%s4427_s14] ss:$0 sm:$0xff] }
0x11cc   :  { %v1460_v31 = vadd.f32 %v1459_v60, %v1454_v7 }
0x11ce   :  { %v1467_v34 = vrot.slane %v1460_v31, 6 }
0x11d0   :  { %1468 = vrot.lane.b32.xlu0 %v1467_v34, %s3335_s5 }
0x11d1   :  { %v3938_v30 = vpop.permute.xlu2 %1463 }
0x11d2   :  { %vm1465_vm5 = vcmp.eq.s32.totalorder %v3938_v30, 1 }
0x121c   :  { %v1497_v2 = vpop.permute.xlu1 %1496 }
0x121d   :  { %2956 = vmatmul.msk.f32.vlgmr.msrb.gmra.mxu1 %vm219_vm8, %v1497_v2 }
0x1242   :  { %v1469_v32 = vpop.permute.xlu0 %1468 }
0x1243   :  { %v1471_v13 = vsel %vm1465_vm5, %v1469_v32, %v3910_v22 }
0x1244   :  { %2955 = vmatmul.msk.f32.vlgmr.msrb.gmra.mxu0 %vm219_vm8, %v1471_v13 }
0x124c   :  { %1632 = vmatmul.f32.vlgmr.msra.gmra.mxu0 %v3333_v8 }
0x129a   :  { %v1517_v35 = vpop.f32.mrf.mxu1 }
0x129b   :  { %v1540_v4 = vadd.f32 %v1517_v35, %v3623_v56 }
0x129d   :  { %1542 = vrot.lane.b32.xlu1 %v1540_v4, %s3332_s29 }
0x12c1   :  { %v1492_v29 = vpop.f32.mrf.mxu0 }
0x12c2   :  { %v1493_v6 = vadd.f32 %v3881_v51, %v1492_v29 }
0x12c4   :  { %v1520_v36 = vadd.f32 %v1517_v35, %v1493_v6 }
0x12c6   :  { %v2957_v12 = vmul.f32 -1.442695, %v1520_v36 }
0x12c8   :  { %3115 = vpow2.f32 %v2957_v12 }
0x12c9   :  { %v1633_v55 = vpop.f32.mrf.mxu0 }
0x12ce   :  { %v3116_v41 = vpop.eup %3115 }
0x12cf   :  { %v1524_v48 = vadd.f32 1.0, %v3116_v41 }
0x12d1   :  { %3117 = vrcp.f32 %v1524_v48  ;;  %v1536_v45 = vand.u32 2147483648, %v1524_v48  ;;  %vm1530_vm10 = vweird.f32 %v1524_v48  ;;  %v1534_v56 = vand.u32 2147483647, %v1524_v48 }
0x12d3   :  { %v1537_v47 = vor.u32 1.1754944e-38, %v1536_v45  ;;  %vm1535_vm13 = vcmp.eq.f32.partialorder %v1534_v56, 8.507059e+37  ;;  %v4006_v45 = vld [vmem:[#allocation7 + $0x18] sm:$0xff]  ;;  %v4008_v56 = vld [vmem:[#allocation7 + $0x10] sm:$0xff] }
0x12d4   :  { %1722 = vmatpush.msrb.mxu2 %v4006_v45 }
0x12d6   :  { %1723 = vmatpush.msrb.mxu2 %v4008_v56 }
0x12d7   :  { %v3118_v0 = vpop.eup %3117 }
0x12d8   :  { %v1526_v52 = vmul.f32 %v3118_v0, %v1524_v48  ;;  %vm1531_vm9 = vweird.f32 %v3118_v0 }
0x12d9   :  { %vm1532_vm12 = vmor %vm1530_vm10, %vm1531_vm9 }
0x12da   :  { %v1527_v42 = vsub.f32 1.0, %v1526_v52 }
0x12dc   :  { %v1528_v22 = vmul.f32 %v3118_v0, %v1527_v42 }
0x12de   :  { %v1529_v44 = vadd.f32 %v3118_v0, %v1528_v22 }
0x12e0   :  { %v1533_v39 = vsel %vm1532_vm12, %v3118_v0, %v1529_v44 }
0x12e1   :  { %v1538_v53 = vsel %vm1535_vm13, %v1537_v47, %v1533_v39  ;;  %v3022_v39 = vld [vmem:[%s4432_s19] ss:$0 sm:$0xff]  ;;  %v4014_v47 = vld [vmem:[#allocation6 + $0x18] sm:$0xff] }
0x12e2   :  { %v1552_v1 = vsub.f32 1.0, %v1538_v53  ;;  %v1558_v5 = vmul.f32 %v1538_v53, %v1391_v27  ;;  %1702 = vmatpush.msra.mxu1 %v4014_v47  ;;  %1854 = vmatpush.msrb.mxu0 %v4014_v47 }
0x130f   :  { %v1543_v51 = vpop.permute.xlu1 %1542 }
0x1310   :  { %v1545_v58 = vmul.f32 %v1543_v51, %v1538_v53  ;;  %v4016_v51 = vld [vmem:[#allocation7 + $0x8] sm:$0xff]  ;;  %v4019_v53 = vld [vmem:[#allocation6 + $0x10] sm:$0xff] }
0x1311   :  { %1703 = vmatpush.msra.mxu1 %v4019_v53  ;;  %1855 = vmatpush.msrb.mxu0 %v4019_v53 }
0x1312   :  { %1547 = vrot.lane.b32.xlu2 %v1545_v58, %s3332_s29  ;;  %v4024_v58 = vld [vmem:[#allocation6 + $0x8] sm:$0xff]  ;;  %1724 = vmatpush.msrb.mxu2 %v4016_v51 }
0x1313   :  { %1704 = vmatpush.msra.mxu1 %v4024_v58  ;;  %1856 = vmatpush.msrb.mxu0 %v4024_v58 }
0x131a   :  { %1658 = vrot.lane.b32.xlu2 %v3019_v18, %s3332_s29 }
0x136c   :  { %v1548_v57 = vpop.permute.xlu2 %1547 }
0x136d   :  { %v1550_v43 = vadd.f32 %v1548_v57, %v1493_v6  ;;  %v4026_v57 = vld [vmem:[#allocation7] sm:$0xff] }
0x136e   :  { %1725 = vmatpush.msrb.mxu2 %v4026_v57 }
0x136f   :  { %3119 = vtanh.f32 %v1550_v43  ;;  %v4031_v43 = vld [vmem:[#allocation6] sm:$0xff] }
0x1370   :  { %1705 = vmatpush.msra.mxu1 %v4031_v43  ;;  %1857 = vmatpush.msrb.mxu0 %v4031_v43 }
0x1372   :  { %1879 = vmatpush.msrb.mxu1 %v4006_v45  ;;  %2032 = vmatpush.msra.mxu0 %v4006_v45 }
0x1374   :  { %v3990_v24 = vpop.permute.xlu2 %1658  ;;  %1880 = vmatpush.msrb.mxu1 %v4008_v56  ;;  %2033 = vmatpush.msra.mxu0 %v4008_v56 }
0x1375   :  { %v3120_v59 = vpop.eup %3119  ;;  %v1661_v25 = vadd.f32 %v3990_v24, %v1633_v55 }
0x1376   :  { %1554 = vrot.lane.b32.xlu0 %v3120_v59, %s3335_s5  ;;  %1881 = vmatpush.msrb.mxu1 %v4016_v51 }
0x1377   :  { %2034 = vmatpush.msra.mxu0 %v4016_v51 }
0x1378   :  { %1882 = vmatpush.msrb.mxu1 %v4026_v57 }
0x1379   :  { %2035 = vmatpush.msra.mxu0 %v4026_v57 }
0x137e   :  { %1663 = vrot.lane.b32.xlu0 %v1661_v25, %s3332_s29 }
0x13e8   :  { %v1555_v3 = vpop.permute.xlu0 %1554 }
0x13e9   :  { %v1557_v9 = vmul.f32 %v1555_v3, %v1552_v1 }
0x13eb   :  { %v1559_v14 = vadd.f32 %v1558_v5, %v1557_v9 }
0x13ed   :  { %v1560_v15 = vsel %vm1465_vm5, %v1559_v14, 0.0  ;;  %v4082_v14 = vld [vmem:[%s4431_s18] ss:$0 sm:$0xff] }
0x13ee   :  { %1565 = vrot.lane.b32.xlu1 %v1560_v15, %s3335_s5 }
0x13f0   :  { %v1664_v41 = vpop.permute.xlu0 %1663 }
0x1460   :  { %v1566_v40 = vpop.permute.xlu1 %1565 }
0x1461   :  { %2958 = vmatmul.msk.f32.vlgmr.msra.gmra.mxu2 %vm219_vm8, %v1566_v40 }
0x1462   :  { %1941 = vmatpush.msra.mxu2 %v3965_v17 }
0x1464   :  { %1942 = vmatpush.msra.mxu2 %v3967_v62 }
0x1466   :  { %1943 = vmatpush.msra.mxu2 %v3976_v16 }
0x1468   :  { %1944 = vmatpush.msra.mxu2 %v3980_v20 }
0x1469   :  { %1726 = vmatmul.f32.vlgmr.msrb.gmra.mxu2 %v3333_v8 }
0x146a   :  { %2160 = vmatpush.msrb.mxu2 %v4014_v47 }
0x146c   :  { %2161 = vmatpush.msrb.mxu2 %v4019_v53 }
0x146e   :  { %2162 = vmatpush.msrb.mxu2 %v4024_v58 }
0x1470   :  { %2163 = vmatpush.msrb.mxu2 %v4031_v43 }
0x14e4   :  { %v1586_v27 = vpop.f32.mrf.mxu2 }
0x14e5   :  { %v1587_v11 = vadd.f32 %v3020_v26, %v1586_v27 }
0x14e7   :  { %2959 = vmatmul.msk.f32.vlgmr.msra.gmra.mxu3 %vm1592_vm14, %v1587_v11 }
0x14e8   :  { %2007 = vmatpush.msra.mxu3 %v4014_v47 }
0x14ea   :  { %2008 = vmatpush.msra.mxu3 %v4019_v53 }
0x14ec   :  { %2009 = vmatpush.msra.mxu3 %v4024_v58  ;;  %v1727_v3 = vpop.f32.mrf.mxu2 }
0x14ee   :  { %2010 = vmatpush.msra.mxu3 %v4031_v43 }
0x156a   :  { %v1613_v50 = vpop.f32.mrf.mxu3 }
0x156b   :  { %v4000_v60 = vadd.f32 %v3021_v28, %v1613_v50 }
0x156d   :  { %v1636_v7 = vadd.f32 %v1633_v55, %v4000_v60 }
0x156f   :  { %v2960_v31 = vmul.f32 -1.442695, %v1636_v7 }
0x1571   :  { %3121 = vpow2.f32 %v2960_v31 }
0x1577   :  { %v3122_v34 = vpop.eup %3121 }
0x1578   :  { %v1640_v2 = vadd.f32 1.0, %v3122_v34 }
0x157a   :  { %3123 = vrcp.f32 %v1640_v2  ;;  %v1652_v4 = vand.u32 2147483648, %v1640_v2  ;;  %v1650_v6 = vand.u32 2147483647, %v1640_v2  ;;  %vm1646_vm10 = vweird.f32 %v1640_v2 }
0x157c   :  { %v1653_v12 = vor.u32 1.1754944e-38, %v1652_v4  ;;  %vm1651_vm13 = vcmp.eq.f32.partialorder %v1650_v6, 8.507059e+37 }
0x1580   :  { %v3124_v32 = vpop.eup %3123 }
0x1581   :  { %v1642_v13 = vmul.f32 %v3124_v32, %v1640_v2  ;;  %vm1647_vm9 = vweird.f32 %v3124_v32 }
0x1582   :  { %vm1648_vm12 = vmor %vm1646_vm10, %vm1647_vm9 }
0x1583   :  { %v1643_v35 = vsub.f32 1.0, %v1642_v13 }
0x1585   :  { %v1644_v29 = vmul.f32 %v3124_v32, %v1643_v35 }
0x1587   :  { %v1645_v36 = vadd.f32 %v3124_v32, %v1644_v29 }
0x1589   :  { %v1649_v48 = vsel %vm1648_vm12, %v3124_v32, %v1645_v36 }
0x158a   :  { %v1654_v0 = vsel %vm1651_vm13, %v1653_v12, %v1649_v48 }
0x158b   :  { %v1666_v52 = vmul.f32 %v1664_v41, %v1654_v0  ;;  %v1673_v8 = vsub.f32 1.0, %v1654_v0  ;;  %v1679_v23 = vmul.f32 0.0, %v1654_v0 }
0x158d   :  { %1668 = vrot.lane.b32.xlu1 %v1666_v52, %s3332_s29 }
0x1595   :  { %1752 = vrot.lane.b32.xlu1 %v3022_v39, %s3332_s29 }
0x15ff   :  { %v1669_v42 = vpop.permute.xlu1 %1668 }
0x1600   :  { %v1671_v22 = vadd.f32 %v1669_v42, %v4000_v60 }
0x1602   :  { %3125 = vtanh.f32 %v1671_v22 }
0x1607   :  { %v4065_v1 = vpop.permute.xlu1 %1752 }
0x1608   :  { %v3126_v44 = vpop.eup %3125  ;;  %v1755_v5 = vadd.f32 %v4065_v1, %v1727_v3 }
0x1609   :  { %1675 = vrot.lane.b32.xlu2 %v3126_v44, %s3335_s5 }
0x1663   :  { %v1676_v59 = vpop.permute.xlu2 %1675 }
0x1664   :  { %v1678_v61 = vmul.f32 %v1676_v59, %v1673_v8 }
0x1666   :  { %v1680_v63 = vadd.f32 %v1679_v23, %v1678_v61 }
0x1668   :  { %v4061_v33 = vsel %vm292_vm7, %v1680_v63, 0.0 }
0x1669   :  { %1686 = vrot.lane.b32.xlu0 %v4061_v33, %s3335_s5 }
0x1671   :  { %1757 = vrot.lane.b32.xlu0 %v1755_v5, %s3332_s29 }
0x16db   :  { %v1687_v9 = vpop.permute.xlu0 %1686 }
0x16dc   :  { %2961 = vmatmul.msk.f32.vlgmr.msra.gmra.mxu1 %vm219_vm8, %v1687_v9  ;;  %2963 = vmatmul.msk.f32.vlgmr.msrb.gmra.mxu3 %vm219_vm8, %v1687_v9 }
0x16dd   :  { %2094 = vmatpush.msra.mxu1 %v3965_v17  ;;  %2185 = vmatpush.msrb.mxu3 %v4006_v45 }
0x16df   :  { %2095 = vmatpush.msra.mxu1 %v3967_v62  ;;  %2186 = vmatpush.msrb.mxu3 %v4008_v56 }
0x16e1   :  { %2096 = vmatpush.msra.mxu1 %v3976_v16  ;;  %2187 = vmatpush.msrb.mxu3 %v4016_v51 }
0x16e3   :  { %2097 = vmatpush.msra.mxu1 %v3980_v20  ;;  %2188 = vmatpush.msrb.mxu3 %v4026_v57  ;;  %v1758_v13 = vpop.permute.xlu0 %1757 }
0x1759   :  { %v1707_v15 = vpop.f32.mrf.mxu1 }
0x175a   :  { %v1708_v18 = vadd.f32 %v4082_v14, %v1707_v15 }
0x175c   :  { %v1730_v19 = vadd.f32 %v1727_v3, %v1708_v18 }
0x175e   :  { %v2962_v40 = vmul.f32 -1.442695, %v1730_v19 }
0x175f   :  { %v1793_v55 = vpop.f32.mrf.mxu3 }
0x1760   :  { %3127 = vpow2.f32 %v2962_v40  ;;  %v1816_v25 = vadd.f32 %v1793_v55, %v3990_v24  ;;  %v1796_v6 = vadd.f32 %v1793_v55, %v4000_v60 }
0x1762   :  { %1818 = vrot.lane.b32.xlu2 %v1816_v25, %s3332_s29  ;;  %v2964_v36 = vmul.f32 -1.442695, %v1796_v6 }
0x1766   :  { %v3128_v26 = vpop.eup %3127 }
0x1767   :  { %v1734_v27 = vadd.f32 1.0, %v3128_v26 }
0x1769   :  { %3129 = vrcp.f32 %v1734_v27  ;;  %v1746_v7 = vand.u32 2147483648, %v1734_v27  ;;  %v1744_v34 = vand.u32 2147483647, %v1734_v27  ;;  %vm1740_vm9 = vweird.f32 %v1734_v27 }
0x176a   :  { %3131 = vpow2.f32 %v2964_v36 }
0x176b   :  { %v1747_v32 = vor.u32 1.1754944e-38, %v1746_v7  ;;  %vm1745_vm12 = vcmp.eq.f32.partialorder %v1744_v34, 8.507059e+37 }
0x176f   :  { %v3130_v11 = vpop.eup %3129 }
0x1770   :  { %v1736_v28 = vmul.f32 %v3130_v11, %v1734_v27  ;;  %vm1741_vm14 = vweird.f32 %v3130_v11  ;;  %v3132_v12 = vpop.eup %3131 }
0x1771   :  { %vm1742_vm10 = vmor %vm1740_vm9, %vm1741_vm14  ;;  %v1800_v41 = vadd.f32 1.0, %v3132_v12 }
0x1772   :  { %v1737_v50 = vsub.f32 1.0, %v1736_v28 }
0x1773   :  { %3133 = vrcp.f32 %v1800_v41  ;;  %v1812_v44 = vand.u32 2147483648, %v1800_v41  ;;  %vm1806_vm14 = vweird.f32 %v1800_v41  ;;  %v1810_v39 = vand.u32 2147483647, %v1800_v41 }
0x1774   :  { %v1738_v31 = vmul.f32 %v3130_v11, %v1737_v50 }
0x1775   :  { %v1813_v59 = vor.u32 1.1754944e-38, %v1812_v44 }
0x1776   :  { %v1739_v2 = vadd.f32 %v3130_v11, %v1738_v31 }
0x1778   :  { %v1743_v35 = vsel %vm1742_vm10, %v3130_v11, %v1739_v2  ;;  %vm1811_vm10 = vcmp.eq.f32.partialorder %v1810_v39, 8.507059e+37 }
0x1779   :  { %v1748_v4 = vsel %vm1745_vm12, %v1747_v32, %v1743_v35  ;;  %v3134_v48 = vpop.eup %3133 }
0x177a   :  { %v1760_v29 = vmul.f32 %v1758_v13, %v1748_v4  ;;  %v1802_v0 = vmul.f32 %v3134_v48, %v1800_v41  ;;  %vm1807_vm13 = vweird.f32 %v3134_v48  ;;  %v1767_v55 = vsub.f32 1.0, %v1748_v4 }
0x177b   :  { %vm1808_vm9 = vmor %vm1806_vm14, %vm1807_vm13  ;;  %v1773_v26 = vmul.f32 0.0, %v1748_v4 }
0x177c   :  { %1762 = vrot.lane.b32.xlu2 %v1760_v29, %s3332_s29  ;;  %v1803_v52 = vsub.f32 1.0, %v1802_v0 }
0x177e   :  { %v1804_v42 = vmul.f32 %v3134_v48, %v1803_v52 }
0x1780   :  { %v1805_v22 = vadd.f32 %v3134_v48, %v1804_v42 }
0x1782   :  { %v1809_v8 = vsel %vm1808_vm9, %v3134_v48, %v1805_v22 }
0x1783   :  { %v1814_v61 = vsel %vm1811_vm10, %v1813_v59, %v1809_v8 }
0x1784   :  { %v1834_v7 = vmul.f32 %v1814_v61, %v4061_v33 }
0x17bc   :  { %v1819_v23 = vpop.permute.xlu2 %1818 }
0x17bd   :  { %v1821_v63 = vmul.f32 %v1819_v23, %v1814_v61 }
0x17bf   :  { %1823 = vrot.lane.b32.xlu1 %v1821_v63, %s3332_s29 }
0x17d6   :  { %v1763_v3 = vpop.permute.xlu2 %1762 }
0x17d7   :  { %v1765_v5 = vadd.f32 %v1763_v3, %v1708_v18  ;;  %v1828_v18 = vsub.f32 1.0, %v1814_v61 }
0x17d9   :  { %3135 = vtanh.f32 %v1765_v5 }
0x17df   :  { %v3136_v9 = vpop.eup %3135 }
0x17e0   :  { %1769 = vrot.lane.b32.xlu1 %v3136_v9, %s3335_s5 }
0x1831   :  { %v1824_v15 = vpop.permute.xlu1 %1823 }
0x1832   :  { %v1826_v19 = vadd.f32 %v1824_v15, %v4000_v60 }
0x1834   :  { %3137 = vtanh.f32 %v1826_v19 }
0x183a   :  { %v3138_v40 = vpop.eup %3137 }
0x183b   :  { %1830 = vrot.lane.b32.xlu0 %v3138_v40, %s3335_s5 }
0x1852   :  { %v1770_v25 = vpop.permute.xlu1 %1769 }
0x1853   :  { %v1772_v27 = vmul.f32 %v1770_v25, %v1767_v55 }
0x1855   :  { %v1774_v11 = vadd.f32 %v1773_v26, %v1772_v27 }
0x1857   :  { %v4095_v28 = vsel %vm292_vm7, %v1774_v11, 0.0 }
0x1858   :  { %1863 = vrot.lane.b32.xlu0 %v4095_v28, %s3335_s5 }
0x18ad   :  { %v1831_v50 = vpop.permute.xlu0 %1830 }
0x18ae   :  { %v1833_v31 = vmul.f32 %v1831_v50, %v1828_v18 }
0x18b0   :  { %v1835_v34 = vadd.f32 %v1834_v7, %v1833_v31 }
0x18b2   :  { %v4103_v2 = vsel %vm459_vm4, %v1835_v34, %v4061_v33 }
0x18b3   :  { %1838 = vrot.lane.b32.xlu2 %v4103_v2, %s3335_s5 }
0x18ca   :  { %v1864_v49 = vpop.permute.xlu0 %1863 }
0x18cb   :  { %2966 = vmatmul.msk.f32.vlgmr.msrb.gmra.mxu1 %vm219_vm8, %v1864_v49 }
0x18cc   :  { %2313 = vmatpush.msrb.mxu1 %v4014_v47 }
0x18ce   :  { %2314 = vmatpush.msrb.mxu1 %v4019_v53 }
0x18d0   :  { %2315 = vmatpush.msrb.mxu1 %v4024_v58 }
0x18d2   :  { %2316 = vmatpush.msrb.mxu1 %v4031_v43 }
0x190d   :  { %v1839_v32 = vpop.permute.xlu2 %1838 }
0x190e   :  { %2965 = vmatmul.msk.f32.vlgmr.msrb.gmra.mxu0 %vm219_vm8, %v1839_v32  ;;  %2968 = vmatmul.msk.f32.vlgmr.msra.gmra.mxu2 %vm219_vm8, %v1839_v32 }
0x190f   :  { %2247 = vmatpush.msrb.mxu0 %v3965_v17  ;;  %2338 = vmatpush.msra.mxu2 %v4006_v45 }
0x1911   :  { %2248 = vmatpush.msrb.mxu0 %v3967_v62  ;;  %2339 = vmatpush.msra.mxu2 %v4008_v56 }
0x1913   :  { %2249 = vmatpush.msrb.mxu0 %v3976_v16  ;;  %2340 = vmatpush.msra.mxu2 %v4016_v51 }
0x1915   :  { %2250 = vmatpush.msrb.mxu0 %v3980_v20  ;;  %2341 = vmatpush.msra.mxu2 %v4026_v57 }
0x1948   :  { %v1884_v33 = vpop.f32.mrf.mxu1 }
0x1949   :  { %v1907_v13 = vadd.f32 %v1884_v33, %v4065_v1 }
0x194b   :  { %1909 = vrot.lane.b32.xlu1 %v1907_v13, %s3332_s29 }
0x198b   :  { %v1859_v35 = vpop.f32.mrf.mxu0 }
0x198c   :  { %v1860_v4 = vadd.f32 %v4082_v14, %v1859_v35 }
0x198e   :  { %v1887_v29 = vadd.f32 %v1884_v33, %v1860_v4 }
0x1990   :  { %v2967_v6 = vmul.f32 -1.442695, %v1887_v29 }
0x1991   :  { %v1946_v36 = vpop.f32.mrf.mxu2 }
0x1992   :  { %v1969_v12 = vadd.f32 %v1946_v36, %v3990_v24  ;;  %3139 = vpow2.f32 %v2967_v6  ;;  %v1949_v61 = vadd.f32 %v1946_v36, %v4000_v60 }
0x1994   :  { %1971 = vrot.lane.b32.xlu2 %v1969_v12, %s3332_s29  ;;  %v2969_v9 = vmul.f32 -1.442695, %v1949_v61 }
0x1998   :  { %v3140_v41 = vpop.eup %3139 }
0x1999   :  { %v1891_v48 = vadd.f32 1.0, %v3140_v41 }
0x199b   :  { %3141 = vrcp.f32 %v1891_v48  ;;  %v1903_v39 = vand.u32 2147483648, %v1891_v48  ;;  %vm1897_vm12 = vweird.f32 %v1891_v48  ;;  %v1901_v8 = vand.u32 2147483647, %v1891_v48 }
0x199c   :  { %3143 = vpow2.f32 %v2969_v9 }
0x199d   :  { %v1904_v23 = vor.u32 1.1754944e-38, %v1903_v39  ;;  %vm1902_vm14 = vcmp.eq.f32.partialorder %v1901_v8, 8.507059e+37 }
0x19a1   :  { %v3142_v0 = vpop.eup %3141 }
0x19a2   :  { %v1893_v52 = vmul.f32 %v3142_v0, %v1891_v48  ;;  %vm1898_vm7 = vweird.f32 %v3142_v0  ;;  %v3144_v15 = vpop.eup %3143 }
0x19a3   :  { %vm1899_vm13 = vmor %vm1897_vm12, %vm1898_vm7  ;;  %v1953_v19 = vadd.f32 1.0, %v3144_v15 }
0x19a4   :  { %v1894_v42 = vsub.f32 1.0, %v1893_v52 }
0x19a5   :  { %3145 = vrcp.f32 %v1953_v19  ;;  %v1965_v11 = vand.u32 2147483648, %v1953_v19  ;;  %vm1959_vm10 = vweird.f32 %v1953_v19  ;;  %v1963_v18 = vand.u32 2147483647, %v1953_v19 }
0x19a6   :  { %v1895_v22 = vmul.f32 %v3142_v0, %v1894_v42 }
0x19a7   :  { %v1966_v7 = vor.u32 1.1754944e-38, %v1965_v11  ;;  %vm1964_vm12 = vcmp.eq.f32.partialorder %v1963_v18, 8.507059e+37 }
0x19a8   :  { %v1896_v44 = vadd.f32 %v3142_v0, %v1895_v22 }
0x19aa   :  { %v1900_v59 = vsel %vm1899_vm13, %v3142_v0, %v1896_v44 }
0x19ab   :  { %v1905_v3 = vsel %vm1902_vm14, %v1904_v23, %v1900_v59  ;;  %v3146_v40 = vpop.eup %3145 }
0x19ac   :  { %v1955_v55 = vmul.f32 %v3146_v40, %v1953_v19  ;;  %vm1960_vm9 = vweird.f32 %v3146_v40  ;;  %v1919_v36 = vsub.f32 1.0, %v1905_v3  ;;  %v1925_v41 = vmul.f32 %v1905_v3, %v4095_v28 }
0x19ad   :  { %vm1961_vm7 = vmor %vm1959_vm10, %vm1960_vm9 }
0x19ae   :  { %v1956_v25 = vsub.f32 1.0, %v1955_v55 }
0x19b0   :  { %v1957_v26 = vmul.f32 %v3146_v40, %v1956_v25 }
0x19b2   :  { %v1958_v27 = vadd.f32 %v3146_v40, %v1957_v26 }
0x19b4   :  { %v1962_v50 = vsel %vm1961_vm7, %v3146_v40, %v1958_v27 }
0x19b5   :  { %v1967_v34 = vsel %vm1964_vm12, %v1966_v7, %v1962_v50 }
0x19b6   :  { %v1981_v52 = vsub.f32 1.0, %v1967_v34  ;;  %v1987_v22 = vmul.f32 %v1967_v34, %v4103_v2 }
0x19bd   :  { %v1910_v63 = vpop.permute.xlu1 %1909 }
0x19be   :  { %v1912_v5 = vmul.f32 %v1910_v63, %v1905_v3 }
0x19c0   :  { %1914 = vrot.lane.b32.xlu0 %v1912_v5, %s3332_s29 }
0x19ee   :  { %v1972_v31 = vpop.permute.xlu2 %1971 }
0x19ef   :  { %v1974_v49 = vmul.f32 %v1972_v31, %v1967_v34 }
0x19f1   :  { %1976 = vrot.lane.b32.xlu1 %v1974_v49, %s3332_s29 }
0x1a32   :  { %v1915_v32 = vpop.permute.xlu0 %1914 }
0x1a33   :  { %v1917_v33 = vadd.f32 %v1915_v32, %v1860_v4 }
0x1a35   :  { %3147 = vtanh.f32 %v1917_v33 }
0x1a3b   :  { %v3148_v13 = vpop.eup %3147 }
0x1a3c   :  { %1921 = vrot.lane.b32.xlu2 %v3148_v13, %s3335_s5 }
0x1a63   :  { %v1977_v35 = vpop.permute.xlu1 %1976 }
0x1a64   :  { %v1979_v29 = vadd.f32 %v1977_v35, %v4000_v60 }
0x1a66   :  { %3149 = vtanh.f32 %v1979_v29 }
0x1a6c   :  { %v3150_v6 = vpop.eup %3149 }
0x1a6d   :  { %1983 = vrot.lane.b32.xlu0 %v3150_v6, %s3335_s5 }
0x1a96   :  { %v1922_v12 = vpop.permute.xlu2 %1921 }
0x1a97   :  { %v1924_v48 = vmul.f32 %v1922_v12, %v1919_v36 }
0x1a99   :  { %v4134_v0 = vadd.f32 %v1925_v41, %v1924_v48 }
0x1a9b   :  { %v4140_v4 = vsel %vm459_vm4, %v4134_v0, %v4095_v28 }
0x1a9c   :  { %2016 = vrot.lane.b32.xlu1 %v4140_v4, %s3335_s5 }
0x1adf   :  { %v1984_v42 = vpop.permute.xlu0 %1983 }
0x1ae0   :  { %v1986_v44 = vmul.f32 %v1984_v42, %v1981_v52 }
0x1ae2   :  { %v1988_v39 = vadd.f32 %v1987_v22, %v1986_v44 }
0x1ae4   :  { %v4148_v8 = vsel %vm629_vm2, %v1988_v39, %v4103_v2 }
0x1ae5   :  { %1991 = vrot.lane.b32.xlu2 %v4148_v8, %s3335_s5 }
0x1b0e   :  { %v2017_v59 = vpop.permute.xlu1 %2016 }
0x1b0f   :  { %2971 = vmatmul.msk.f32.vlgmr.msra.gmra.mxu0 %vm219_vm8, %v2017_v59 }
0x1b10   :  { %2466 = vmatpush.msra.mxu0 %v4014_v47 }
0x1b12   :  { %2467 = vmatpush.msra.mxu0 %v4019_v53 }
0x1b14   :  { %2468 = vmatpush.msra.mxu0 %v4024_v58 }
0x1b16   :  { %2469 = vmatpush.msra.mxu0 %v4031_v43 }
0x1b3f   :  { %v1992_v23 = vpop.permute.xlu2 %1991 }
0x1b40   :  { %2970 = vmatmul.msk.f32.vlgmr.msra.gmra.mxu3 %vm219_vm8, %v1992_v23  ;;  %2973 = vmatmul.msk.f32.vlgmr.msra.gmra.mxu1 %vm219_vm8, %v1992_v23 }
0x1b41   :  { %2400 = vmatpush.msra.mxu3 %v3965_v17  ;;  %2491 = vmatpush.msra.mxu1 %v4006_v45 }
0x1b43   :  { %2401 = vmatpush.msra.mxu3 %v3967_v62  ;;  %2492 = vmatpush.msra.mxu1 %v4008_v56 }
0x1b45   :  { %2402 = vmatpush.msra.mxu3 %v3976_v16  ;;  %2493 = vmatpush.msra.mxu1 %v4016_v51 }
0x1b47   :  { %2403 = vmatpush.msra.mxu3 %v3980_v20  ;;  %2494 = vmatpush.msra.mxu1 %v4026_v57 }
0x1b8c   :  { %v2037_v2 = vpop.f32.mrf.mxu0 }
0x1b8d   :  { %v2060_v61 = vadd.f32 %v2037_v2, %v4065_v1 }
0x1b8f   :  { %2062 = vrot.lane.b32.xlu0 %v2060_v61, %s3332_s29 }
0x1bbd   :  { %v2099_v63 = vpop.f32.mrf.mxu1 }
0x1bbe   :  { %v2122_v3 = vadd.f32 %v2099_v63, %v3990_v24  ;;  %v2102_v49 = vadd.f32 %v2099_v63, %v4000_v60 }
0x1bc0   :  { %2124 = vrot.lane.b32.xlu1 %v2122_v3, %s3332_s29  ;;  %v2974_v35 = vmul.f32 -1.442695, %v2102_v49 }
0x1bc3   :  { %v2012_v5 = vpop.f32.mrf.mxu3 }
0x1bc4   :  { %v2013_v9 = vadd.f32 %v4082_v14, %v2012_v5 }
0x1bc6   :  { %v2040_v15 = vadd.f32 %v2037_v2, %v2013_v9 }
0x1bc8   :  { %v2972_v19 = vmul.f32 -1.442695, %v2040_v15 }
0x1bca   :  { %3151 = vpow2.f32 %v2972_v19 }
0x1bd0   :  { %v3152_v40 = vpop.eup %3151 }
0x1bd1   :  { %v2044_v55 = vadd.f32 1.0, %v3152_v40 }
0x1bd3   :  { %3153 = vrcp.f32 %v2044_v55  ;;  %v2056_v50 = vand.u32 2147483648, %v2044_v55  ;;  %vm2050_vm14 = vweird.f32 %v2044_v55  ;;  %v2054_v7 = vand.u32 2147483647, %v2044_v55 }
0x1bd4   :  { %3155 = vpow2.f32 %v2974_v35 }
0x1bd5   :  { %v2057_v34 = vor.u32 1.1754944e-38, %v2056_v50  ;;  %vm2055_vm10 = vcmp.eq.f32.partialorder %v2054_v7, 8.507059e+37 }
0x1bd9   :  { %v3154_v25 = vpop.eup %3153 }
0x1bda   :  { %v2046_v26 = vmul.f32 %v3154_v25, %v2044_v55  ;;  %vm2051_vm13 = vweird.f32 %v3154_v25  ;;  %v3156_v29 = vpop.eup %3155  ;;  %v1928_v55 = vsel %vm459_vm4, %v4134_v0, 0.0 }
0x1bdb   :  { %vm2052_vm9 = vmor %vm2050_vm14, %vm2051_vm13  ;;  %v2106_v6 = vadd.f32 1.0, %v3156_v29 }
0x1bdc   :  { %v2047_v27 = vsub.f32 1.0, %v2046_v26 }
0x1bdd   :  { %3157 = vrcp.f32 %v2106_v6  ;;  %v2118_v42 = vand.u32 2147483648, %v2106_v6  ;;  %vm2112_vm12 = vweird.f32 %v2106_v6  ;;  %v2116_v22 = vand.u32 2147483647, %v2106_v6 }
0x1bde   :  { %v2048_v11 = vmul.f32 %v3154_v25, %v2047_v27  ;;  %v2847_v27 = vrot.slane %v1928_v55, 6 }
0x1bdf   :  { %v2119_v39 = vor.u32 1.1754944e-38, %v2118_v42  ;;  %vm2117_vm14 = vcmp.eq.f32.partialorder %v2116_v22, 8.507059e+37 }
0x1be0   :  { %v2049_v18 = vadd.f32 %v3154_v25, %v2048_v11 }
0x1be2   :  { %v2053_v31 = vsel %vm2052_vm9, %v3154_v25, %v2049_v18  ;;  %vm2864_vm9 = vcmask 1041408  }
0x1be3   :  { %v2058_v32 = vsel %vm2055_vm10, %v2057_v34, %v2053_v31  ;;  %v3158_v36 = vpop.eup %3157  ;;  %v2865_v54 = vsel %vm2864_vm9, %v4095_v28, %v2847_v27 }
0x1be4   :  { %v2108_v12 = vmul.f32 %v3158_v36, %v2106_v6  ;;  %vm2113_vm7 = vweird.f32 %v3158_v36  ;;  %v2072_v40 = vsub.f32 1.0, %v2058_v32  ;;  %v2078_v26 = vmul.f32 %v2058_v32, %v4140_v4 }
0x1be5   :  { %vm2114_vm13 = vmor %vm2112_vm12, %vm2113_vm7 }
0x1be6   :  { %v2109_v41 = vsub.f32 1.0, %v2108_v12 }
0x1be8   :  { %v2110_v48 = vmul.f32 %v3158_v36, %v2109_v41 }
0x1bea   :  { %v2111_v52 = vadd.f32 %v3158_v36, %v2110_v48 }
0x1bec   :  { %v2115_v44 = vsel %vm2114_vm13, %v3158_v36, %v2111_v52 }
0x1bed   :  { %v2120_v23 = vsel %vm2117_vm14, %v2119_v39, %v2115_v44 }
0x1bee   :  { %v2134_v31 = vsub.f32 1.0, %v2120_v23  ;;  %v2140_v49 = vmul.f32 %v2120_v23, %v4148_v8 }
0x1c01   :  { %v2063_v33 = vpop.permute.xlu0 %2062 }
0x1c02   :  { %v2065_v13 = vmul.f32 %v2063_v33, %v2058_v32 }
0x1c04   :  { %2067 = vrot.lane.b32.xlu2 %v2065_v13, %s3332_s29 }
0x1c32   :  { %v2125_v59 = vpop.permute.xlu1 %2124 }
0x1c33   :  { %v2127_v2 = vmul.f32 %v2125_v59, %v2120_v23 }
0x1c35   :  { %2129 = vrot.lane.b32.xlu0 %v2127_v2, %s3332_s29 }
0x1c5e   :  { %v2068_v61 = vpop.permute.xlu2 %2067 }
0x1c5f   :  { %v2070_v63 = vadd.f32 %v2068_v61, %v2013_v9 }
0x1c61   :  { %3159 = vtanh.f32 %v2070_v63 }
0x1c67   :  { %v3160_v3 = vpop.eup %3159 }
0x1c68   :  { %2074 = vrot.lane.b32.xlu1 %v3160_v3, %s3335_s5 }
0x1ca7   :  { %v2130_v5 = vpop.permute.xlu0 %2129 }
0x1ca8   :  { %v2132_v15 = vadd.f32 %v2130_v5, %v4000_v60 }
0x1caa   :  { %3161 = vtanh.f32 %v2132_v15 }
0x1cb0   :  { %v3162_v19 = vpop.eup %3161 }
0x1cb1   :  { %2136 = vrot.lane.b32.xlu2 %v3162_v19, %s3335_s5 }
0x1cda   :  { %v2075_v25 = vpop.permute.xlu1 %2074 }
0x1cdb   :  { %v2077_v9 = vmul.f32 %v2075_v25, %v2072_v40 }
0x1cdd   :  { %v2079_v11 = vadd.f32 %v2078_v26, %v2077_v9 }
0x1cdf   :  { %v2081_v18 = vsel %vm629_vm2, %v2079_v11, 0.0  ;;  %v4187_v50 = vsel %vm629_vm2, %v2079_v11, %v4140_v4 }
0x1ce0   :  { %v2850_v7 = vrot.slane %v2081_v18, 4  ;;  %2169 = vrot.lane.b32.xlu0 %v4187_v50, %s3335_s5 }
0x1ce2   :  { %v4194_v0 = vsel %vm191_vm0, %v2865_v54, %v2850_v7 }
0x1d0b   :  { %v2137_v34 = vpop.permute.xlu2 %2136 }
0x1d0c   :  { %v2139_v32 = vmul.f32 %v2137_v34, %v2134_v31 }
0x1d0e   :  { %v2141_v33 = vadd.f32 %v2140_v49, %v2139_v32 }
0x1d10   :  { %v4200_v10 = vsel %vm798_vm15, %v2141_v33, %v4148_v8 }
0x1d11   :  { %2144 = vrot.lane.b32.xlu1 %v4200_v10, %s3335_s5 }
0x1d52   :  { %v2170_v4 = vpop.permute.xlu0 %2169 }
0x1d53   :  { %2976 = vmatmul.msk.f32.vlgmr.msrb.gmra.mxu3 %vm219_vm8, %v2170_v4 }
0x1d54   :  { %2619 = vmatpush.msrb.mxu3 %v4014_v47 }
0x1d56   :  { %2620 = vmatpush.msrb.mxu3 %v4019_v53 }
0x1d58   :  { %2621 = vmatpush.msrb.mxu3 %v4024_v58 }
0x1d5a   :  { %2622 = vmatpush.msrb.mxu3 %v4031_v43 }
0x1d83   :  { %v2145_v28 = vpop.permute.xlu1 %2144 }
0x1d84   :  { %2975 = vmatmul.msk.f32.vlgmr.msrb.gmra.mxu2 %vm219_vm8, %v2145_v28  ;;  %2978 = vmatmul.msk.f32.vlgmr.msrb.gmra.mxu0 %vm219_vm8, %v2145_v28 }
0x1d85   :  { %2553 = vmatpush.msrb.mxu2 %v3965_v17  ;;  %2644 = vmatpush.msrb.mxu0 %v4006_v45 }
0x1d87   :  { %2554 = vmatpush.msrb.mxu2 %v3967_v62  ;;  %2645 = vmatpush.msrb.mxu0 %v4008_v56 }
0x1d89   :  { %2555 = vmatpush.msrb.mxu2 %v3976_v16  ;;  %2646 = vmatpush.msrb.mxu0 %v4016_v51 }
0x1d8b   :  { %2556 = vmatpush.msrb.mxu2 %v3980_v20  ;;  %2647 = vmatpush.msrb.mxu0 %v4026_v57 }
0x1dd6   :  { %v2190_v8 = vpop.f32.mrf.mxu3 }
0x1dd7   :  { %v2213_v13 = vadd.f32 %v2190_v8, %v4065_v1 }
0x1dd9   :  { %2215 = vrot.lane.b32.xlu0 %v2213_v13, %s3332_s29 }
0x1e01   :  { %v2252_v35 = vpop.f32.mrf.mxu0 }
0x1e02   :  { %v2275_v29 = vadd.f32 %v2252_v35, %v3990_v24  ;;  %v2255_v42 = vadd.f32 %v2252_v35, %v4000_v60 }
0x1e04   :  { %2277 = vrot.lane.b32.xlu2 %v2275_v29, %s3332_s29  ;;  %v2979_v22 = vmul.f32 -1.442695, %v2255_v42 }
0x1e07   :  { %v2165_v6 = vpop.f32.mrf.mxu2 }
0x1e08   :  { %v2166_v36 = vadd.f32 %v4082_v14, %v2165_v6 }
0x1e0a   :  { %v2193_v12 = vadd.f32 %v2190_v8, %v2166_v36 }
0x1e0c   :  { %v2977_v41 = vmul.f32 -1.442695, %v2193_v12 }
0x1e0e   :  { %3163 = vpow2.f32 %v2977_v41 }
0x1e14   :  { %v3164_v48 = vpop.eup %3163 }
0x1e15   :  { %v2197_v52 = vadd.f32 1.0, %v3164_v48 }
0x1e17   :  { %3165 = vrcp.f32 %v2197_v52  ;;  %v2209_v3 = vand.u32 2147483648, %v2197_v52  ;;  %vm2203_vm2 = vweird.f32 %v2197_v52  ;;  %v2207_v5 = vand.u32 2147483647, %v2197_v52 }
0x1e18   :  { %3167 = vpow2.f32 %v2979_v22 }
0x1e19   :  { %v2210_v40 = vor.u32 1.1754944e-38, %v2209_v3  ;;  %vm2208_vm7 = vcmp.eq.f32.partialorder %v2207_v5, 8.507059e+37 }
0x1e1d   :  { %v3166_v44 = vpop.eup %3165 }
0x1e1e   :  { %v2199_v39 = vmul.f32 %v3166_v44, %v2197_v52  ;;  %v3168_v59 = vpop.eup %3167  ;;  %vm2204_vm4 = vweird.f32 %v3166_v44 }
0x1e1f   :  { %v2259_v2 = vadd.f32 1.0, %v3168_v59  ;;  %vm2205_vm10 = vmor %vm2203_vm2, %vm2204_vm4  ;;  %vm2867_vm2 = vcmask 1045504  }
0x1e20   :  { %v2200_v23 = vsub.f32 1.0, %v2199_v39 }
0x1e21   :  { %3169 = vrcp.f32 %v2259_v2  ;;  %v2271_v7 = vand.u32 2147483648, %v2259_v2  ;;  %vm2265_vm13 = vweird.f32 %v2259_v2  ;;  %v2269_v54 = vand.u32 2147483647, %v2259_v2 }
0x1e22   :  { %v2201_v61 = vmul.f32 %v3166_v44, %v2200_v23 }
0x1e23   :  { %v2272_v34 = vor.u32 1.1754944e-38, %v2271_v7  ;;  %vm2270_vm4 = vcmp.eq.f32.partialorder %v2269_v54, 8.507059e+37 }
0x1e24   :  { %v2202_v63 = vadd.f32 %v3166_v44, %v2201_v61 }
0x1e26   :  { %v2206_v19 = vsel %vm2205_vm10, %v3166_v44, %v2202_v63 }
0x1e27   :  { %v3170_v15 = vpop.eup %3169  ;;  %v2211_v25 = vsel %vm2208_vm7, %v2210_v40, %v2206_v19 }
0x1e28   :  { %v2261_v26 = vmul.f32 %v3170_v15, %v2259_v2  ;;  %vm2266_vm12 = vweird.f32 %v3170_v15  ;;  %v2225_v6 = vsub.f32 1.0, %v2211_v25  ;;  %v2231_v41 = vmul.f32 %v2211_v25, %v4187_v50 }
0x1e29   :  { %vm2267_vm14 = vmor %vm2265_vm13, %vm2266_vm12 }
0x1e2a   :  { %v2262_v27 = vsub.f32 1.0, %v2261_v26 }
0x1e2c   :  { %v2263_v11 = vmul.f32 %v3170_v15, %v2262_v27 }
0x1e2e   :  { %v2264_v18 = vadd.f32 %v3170_v15, %v2263_v11 }
0x1e30   :  { %v2268_v31 = vsel %vm2267_vm14, %v3170_v15, %v2264_v18 }
0x1e31   :  { %v2273_v32 = vsel %vm2270_vm4, %v2272_v34, %v2268_v31 }
0x1e32   :  { %v2287_v39 = vsub.f32 1.0, %v2273_v32  ;;  %v2293_v23 = vmul.f32 %v2273_v32, %v4200_v10 }
0x1e4b   :  { %v2216_v55 = vpop.permute.xlu0 %2215 }
0x1e4c   :  { %v2218_v9 = vmul.f32 %v2216_v55, %v2211_v25 }
0x1e4e   :  { %2220 = vrot.lane.b32.xlu2 %v2218_v9, %s3332_s29 }
0x1e5e   :  { %v2278_v49 = vpop.permute.xlu2 %2277 }
0x1e5f   :  { %v2280_v33 = vmul.f32 %v2278_v49, %v2273_v32 }
0x1e61   :  { %2282 = vrot.lane.b32.xlu1 %v2280_v33, %s3332_s29 }
0x1ea8   :  { %v2221_v4 = vpop.permute.xlu2 %2220 }
0x1ea9   :  { %v2223_v28 = vadd.f32 %v2221_v4, %v2166_v36 }
0x1eab   :  { %3171 = vtanh.f32 %v2223_v28 }
0x1eb1   :  { %v3172_v8 = vpop.eup %3171 }
0x1eb2   :  { %2227 = vrot.lane.b32.xlu1 %v3172_v8, %s3335_s5 }
0x1ed3   :  { %v2283_v13 = vpop.permute.xlu1 %2282 }
0x1ed4   :  { %v2285_v35 = vadd.f32 %v2283_v13, %v4000_v60 }
0x1ed6   :  { %3173 = vtanh.f32 %v2285_v35 }
0x1edc   :  { %v3174_v29 = vpop.eup %3173 }
0x1edd   :  { %2289 = vrot.lane.b32.xlu0 %v3174_v29, %s3335_s5 }
0x1f24   :  { %v2228_v12 = vpop.permute.xlu1 %2227 }
0x1f25   :  { %v2230_v48 = vmul.f32 %v2228_v12, %v2225_v6 }
0x1f27   :  { %v2232_v52 = vadd.f32 %v2231_v41, %v2230_v48 }
0x1f29   :  { %v2234_v36 = vsel %vm798_vm15, %v2232_v52, 0.0  ;;  %v4236_v42 = vsel %vm798_vm15, %v2232_v52, %v4187_v50 }
0x1f2a   :  { %v2853_v22 = vrot.slane %v2234_v36, 2  ;;  %2322 = vrot.lane.b32.xlu0 %v4236_v42, %s3335_s5 }
0x1f2c   :  { %v4242_v44 = vsel %vm2867_vm2, %v4194_v0, %v2853_v22 }
0x1f4f   :  { %v2290_v59 = vpop.permute.xlu0 %2289 }
0x1f50   :  { %v2292_v2 = vmul.f32 %v2290_v59, %v2287_v39 }
0x1f52   :  { %v2294_v61 = vadd.f32 %v2293_v23, %v2292_v2 }
0x1f54   :  { %v4248_v38 = vsel %vm962_vm3, %v2294_v61, %v4200_v10 }
0x1f55   :  { %2297 = vrot.lane.b32.xlu2 %v4248_v38, %s3335_s5 }
0x1f9c   :  { %v2323_v50 = vpop.permute.xlu0 %2322 }
0x1f9d   :  { %2981 = vmatmul.msk.f32.vlgmr.msra.gmra.mxu2 %vm219_vm8, %v2323_v50 }
0x1f9e   :  { %2772 = vmatpush.msra.mxu2 %v4014_v47 }
0x1fa0   :  { %2773 = vmatpush.msra.mxu2 %v4019_v53 }
0x1fa2   :  { %2774 = vmatpush.msra.mxu2 %v4024_v58 }
0x1fa4   :  { %2775 = vmatpush.msra.mxu2 %v4031_v43 }
0x1faf   :  { %v2298_v0 = vpop.permute.xlu2 %2297 }
0x1fb0   :  { %2980 = vmatmul.msk.f32.vlgmr.msrb.gmra.mxu1 %vm219_vm8, %v2298_v0  ;;  %2983 = vmatmul.msk.f32.vlgmr.msra.gmra.mxu3 %vm219_vm8, %v2298_v0 }
0x1fb1   :  { %2706 = vmatpush.msrb.mxu1 %v3965_v17  ;;  %2797 = vmatpush.msra.mxu3 %v4006_v45 }
0x1fb3   :  { %2707 = vmatpush.msrb.mxu1 %v3967_v62  ;;  %2798 = vmatpush.msra.mxu3 %v4008_v56 }
0x1fb5   :  { %2708 = vmatpush.msrb.mxu1 %v3976_v16  ;;  %2799 = vmatpush.msra.mxu3 %v4016_v51 }
0x1fb7   :  { %2709 = vmatpush.msrb.mxu1 %v3980_v20  ;;  %2800 = vmatpush.msra.mxu3 %v4026_v57 }
0x2020   :  { %v2343_v47 = vpop.f32.mrf.mxu2 }
0x2021   :  { %v2366_v53 = vadd.f32 %v2343_v47, %v4065_v1 }
0x2023   :  { %2368 = vrot.lane.b32.xlu2 %v2366_v53, %s3332_s29 }
0x202d   :  { %v2318_v62 = vpop.f32.mrf.mxu1 }
0x202e   :  { %v2319_v56 = vadd.f32 %v4082_v14, %v2318_v62 }
0x2030   :  { %v2346_v16 = vadd.f32 %v2343_v47, %v2319_v56 }
0x2032   :  { %v2982_v58 = vmul.f32 -1.442695, %v2346_v16 }
0x2033   :  { %v2405_v17 = vpop.f32.mrf.mxu3 }
0x2034   :  { %v2428_v45 = vadd.f32 %v2405_v17, %v3990_v24  ;;  %3175 = vpow2.f32 %v2982_v58  ;;  %v2408_v5 = vadd.f32 %v2405_v17, %v4000_v60 }
0x2036   :  { %2430 = vrot.lane.b32.xlu1 %v2428_v45, %s3332_s29  ;;  %v2984_v55 = vmul.f32 -1.442695, %v2408_v5 }
0x203a   :  { %v3176_v51 = vpop.eup %3175 }
0x203b   :  { %v2350_v20 = vadd.f32 1.0, %v3176_v51 }
0x203d   :  { %3177 = vrcp.f32 %v2350_v20  ;;  %v2362_v15 = vand.u32 2147483648, %v2350_v20  ;;  %vm2356_vm10 = vweird.f32 %v2350_v20  ;;  %v2360_v19 = vand.u32 2147483647, %v2350_v20 }
0x203e   :  { %3179 = vpow2.f32 %v2984_v55 }
0x203f   :  { %v2363_v25 = vor.u32 1.1754944e-38, %v2362_v15  ;;  %vm2361_vm12 = vcmp.eq.f32.partialorder %v2360_v19, 8.507059e+37 }
0x2043   :  { %v3178_v57 = vpop.eup %3177 }
0x2044   :  { %v2352_v43 = vmul.f32 %v3178_v57, %v2350_v20  ;;  %vm2357_vm15 = vweird.f32 %v3178_v57  ;;  %v3180_v11 = vpop.eup %3179 }
0x2045   :  { %vm2358_vm7 = vmor %vm2356_vm10, %vm2357_vm15  ;;  %v2412_v18 = vadd.f32 1.0, %v3180_v11 }
0x2046   :  { %v2353_v10 = vsub.f32 1.0, %v2352_v43 }
0x2047   :  { %3181 = vrcp.f32 %v2412_v18  ;;  %v2424_v32 = vand.u32 2147483648, %v2412_v18  ;;  %vm2418_vm14 = vweird.f32 %v2412_v18  ;;  %v2422_v33 = vand.u32 2147483647, %v2412_v18 }
0x2048   :  { %v2354_v63 = vmul.f32 %v3178_v57, %v2353_v10 }
0x2049   :  { %v2425_v28 = vor.u32 1.1754944e-38, %v2424_v32  ;;  %vm2423_vm15 = vcmp.eq.f32.partialorder %v2422_v33, 8.507059e+37 }
0x204a   :  { %v2355_v3 = vadd.f32 %v3178_v57, %v2354_v63 }
0x204c   :  { %v2359_v40 = vsel %vm2358_vm7, %v3178_v57, %v2355_v3 }
0x204d   :  { %v2364_v26 = vsel %vm2361_vm12, %v2363_v25, %v2359_v40  ;;  %v3182_v7 = vpop.eup %3181 }
0x204e   :  { %v2414_v54 = vmul.f32 %v3182_v7, %v2412_v18  ;;  %vm2419_vm13 = vweird.f32 %v3182_v7  ;;  %v2378_v36 = vsub.f32 1.0, %v2364_v26  ;;  %v2384_v39 = vmul.f32 %v2364_v26, %v4236_v42 }
0x204f   :  { %vm2420_vm4 = vmor %vm2418_vm14, %vm2419_vm13 }
0x2050   :  { %v2415_v31 = vsub.f32 1.0, %v2414_v54 }
0x2052   :  { %v2416_v34 = vmul.f32 %v3182_v7, %v2415_v31 }
0x2054   :  { %v2417_v49 = vadd.f32 %v3182_v7, %v2416_v34 }
0x2056   :  { %v2421_v4 = vsel %vm2420_vm4, %v3182_v7, %v2417_v49 }
0x2057   :  { %v2426_v13 = vsel %vm2423_vm15, %v2425_v28, %v2421_v4 }
0x2058   :  { %v2440_v61 = vsub.f32 1.0, %v2426_v13  ;;  %v2446_v0 = vmul.f32 %v2426_v13, %v4248_v38 }
0x207d   :  { %v2369_v9 = vpop.permute.xlu2 %2368 }
0x207e   :  { %v2371_v27 = vmul.f32 %v2369_v9, %v2364_v26 }
0x2080   :  { %2373 = vrot.lane.b32.xlu1 %v2371_v27, %s3332_s29 }
0x20a8   :  { %v2431_v8 = vpop.permute.xlu1 %2430 }
0x20a9   :  { %v2433_v35 = vmul.f32 %v2431_v8, %v2426_v13 }
0x20ab   :  { %2435 = vrot.lane.b32.xlu0 %v2433_v35, %s3332_s29 }
0x20f2   :  { %v2374_v29 = vpop.permute.xlu1 %2373 }
0x20f3   :  { %v2376_v6 = vadd.f32 %v2374_v29, %v2319_v56 }
0x20f5   :  { %3183 = vtanh.f32 %v2376_v6 }
0x20fb   :  { %v3184_v12 = vpop.eup %3183 }
0x20fc   :  { %2380 = vrot.lane.b32.xlu0 %v3184_v12, %s3335_s5 }
0x211d   :  { %v2436_v41 = vpop.permute.xlu0 %2435 }
0x211e   :  { %v2438_v48 = vadd.f32 %v2436_v41, %v4000_v60 }
0x2120   :  { %3185 = vtanh.f32 %v2438_v48 }
0x2126   :  { %v3186_v52 = vpop.eup %3185 }
0x2127   :  { %2442 = vrot.lane.b32.xlu2 %v3186_v52, %s3335_s5 }
0x216e   :  { %v2381_v22 = vpop.permute.xlu0 %2380 }
0x216f   :  { %v2383_v59 = vmul.f32 %v2381_v22, %v2378_v36 }
0x2171   :  { %v4279_v23 = vadd.f32 %v2384_v39, %v2383_v59 }
0x2173   :  { %v4285_v2 = vsel %vm962_vm3, %v4279_v23, %v4236_v42 }
0x2174   :  { %2475 = vrot.lane.b32.xlu2 %v4285_v2, %s3335_s5 }
0x2181   :  { %v2443_v50 = vpop.permute.xlu2 %2442 }
0x2182   :  { %v2445_v47 = vmul.f32 %v2443_v50, %v2440_v61 }
0x2184   :  { %v2447_v53 = vadd.f32 %v2446_v0, %v2445_v47 }
0x2186   :  { %v4293_v17 = vsel %vm1126_vm6, %v2447_v53, %v4248_v38 }
0x2187   :  { %2450 = vrot.lane.b32.xlu1 %v4293_v17, %s3335_s5 }
0x21ce   :  { %v2476_v45 = vpop.permute.xlu2 %2475 }
0x21cf   :  { %2986 = vmatmul.msk.f32.vlgmr.msra.gmra.mxu1 %vm219_vm8, %v2476_v45 }
0x21f9   :  { %v2451_v42 = vpop.permute.xlu1 %2450 }
0x21fa   :  { %2985 = vmatmul.msk.f32.vlgmr.msra.gmra.mxu0 %vm219_vm8, %v2451_v42  ;;  %2988 = vmatmul.msk.f32.vlgmr.msrb.gmra.mxu2 %vm219_vm8, %v2451_v42  ;;  %v2387_v42 = vsel %vm962_vm3, %v4279_v23, 0.0 }
0x224c   :  { %v2496_v62 = vpop.f32.mrf.mxu1 }
0x224d   :  { %v2519_v56 = vadd.f32 %v2496_v62, %v4065_v1 }
0x224f   :  { %2521 = vrot.lane.b32.xlu0 %v2519_v56, %s3332_s29 }
0x2277   :  { %v2471_v58 = vpop.f32.mrf.mxu0 }
0x2278   :  { %v2472_v51 = vadd.f32 %v4082_v14, %v2471_v58 }
0x227a   :  { %v2499_v20 = vadd.f32 %v2496_v62, %v2472_v51 }
0x227c   :  { %v2987_v57 = vmul.f32 -1.442695, %v2499_v20 }
0x227d   :  { %v2558_v16 = vpop.f32.mrf.mxu2 }
0x227e   :  { %v2581_v38 = vadd.f32 %v2558_v16, %v3990_v24  ;;  %3187 = vpow2.f32 %v2987_v57  ;;  %v2561_v14 = vadd.f32 %v2558_v16, %v4000_v60 }
0x2280   :  { %2583 = vrot.lane.b32.xlu1 %v2581_v38, %s3332_s29  ;;  %v2989_v18 = vmul.f32 -1.442695, %v2561_v14 }
0x2284   :  { %v3188_v43 = vpop.eup %3187 }
0x2285   :  { %v2503_v10 = vadd.f32 1.0, %v3188_v43 }
0x2287   :  { %3189 = vrcp.f32 %v2503_v10  ;;  %v2515_v40 = vand.u32 2147483648, %v2503_v10  ;;  %vm2509_vm7 = vweird.f32 %v2503_v10  ;;  %v2513_v55 = vand.u32 2147483647, %v2503_v10 }
0x2288   :  { %3191 = vpow2.f32 %v2989_v18 }
0x2289   :  { %v2516_v26 = vor.u32 1.1754944e-38, %v2515_v40  ;;  %vm2514_vm13 = vcmp.eq.f32.partialorder %v2513_v55, 8.507059e+37 }
0x228d   :  { %v3190_v63 = vpop.eup %3189 }
0x228e   :  { %v2505_v3 = vmul.f32 %v3190_v63, %v2503_v10  ;;  %vm2510_vm10 = vweird.f32 %v3190_v63  ;;  %v3192_v7 = vpop.eup %3191  ;;  %v4345_v10 = vld [vmem:[%s4431_s18] ss:$0 sm:$0xff] }
0x228f   :  { %vm2511_vm12 = vmor %vm2509_vm7, %vm2510_vm10  ;;  %v2565_v54 = vadd.f32 1.0, %v3192_v7 }
0x2290   :  { %v2506_v5 = vsub.f32 1.0, %v2505_v3 }
0x2291   :  { %3193 = vrcp.f32 %v2565_v54  ;;  %v2577_v4 = vand.u32 2147483648, %v2565_v54  ;;  %vm2571_vm4 = vweird.f32 %v2565_v54  ;;  %v2575_v28 = vand.u32 2147483647, %v2565_v54 }
0x2292   :  { %v2507_v15 = vmul.f32 %v3190_v63, %v2506_v5 }
0x2293   :  { %v2578_v13 = vor.u32 1.1754944e-38, %v2577_v4  ;;  %vm2576_vm10 = vcmp.eq.f32.partialorder %v2575_v28, 8.507059e+37 }
0x2294   :  { %v2508_v19 = vadd.f32 %v3190_v63, %v2507_v15 }
0x2296   :  { %v2512_v25 = vsel %vm2511_vm12, %v3190_v63, %v2508_v19 }
0x2297   :  { %v2517_v27 = vsel %vm2514_vm13, %v2516_v26, %v2512_v25  ;;  %v3194_v31 = vpop.eup %3193 }
0x2298   :  { %v2567_v34 = vmul.f32 %v3194_v31, %v2565_v54  ;;  %vm2572_vm14 = vweird.f32 %v3194_v31  ;;  %v2531_v39 = vsub.f32 1.0, %v2517_v27  ;;  %v2537_v61 = vmul.f32 %v2517_v27, %v4285_v2 }
0x2299   :  { %vm2573_vm15 = vmor %vm2571_vm4, %vm2572_vm14 }
0x229a   :  { %v2568_v49 = vsub.f32 1.0, %v2567_v34 }
0x229c   :  { %v2569_v32 = vmul.f32 %v3194_v31, %v2568_v49 }
0x229e   :  { %v2570_v33 = vadd.f32 %v3194_v31, %v2569_v32 }
0x22a0   :  { %v2574_v8 = vsel %vm2573_vm15, %v3194_v31, %v2570_v33 }
0x22a1   :  { %v2579_v29 = vsel %vm2576_vm10, %v2578_v13, %v2574_v8 }
0x22a2   :  { %v2593_v56 = vsub.f32 1.0, %v2579_v29  ;;  %v2599_v38 = vmul.f32 %v2579_v29, %v4293_v17 }
0x22c1   :  { %v2522_v9 = vpop.permute.xlu0 %2521 }
0x22c2   :  { %v2524_v11 = vmul.f32 %v2522_v9, %v2517_v27 }
0x22c4   :  { %2526 = vrot.lane.b32.xlu2 %v2524_v11, %s3332_s29 }
0x22f2   :  { %v2584_v35 = vpop.permute.xlu1 %2583 }
0x22f3   :  { %v2586_v6 = vmul.f32 %v2584_v35, %v2579_v29 }
0x22f5   :  { %2588 = vrot.lane.b32.xlu0 %v2586_v6, %s3332_s29 }
0x231e   :  { %v2527_v12 = vpop.permute.xlu2 %2526 }
0x231f   :  { %v2529_v41 = vadd.f32 %v2527_v12, %v2472_v51 }
0x2321   :  { %3195 = vtanh.f32 %v2529_v41 }
0x2327   :  { %v3196_v48 = vpop.eup %3195 }
0x2328   :  { %2533 = vrot.lane.b32.xlu1 %v3196_v48, %s3335_s5 }
0x2367   :  { %v2589_v52 = vpop.permute.xlu0 %2588 }
0x2368   :  { %v2591_v36 = vadd.f32 %v2589_v52, %v4000_v60 }
0x236a   :  { %3197 = vtanh.f32 %v2591_v36 }
0x2370   :  { %v3198_v22 = vpop.eup %3197 }
0x2371   :  { %2595 = vrot.lane.b32.xlu2 %v3198_v22, %s3335_s5 }
0x239a   :  { %v2534_v59 = vpop.permute.xlu1 %2533 }
0x239b   :  { %v2536_v50 = vmul.f32 %v2534_v59, %v2531_v39 }
0x239d   :  { %v2538_v0 = vadd.f32 %v2537_v61, %v2536_v50 }
0x239f   :  { %v2540_v47 = vsel %vm1126_vm6, %v2538_v0, 0.0  ;;  %v4317_v53 = vsel %vm1126_vm6, %v2538_v0, %v4285_v2 }
0x23a0   :  { %v2856_v45 = vrot.slane %v2540_v47, 6  ;;  %2628 = vrot.lane.b32.xlu0 %v4317_v53, %s3335_s5 }
0x23a2   :  { %v4325_v62 = vsel %vm2864_vm9, %v2387_v42, %v2856_v45 }
0x23cb   :  { %v2596_v16 = vpop.permute.xlu2 %2595 }
0x23cc   :  { %v2598_v58 = vmul.f32 %v2596_v16, %v2593_v56 }
0x23ce   :  { %v2600_v51 = vadd.f32 %v2599_v38, %v2598_v58 }
0x23d0   :  { %v4331_v46 = vsel %vm1296_vm11, %v2600_v51, %v4293_v17 }
0x23d1   :  { %2603 = vrot.lane.b32.xlu1 %v4331_v46, %s3335_s5 }
0x2412   :  { %v2629_v2 = vpop.permute.xlu0 %2628 }
0x2413   :  { %2991 = vmatmul.msk.f32.vlgmr.msrb.gmra.mxu0 %vm219_vm8, %v2629_v2 }
0x2443   :  { %v2604_v37 = vpop.permute.xlu1 %2603 }
0x2444   :  { %2990 = vmatmul.msk.f32.vlgmr.msrb.gmra.mxu3 %vm219_vm8, %v2604_v37  ;;  %2993 = vmatmul.msk.f32.vlgmr.msrb.gmra.mxu1 %vm219_vm8, %v2604_v37 }
0x2490   :  { %v2649_v23 = vpop.f32.mrf.mxu0 }
0x2491   :  { %v2672_v20 = vadd.f32 %v2649_v23, %v4065_v1 }
0x2493   :  { %2674 = vrot.lane.b32.xlu2 %v2672_v20, %s3332_s29 }
0x24c1   :  { %v2711_v57 = vpop.f32.mrf.mxu1 }
0x24c2   :  { %v2734_v17 = vadd.f32 %v2711_v57, %v3990_v24  ;;  %v2714_v31 = vadd.f32 %v2711_v57, %v4000_v60 }
0x24c4   :  { %2736 = vrot.lane.b32.xlu0 %v2734_v17, %s3332_s29  ;;  %v2994_v34 = vmul.f32 -1.442695, %v2714_v31 }
0x24c7   :  { %v2624_v43 = vpop.f32.mrf.mxu3 }
0x24c8   :  { %v2625_v63 = vadd.f32 %v4345_v10, %v2624_v43 }
0x24ca   :  { %v2652_v3 = vadd.f32 %v2649_v23, %v2625_v63 }
0x24cc   :  { %v2992_v5 = vmul.f32 -1.442695, %v2652_v3 }
0x24ce   :  { %3199 = vpow2.f32 %v2992_v5 }
0x24d4   :  { %v3200_v15 = vpop.eup %3199 }
0x24d5   :  { %v2656_v19 = vadd.f32 1.0, %v3200_v15  ;;  %v177_v15 = vld [vmem:[%s4433_s20 + $0x18] sm:$0xff] }
0x24d6   :  { %2897 = vmatpush.msra.mxu0 %v177_v15 }
0x24d7   :  { %3201 = vrcp.f32 %v2656_v19  ;;  %v2668_v14 = vand.u32 2147483648, %v2656_v19  ;;  %vm2662_vm6 = vweird.f32 %v2656_v19  ;;  %v2666_v9 = vand.u32 2147483647, %v2656_v19 }
0x24d8   :  { %3203 = vpow2.f32 %v2994_v34 }
0x24d9   :  { %v2669_v11 = vor.u32 1.1754944e-38, %v2668_v14  ;;  %vm2667_vm7 = vcmp.eq.f32.partialorder %v2666_v9, 8.507059e+37 }
0x24dd   :  { %v3202_v40 = vpop.eup %3201 }
0x24de   :  { %v2658_v55 = vmul.f32 %v3202_v40, %v2656_v19  ;;  %vm2663_vm3 = vweird.f32 %v3202_v40  ;;  %v3204_v49 = vpop.eup %3203 }
0x24df   :  { %vm2664_vm9 = vmor %vm2662_vm6, %vm2663_vm3  ;;  %v2718_v32 = vadd.f32 1.0, %v3204_v49 }
0x24e0   :  { %v2659_v25 = vsub.f32 1.0, %v2658_v55 }
0x24e1   :  { %3205 = vrcp.f32 %v2718_v32  ;;  %v2730_v35 = vand.u32 2147483648, %v2718_v32  ;;  %vm2724_vm13 = vweird.f32 %v2718_v32  ;;  %v2728_v29 = vand.u32 2147483647, %v2718_v32 }
0x24e2   :  { %v2660_v24 = vmul.f32 %v3202_v40, %v2659_v25 }
0x24e3   :  { %v2731_v12 = vor.u32 1.1754944e-38, %v2730_v35  ;;  %vm2729_vm4 = vcmp.eq.f32.partialorder %v2728_v29, 8.507059e+37 }
0x24e4   :  { %v2661_v26 = vadd.f32 %v3202_v40, %v2660_v24 }
0x24e6   :  { %v2665_v27 = vsel %vm2664_vm9, %v3202_v40, %v2661_v26 }
0x24e7   :  { %v2670_v18 = vsel %vm2667_vm7, %v2669_v11, %v2665_v27  ;;  %v3206_v33 = vpop.eup %3205 }
0x24e8   :  { %v2720_v4 = vmul.f32 %v3206_v33, %v2718_v32  ;;  %vm2725_vm12 = vweird.f32 %v3206_v33  ;;  %v2684_v0 = vsub.f32 1.0, %v2670_v18  ;;  %v2690_v45 = vmul.f32 %v2670_v18, %v4317_v53 }
0x24e9   :  { %vm2726_vm14 = vmor %vm2724_vm13, %vm2725_vm12 }
0x24ea   :  { %v2721_v28 = vsub.f32 1.0, %v2720_v4 }
0x24ec   :  { %v2722_v8 = vmul.f32 %v3206_v33, %v2721_v28 }
0x24ed   :  { %v2675_v7 = vpop.permute.xlu2 %2674 }
0x24ee   :  { %v2677_v54 = vmul.f32 %v2675_v7, %v2670_v18  ;;  %v2723_v13 = vadd.f32 %v3206_v33, %v2722_v8 }
0x24f0   :  { %2679 = vrot.lane.b32.xlu1 %v2677_v54, %s3332_s29  ;;  %v2727_v6 = vsel %vm2726_vm14, %v3206_v33, %v2723_v13  ;;  %v3024_v33 = vld [vmem:[%s4434_s21] ss:$0 sm:$0xff] }
0x24f1   :  { %v2732_v48 = vsel %vm2729_vm4, %v2731_v12, %v2727_v6 }
0x24f2   :  { %v2746_v51 = vsub.f32 1.0, %v2732_v48  ;;  %v2752_v37 = vmul.f32 %v2732_v48, %v4331_v46 }
0x2536   :  { %v2737_v41 = vpop.permute.xlu0 %2736 }
0x2537   :  { %v2739_v52 = vmul.f32 %v2737_v41, %v2732_v48 }
0x2539   :  { %2741 = vrot.lane.b32.xlu2 %v2739_v52, %s3332_s29 }
0x2562   :  { %v2680_v36 = vpop.permute.xlu1 %2679 }
0x2563   :  { %v2682_v22 = vadd.f32 %v2680_v36, %v2625_v63 }
0x2565   :  { %3207 = vtanh.f32 %v2682_v22 }
0x256b   :  { %v3208_v39 = vpop.eup %3207 }
0x256c   :  { %2686 = vrot.lane.b32.xlu0 %v3208_v39, %s3335_s5 }
0x2593   :  { %v2742_v59 = vpop.permute.xlu2 %2741 }
0x2594   :  { %v2744_v61 = vadd.f32 %v2742_v59, %v4000_v60 }
0x2596   :  { %3209 = vtanh.f32 %v2744_v61 }
0x259c   :  { %v3210_v50 = vpop.eup %3209 }
0x259d   :  { %2748 = vrot.lane.b32.xlu1 %v3210_v50, %s3335_s5 }
0x25de   :  { %v2687_v47 = vpop.permute.xlu0 %2686 }
0x25df   :  { %v2689_v42 = vmul.f32 %v2687_v47, %v2684_v0 }
0x25e1   :  { %v2691_v56 = vadd.f32 %v2690_v45, %v2689_v42 }
0x25e3   :  { %v2693_v16 = vsel %vm1296_vm11, %v2691_v56, 0.0  ;;  %v4360_v38 = vsel %vm1296_vm11, %v2691_v56, %v4317_v53 }
0x25e4   :  { %v2859_v58 = vrot.slane %v2693_v16, 4  ;;  %2781 = vrot.lane.b32.xlu2 %v4360_v38, %s3335_s5 }
0x25e6   :  { %v4366_v60 = vsel %vm191_vm0, %v4325_v62, %v2859_v58 }
0x260f   :  { %v2749_v2 = vpop.permute.xlu1 %2748 }
0x2610   :  { %v2751_v23 = vmul.f32 %v2749_v2, %v2746_v51 }
0x2612   :  { %v2753_v20 = vadd.f32 %v2752_v37, %v2751_v23 }
0x2614   :  { %v2754_v21 = vsel %vm1465_vm5, %v2753_v20, %v4331_v46 }
0x2615   :  { %2756 = vrot.lane.b32.xlu0 %v2754_v21, %s3335_s5 }
0x263e   :  { %v2782_v53 = vpop.permute.xlu2 %2781 }
0x263f   :  { %2996 = vmatmul.msk.f32.vlgmr.msra.gmra.mxu3 %vm219_vm8, %v2782_v53 }
0x2687   :  { %v2757_v57 = vpop.permute.xlu0 %2756 }
0x2688   :  { %2995 = vmatmul.msk.f32.vlgmr.msra.gmra.mxu2 %vm219_vm8, %v2757_v57 }
0x26c2   :  { %v2802_v62 = vpop.f32.mrf.mxu3 }
0x26c3   :  { %v2825_v17 = vadd.f32 %v2802_v62, %v4065_v1  ;;  %v176_v1 = vld [vmem:[%s4433_s20 + $0x10] sm:$0xff] }
0x26c4   :  { %2898 = vmatpush.msra.mxu0 %v176_v1 }
0x26c5   :  { %2827 = vrot.lane.b32.xlu1 %v2825_v17, %s3332_s29 }
0x26cd   :  { %2877 = vrot.lane.b32.xlu1 %v4242_v44, %s3335_s5  ;;  %v175_v44 = vld [vmem:[%s4433_s20 + $0x8] sm:$0xff] }
0x26ce   :  { %2899 = vmatpush.msra.mxu0 %v175_v44 }
0x270b   :  { %v2777_v43 = vpop.f32.mrf.mxu2 }
0x270c   :  { %v2778_v63 = vadd.f32 %v4345_v10, %v2777_v43  ;;  %v174_v10 = vld [vmem:[%s4433_s20] sm:$0xff] }
0x270d   :  { %2900 = vmatpush.msra.mxu0 %v174_v10 }
0x270e   :  { %v2805_v46 = vadd.f32 %v2802_v62, %v2778_v63 }
0x2710   :  { %v2997_v3 = vmul.f32 -1.442695, %v2805_v46 }
0x2712   :  { %3211 = vpow2.f32 %v2997_v3 }
0x2718   :  { %v3212_v5 = vpop.eup %3211 }
0x2719   :  { %v2809_v19 = vadd.f32 1.0, %v3212_v5 }
0x271b   :  { %3213 = vrcp.f32 %v2809_v19  ;;  %v2821_v14 = vand.u32 2147483648, %v2809_v19  ;;  %vm2815_vm11 = vweird.f32 %v2809_v19  ;;  %v2819_v9 = vand.u32 2147483647, %v2809_v19 }
0x271d   :  { %v2822_v11 = vor.u32 1.1754944e-38, %v2821_v14  ;;  %vm2820_vm10 = vcmp.eq.f32.partialorder %v2819_v9, 8.507059e+37 }
0x2721   :  { %v3214_v40 = vpop.eup %3213 }
0x2722   :  { %v2811_v55 = vmul.f32 %v3214_v40, %v2809_v19  ;;  %vm2816_vm0 = vweird.f32 %v3214_v40 }
0x2723   :  { %vm2817_vm15 = vmor %vm2815_vm11, %vm2816_vm0 }
0x2724   :  { %v2812_v25 = vsub.f32 1.0, %v2811_v55 }
0x2726   :  { %v2813_v24 = vmul.f32 %v3214_v40, %v2812_v25 }
0x2728   :  { %v2814_v26 = vadd.f32 %v3214_v40, %v2813_v24 }
0x272a   :  { %v2818_v27 = vsel %vm2817_vm15, %v3214_v40, %v2814_v26 }
0x272b   :  { %v2823_v7 = vsel %vm2820_vm10, %v2822_v11, %v2818_v27 }
0x272c   :  { %v2837_v8 = vsub.f32 1.0, %v2823_v7  ;;  %v2843_v35 = vmul.f32 %v2823_v7, %v4360_v38 }
0x2737   :  { %v2828_v18 = vpop.permute.xlu1 %2827 }
0x2738   :  { %v2830_v54 = vmul.f32 %v2828_v18, %v2823_v7 }
0x273a   :  { %2832 = vrot.lane.b32.xlu2 %v2830_v54, %s3332_s29 }
0x273f   :  { %v2878_v31 = vpop.permute.xlu1 %2877 }
0x2740   :  { %2998 = vmatmul.msk.f32.vlgmr.msra.gmra.mxu0 %vm219_vm8, %v2878_v31 }
0x2794   :  { %v2833_v34 = vpop.permute.xlu2 %2832 }
0x2795   :  { %v2835_v49 = vadd.f32 %v2833_v34, %v2778_v63 }
0x2797   :  { %3215 = vtanh.f32 %v2835_v49 }
0x279d   :  { %v3216_v32 = vpop.eup %3215 }
0x279e   :  { %2839 = vrot.lane.b32.xlu0 %v3216_v32, %s3335_s5 }
0x27bd   :  { %v2902_v4 = vpop.f32.mrf.mxu0 }
0x27be   :  { %v2903_v28 = vadd.f32 %v3024_v33, %v2902_v4 }
0x27c0   :  { %2908 = vst.msk [vmem:[%s4435_s22] sm:$0xff] %vm184_vm1, %v2903_v28 }
0x2810   :  { %v2840_v13 = vpop.permute.xlu0 %2839 }
0x2811   :  { %v2842_v29 = vmul.f32 %v2840_v13, %v2837_v8 }
0x2813   :  { %v2844_v6 = vadd.f32 %v2843_v35, %v2842_v29 }
0x2815   :  { %v2845_v12 = vsel %vm1465_vm5, %v2844_v6, 0.0 }
0x2816   :  { %v2862_v41 = vrot.slane %v2845_v12, 2 }
0x2818   :  { %v2871_v48 = vsel %vm2867_vm2, %v4366_v60, %v2862_v41 }
0x2819   :  { %2879 = vrot.lane.b32.xlu2 %v2871_v48, %s3335_s5 }
0x2873   :  { %v2880_v52 = vpop.permute.xlu2 %2879 }
0x2874   :  { %2999 = vmatmul.msk.f32.gmra.mxu0 %vm219_vm8, %v2880_v52 }
0x28f1   :  { %v2905_v36 = vpop.f32.mrf.mxu0 }
0x28f2   :  { %v2906_v22 = vadd.f32 %v3024_v33, %v2905_v36 }
0x28f4   :  { %2909 = vst.msk [vmem:[%s4435_s22 + $0x8] sm:$0xff] %vm184_vm1, %v2906_v22 }
0x28f5   :  { %2914 = vsyncpa [#allocation3], 1 }
0x28f6   :  { %2915 = vsyncpa [#allocation5], 1 }
0x28f7   :  { %2916 = vsyncpa [#allocation8], 1 }

</bundles_post_ra>
